<compile_context>
chip_gen: v6e
topology: v6e:2x2x1
jax: 0.10.0
libtpu: 0.0.40
codegen_flags: <defaults>
</compile_context>

<pallas_src>
import functools
import math

import jax
import jax.numpy as jnp
from jax.experimental import pallas as pl
from jax.experimental.pallas import tpu as pltpu


def _layernorm_fused(x, gamma, beta, eps=1e-5):
    # Single-pass moments: mean(x) and mean(x^2) have no data dependency on each other.
    mu = jnp.mean(x, axis=-1, keepdims=True)
    ms = jnp.mean(x * x, axis=-1, keepdims=True)
    var = ms - mu * mu
    return (x - mu) * jax.lax.rsqrt(var + eps) * gamma + beta


def spatial_transformer_kernel(x_ref, w_ref, v_ref, out_ref, *, n_nodes, heads):
    rows, d = x_ref.shape
    g = rows // n_nodes                 # whole (batch, time) groups in this block
    dh = d // heads
    fed = w_ref.shape[0] - d

    xf = x_ref[...]                     # (rows, d) f32: input + spatial embedding (host-folded)
    xb = xf.astype(jnp.bfloat16)        # bf16 matmul operand

    # Packed bf16 weight slab (resident across grid steps):
    #   rows 0:d     -> [ Wo^T | W1^T | Wq^T*scale | Wk^T | Wv^T ]
    #   rows d:d+fed -> [ W2^T | 0 ... ]
    W = w_ref[...]
    woT = W[0:d, 0:d]
    w1T = W[0:d, d:d + fed]
    w2T = W[d:d + fed, 0:d]
    qoff = d + fed
    wqT = W[0:d, qoff:qoff + d]         # 1/sqrt(dh) already folded in
    wkT = W[0:d, qoff + d:qoff + 2 * d]
    wvT = W[0:d, qoff + 2 * d:qoff + 3 * d]

    V = v_ref[...]                      # (8, fed) f32 packed bias / LayerNorm vectors
    bo, ga1, be1, b2, ga2, be2 = (V[i:i + 1, 0:d] for i in range(6))
    b1 = V[6:7, 0:fed]

    # ---- multi-head attention ----------------------------------------------------
    # Per-head Q/K/V weights are static slices of the (tiny, loop-invariant) weight
    # slab, so no activation-tensor slicing/concats are needed; the head merge is
    # folded into the fc_out matmul accumulation.
    attn = jnp.zeros((rows, d), jnp.float32)
    for h in range(heads):
        cs = slice(h * dh, (h + 1) * dh)
        q = jnp.dot(xb, wqT[:, cs], preferred_element_type=jnp.float32)
        k = jnp.dot(xb, wkT[:, cs], preferred_element_type=jnp.float32)
        v = jnp.dot(xb, wvT[:, cs], preferred_element_type=jnp.float32)
        q3 = q.reshape(g, n_nodes, dh).astype(jnp.bfloat16)   # leading-dim split: layout-free
        k3 = k.reshape(g, n_nodes, dh).astype(jnp.bfloat16)
        v3 = v.reshape(g, n_nodes, dh).astype(jnp.bfloat16)

        s = jnp.einsum('gne,gme->gnm', q3, k3, preferred_element_type=jnp.float32)
        s = s - jnp.max(s, axis=-1, keepdims=True)
        p = jnp.exp(s)
        p = p * pl.reciprocal(jnp.sum(p, axis=-1, keepdims=True), approx=True)
        ctx = jnp.einsum('gnm,gme->gne', p.astype(jnp.bfloat16), v3,
                         preferred_element_type=jnp.float32)   # (g, N, dh)

        attn = attn + jnp.dot(ctx.reshape(rows, dh).astype(jnp.bfloat16),
                              woT[cs, :], preferred_element_type=jnp.float32)

    # fc_out bias + residual + LayerNorm1 (f32)
    x1 = _layernorm_fused(attn + bo + xf, ga1, be1)

    # Feed-forward (Linear -> ReLU -> Linear) + residual + LayerNorm2
    h1 = jnp.maximum(
        jnp.dot(x1.astype(jnp.bfloat16), w1T, preferred_element_type=jnp.float32) + b1,
        0.0)
    h2 = jnp.dot(h1.astype(jnp.bfloat16), w2T, preferred_element_type=jnp.float32) + b2
    out_ref[...] = _layernorm_fused(h2 + x1, ga2, be2)


def _tpu_budget():
    """(num TensorCores, physical VMEM bytes), with conservative fallbacks."""
    cores, vmem_cap = 2, 64 << 20
    try:
        info = pltpu.get_tpu_info()
        v = int(getattr(info, 'vmem_capacity_bytes', 0) or 0)
        if v > 0:
            vmem_cap = v
        for name in ('num_cores', 'core_count', 'num_tensor_cores', 'tensorcore_count'):
            c = getattr(info, name, None)
            if isinstance(c, int) and c > 0:
                cores = c
                break
    except Exception:
        pass
    return cores, vmem_cap


def _pick_groups_per_block(total_groups, n_nodes, bytes_per_group, cores, vmem_cap):
    """Largest whole-group block that fits a VMEM budget while still giving the
    pipeline >= max(4, 2*cores) grid steps (>=2 per TensorCore on multi-core chips)."""
    budget = max(vmem_cap // 8, 2 << 20)
    want_blocks = max(2 * cores, 4)
    cands = [gc for gc in range(1, total_groups + 1)
             if total_groups % gc == 0 and (gc * n_nodes) % 8 == 0]
    if not cands:
        return total_groups          # full array as one block (exempt from the 8-row rule)
    fitting = [gc for gc in cands if gc * bytes_per_group <= budget] or [min(cands)]
    enough = [gc for gc in fitting if total_groups // gc >= want_blocks]
    return max(enough) if enough else min(fitting)


def spatial_transformer(x, adj, params, *, heads):
    """x: (B, N, t, d) float32; adj: (N, N); returns (B, N, t, d) float32."""
    B, N, t, d = x.shape
    dh = d // heads
    fed = params['w1'].shape[0]
    assert fed >= d, "forward_expansion >= 1 expected"
    scale = 1.0 / math.sqrt(dh)

    # Batch-invariant spatial embedding folded into the input on the host.
    emb = adj @ params['we'].T + params['be']                  # (N, d)
    xe = jnp.transpose(x, (0, 2, 1, 3)) + emb                  # (B, t, N, d): rows grouped by (b, t)
    xf = xe.reshape(B * t * N, d)

    # Single packed bf16 weight slab (one DMA, stays resident).
    top = jnp.concatenate([params['wo'].T, params['w1'].T, params['wq'].T * scale,
                           params['wk'].T, params['wv'].T], axis=1)       # (d, 4d+fed)
    bot = jnp.concatenate([params['w2'].T,
                           jnp.zeros((fed, 3 * d + fed), jnp.float32)], axis=1)
    wpack = jnp.concatenate([top, bot], axis=0).astype(jnp.bfloat16)      # (d+fed, 4d+fed)

    # Packed f32 bias / LayerNorm vectors (one DMA): bo,g1,bt1,b2,g2,bt2 (padded), b1, 0.
    def pad_d(vrow):
        return jnp.pad(vrow, ((0, 0), (0, fed - d)))
    vpack = jnp.concatenate(
        [pad_d(params['bo']), pad_d(params['g1']), pad_d(params['bt1']),
         pad_d(params['b2']), pad_d(params['g2']), pad_d(params['bt2']),
         params['b1'], jnp.zeros((1, fed), jnp.float32)], axis=0)         # (8, fed)

    # Pipelined row-block grid on every generation: whole (batch,time) groups per block.
    total_groups = B * t
    cores, vmem_cap = _tpu_budget()
    bytes_per_group = 40 * N * d * 4            # generous per-group live-set estimate
    g_blk = _pick_groups_per_block(total_groups, N, bytes_per_group, cores, vmem_cap)
    n_blocks = total_groups // g_blk
    rows_blk = g_blk * N
    vmem_limit = int(min(max(vmem_cap * 3 // 4, 16 << 20), 100 << 20))

    kernel = functools.partial(spatial_transformer_kernel, n_nodes=N, heads=heads)

    out = pl.pallas_call(
        kernel,
        out_shape=jax.ShapeDtypeStruct((B * t * N, d), jnp.float32),
        grid=(n_blocks,),
        in_specs=[
            pl.BlockSpec((rows_blk, d), lambda i: (i, 0)),     # activations (+ embedding)
            pl.BlockSpec(wpack.shape, lambda i: (0, 0)),       # packed weights (resident)
            pl.BlockSpec(vpack.shape, lambda i: (0, 0)),       # packed bias/LN vectors
        ],
        out_specs=pl.BlockSpec((rows_blk, d), lambda i: (i, 0)),
        compiler_params=pltpu.CompilerParams(
            dimension_semantics=("parallel",),
            vmem_limit_bytes=vmem_limit),
    )(xf, wpack, vpack)

    return jnp.transpose(out.reshape(B, t, N, d), (0, 2, 1, 3))   # back to (B, N, t, d)


# ------------------------------ pure-JAX reference -----------------------------------
def _layernorm_ref(x, gamma, beta, eps=1e-5):
    mu = jnp.mean(x, axis=-1, keepdims=True)
    var = jnp.mean((x - mu) ** 2, axis=-1, keepdims=True)
    return (x - mu) * jax.lax.rsqrt(var + eps) * gamma + beta


def ref_forward(x, adj, p, heads):
    """Pure-JAX reference in the original PyTorch (B, N, t, d) layout, f32 throughout."""
    B, N, t, d = x.shape
    Dh = d // heads
    emb = adj @ p['we'].T + p['be']                     # (N, d)
    X = x + emb[None, :, None, :]

    def lin(a, w):
        return jnp.einsum('bntd,od->bnto', a, w)

    def to_heads(a):
        return a.reshape(B, N, t, heads, Dh).transpose(0, 3, 2, 1, 4)  # (B,H,t,N,Dh)

    Qh, Kh, Vh = (to_heads(lin(X, p[k])) for k in ('wq', 'wk', 'wv'))
    s = jnp.einsum('bhtnd,bhtmd->bhtnm', Qh, Kh) / math.sqrt(Dh)
    pr = jax.nn.softmax(s, axis=-1)
    ctx = jnp.einsum('bhtnm,bhtmd->bhtnd', pr, Vh)
    ctx = ctx.transpose(0, 3, 2, 1, 4).reshape(B, N, t, d)
    attn_out = ctx @ p['wo'].T + p['bo']
    x1 = _layernorm_ref(attn_out + X, p['g1'], p['bt1'])
    h1 = jnp.maximum(x1 @ p['w1'].T + p['b1'], 0.0)
    h2 = h1 @ p['w2'].T + p['b2']
    return _layernorm_ref(h2 + x1, p['g2'], p['bt2'])


def init_params(key, embed_size, n_nodes, forward_expansion):
    d, fed = embed_size, forward_expansion * embed_size
    ks = jax.random.split(key, 12)
    s = 0.1
    f32 = jnp.float32
    return {
        'we': s * jax.random.normal(ks[0], (d, n_nodes), f32),
        'be': s * jax.random.normal(ks[1], (1, d), f32),
        'wq': s * jax.random.normal(ks[2], (d, d), f32),
        'wk': s * jax.random.normal(ks[3], (d, d), f32),
        'wv': s * jax.random.normal(ks[4], (d, d), f32),
        'wo': s * jax.random.normal(ks[5], (d, d), f32),
        'bo': s * jax.random.normal(ks[6], (1, d), f32),
        'g1': jnp.ones((1, d), f32),
        'bt1': jnp.zeros((1, d), f32),
        'w1': s * jax.random.normal(ks[7], (fed, d), f32),
        'b1': s * jax.random.normal(ks[8], (1, fed), f32),
        'w2': s * jax.random.normal(ks[9], (d, fed), f32),
        'b2': s * jax.random.normal(ks[10], (1, d), f32),
        'g2': jnp.ones((1, d), f32),
        'bt2': jnp.zeros((1, d), f32),
    }


if __name__ == "__main__":
    # N=8 -> factor*ceil(ln 8)=15 >= N -> prob-sparse attention == dense attention.
    # t=16 gives B*t=32 groups -> a 4-step pipelined "parallel" grid of whole groups.
    B, N, t = 2, 8, 16
    embed_size, heads, forward_expansion = 32, 4, 2

    key = jax.random.PRNGKey(0)
    k_x, k_adj, k_p = jax.random.split(key, 3)

    x = jax.random.normal(k_x, (B, N, t, embed_size), jnp.float32)
    adj = (jax.random.uniform(k_adj, (N, N)) < 0.5).astype(jnp.float32)
    params = init_params(k_p, embed_size, N, forward_expansion)

    out = spatial_transformer(x, adj, params, heads=heads)
    out = jax.block_until_ready(out)

    ref = ref_forward(x, adj, params, heads)
    assert out.shape == (B, N, t, embed_size)
    assert bool(jnp.all(jnp.isfinite(out)))
    err = jnp.abs(out - ref)
    # bf16 MXU operands (per perf review) + the approx EUP reciprocal in the softmax
    # denominator are the only intentional approximations vs the f32 reference.
    assert float(jnp.max(err)) < 5e-2
    assert float(jnp.mean(err)) < 5e-3

    print("KERNEL_OK")
</pallas_src>

<mosaic_0001>
module attributes {stable_mosaic.version = 11 : i64} {
  func.func @spatial_transformer_kernel(%arg0: i32, %arg1: memref<64x32xf32, #tpu.memory_space<vmem>>, %arg2: memref<96x192xbf16, #tpu.memory_space<vmem>>, %arg3: memref<8x64xf32, #tpu.memory_space<vmem>>, %arg4: memref<64x32xf32, #tpu.memory_space<vmem>>) attributes {dimension_semantics = [#tpu.dimension_semantics<parallel>], iteration_bounds = array<i64: 4>, scalar_prefetch = 0 : i64, scratch_operands = 0 : i64, tpu.core_type = #tpu.core_type<tc>, window_params = [{transform_indices = @transform_0, window_bounds = array<i64: 64, 32>}, {pipeline_mode = #tpu.pipeline_mode<synchronous>, transform_indices = @transform_1, window_bounds = array<i64: 96, 192>}, {pipeline_mode = #tpu.pipeline_mode<synchronous>, transform_indices = @transform_2, window_bounds = array<i64: 8, 64>}, {transform_indices = @transform_3, window_bounds = array<i64: 64, 32>}]} {
    %c0 = arith.constant 0 : index
    %c0_0 = arith.constant 0 : index
    %0 = vector.load %arg1[%c0, %c0_0] : memref<64x32xf32, #tpu.memory_space<vmem>>, vector<64x32xf32>
    %1 = arith.truncf %0 : vector<64x32xf32> to vector<64x32xbf16>
    %c0_1 = arith.constant 0 : index
    %c0_2 = arith.constant 0 : index
    %2 = vector.load %arg2[%c0_1, %c0_2] : memref<96x192xbf16, #tpu.memory_space<vmem>>, vector<96x192xbf16>
    %3 = vector.extract_strided_slice %2 {offsets = [0, 0], sizes = [32, 32], strides = [1, 1]} : vector<96x192xbf16> to vector<32x32xbf16>
    %4 = vector.extract_strided_slice %2 {offsets = [0, 32], sizes = [32, 64], strides = [1, 1]} : vector<96x192xbf16> to vector<32x64xbf16>
    %5 = vector.extract_strided_slice %2 {offsets = [32, 0], sizes = [64, 32], strides = [1, 1]} : vector<96x192xbf16> to vector<64x32xbf16>
    %6 = vector.extract_strided_slice %2 {offsets = [0, 96], sizes = [32, 32], strides = [1, 1]} : vector<96x192xbf16> to vector<32x32xbf16>
    %7 = vector.extract_strided_slice %2 {offsets = [0, 128], sizes = [32, 32], strides = [1, 1]} : vector<96x192xbf16> to vector<32x32xbf16>
    %8 = vector.extract_strided_slice %2 {offsets = [0, 160], sizes = [32, 32], strides = [1, 1]} : vector<96x192xbf16> to vector<32x32xbf16>
    %c0_3 = arith.constant 0 : index
    %c0_4 = arith.constant 0 : index
    %9 = vector.load %arg3[%c0_3, %c0_4] : memref<8x64xf32, #tpu.memory_space<vmem>>, vector<8x64xf32>
    %10 = vector.extract_strided_slice %9 {offsets = [0, 0], sizes = [1, 32], strides = [1, 1]} : vector<8x64xf32> to vector<1x32xf32>
    %11 = vector.extract_strided_slice %9 {offsets = [1, 0], sizes = [1, 32], strides = [1, 1]} : vector<8x64xf32> to vector<1x32xf32>
    %12 = vector.extract_strided_slice %9 {offsets = [2, 0], sizes = [1, 32], strides = [1, 1]} : vector<8x64xf32> to vector<1x32xf32>
    %13 = vector.extract_strided_slice %9 {offsets = [3, 0], sizes = [1, 32], strides = [1, 1]} : vector<8x64xf32> to vector<1x32xf32>
    %14 = vector.extract_strided_slice %9 {offsets = [4, 0], sizes = [1, 32], strides = [1, 1]} : vector<8x64xf32> to vector<1x32xf32>
    %15 = vector.extract_strided_slice %9 {offsets = [5, 0], sizes = [1, 32], strides = [1, 1]} : vector<8x64xf32> to vector<1x32xf32>
    %16 = vector.extract_strided_slice %9 {offsets = [6, 0], sizes = [1, 64], strides = [1, 1]} : vector<8x64xf32> to vector<1x64xf32>
    %cst = arith.constant 0.000000e+00 : f32
    %17 = vector.broadcast %cst : f32 to vector<64x32xf32>
    %18 = vector.extract_strided_slice %6 {offsets = [0, 0], sizes = [32, 8], strides = [1, 1]} : vector<32x32xbf16> to vector<32x8xbf16>
    %cst_5 = arith.constant dense<0.000000e+00> : vector<64x8xf32>
    %19 = tpu.matmul %1, %18, %cst_5 {dimension_numbers = #tpu.dot_dimension_numbers<[1], [0], [0], [1], [0, 0, 1, 1], [], []>} : vector<64x32xbf16>, vector<32x8xbf16>, vector<64x8xf32> -> vector<64x8xf32>
    %20 = vector.extract_strided_slice %7 {offsets = [0, 0], sizes = [32, 8], strides = [1, 1]} : vector<32x32xbf16> to vector<32x8xbf16>
    %cst_6 = arith.constant dense<0.000000e+00> : vector<64x8xf32>
    %21 = tpu.matmul %1, %20, %cst_6 {dimension_numbers = #tpu.dot_dimension_numbers<[1], [0], [0], [1], [0, 0, 1, 1], [], []>} : vector<64x32xbf16>, vector<32x8xbf16>, vector<64x8xf32> -> vector<64x8xf32>
    %22 = vector.extract_strided_slice %8 {offsets = [0, 0], sizes = [32, 8], strides = [1, 1]} : vector<32x32xbf16> to vector<32x8xbf16>
    %cst_7 = arith.constant dense<0.000000e+00> : vector<64x8xf32>
    %23 = tpu.matmul %1, %22, %cst_7 {dimension_numbers = #tpu.dot_dimension_numbers<[1], [0], [0], [1], [0, 0, 1, 1], [], []>} : vector<64x32xbf16>, vector<32x8xbf16>, vector<64x8xf32> -> vector<64x8xf32>
    %24 = vector.shape_cast %19 : vector<64x8xf32> to vector<8x8x8xf32>
    %25 = arith.truncf %24 : vector<8x8x8xf32> to vector<8x8x8xbf16>
    %26 = vector.shape_cast %21 : vector<64x8xf32> to vector<8x8x8xf32>
    %27 = arith.truncf %26 : vector<8x8x8xf32> to vector<8x8x8xbf16>
    %28 = vector.shape_cast %23 : vector<64x8xf32> to vector<8x8x8xf32>
    %29 = arith.truncf %28 : vector<8x8x8xf32> to vector<8x8x8xbf16>
    "tpu.trace_start"() <{level = 10 : i32, message = "gne,gme->gnm"}> : () -> ()
    %cst_8 = arith.constant dense<0.000000e+00> : vector<8x8x8xf32>
    %30 = tpu.matmul %25, %27, %cst_8 {dimension_numbers = #tpu.dot_dimension_numbers<[2], [2], [1], [1], [0, 0, 0, 1, 1, 1], [0], [0]>} : vector<8x8x8xbf16>, vector<8x8x8xbf16>, vector<8x8x8xf32> -> vector<8x8x8xf32>
    "tpu.trace_stop"() : () -> ()
    %cst_9 = arith.constant dense<0xFF800000> : vector<8x8xf32>
    %31 = vector.multi_reduction <maximumf>, %30, %cst_9 [2] : vector<8x8x8xf32> to vector<8x8xf32>
    %32 = vector.shape_cast %31 : vector<8x8xf32> to vector<8x8x1xf32>
    %33 = vector.broadcast %32 : vector<8x8x1xf32> to vector<8x8x8xf32>
    %34 = arith.subf %30, %33 : vector<8x8x8xf32>
    %35 = math.exp %34 : vector<8x8x8xf32>
    %cst_10 = arith.constant dense<0.000000e+00> : vector<8x8xf32>
    %36 = vector.multi_reduction <add>, %35, %cst_10 [2] : vector<8x8x8xf32> to vector<8x8xf32>
    %37 = vector.shape_cast %36 : vector<8x8xf32> to vector<8x8x1xf32>
    %38 = tpu.reciprocal %37 {approx = true} : vector<8x8x1xf32> -> vector<8x8x1xf32>
    %39 = vector.broadcast %38 : vector<8x8x1xf32> to vector<8x8x8xf32>
    %40 = arith.mulf %35, %39 : vector<8x8x8xf32>
    %41 = arith.truncf %40 : vector<8x8x8xf32> to vector<8x8x8xbf16>
    "tpu.trace_start"() <{level = 10 : i32, message = "gnm,gme->gne"}> : () -> ()
    %cst_11 = arith.constant dense<0.000000e+00> : vector<8x8x8xf32>
    %42 = tpu.matmul %41, %29, %cst_11 {dimension_numbers = #tpu.dot_dimension_numbers<[2], [1], [1], [2], [0, 0, 0, 1, 1, 2], [0], [0]>} : vector<8x8x8xbf16>, vector<8x8x8xbf16>, vector<8x8x8xf32> -> vector<8x8x8xf32>
    "tpu.trace_stop"() : () -> ()
    %43 = vector.shape_cast %42 : vector<8x8x8xf32> to vector<64x8xf32>
    %44 = arith.truncf %43 : vector<64x8xf32> to vector<64x8xbf16>
    %45 = vector.extract_strided_slice %3 {offsets = [0, 0], sizes = [8, 32], strides = [1, 1]} : vector<32x32xbf16> to vector<8x32xbf16>
    %cst_12 = arith.constant dense<0.000000e+00> : vector<64x32xf32>
    %46 = tpu.matmul %44, %45, %cst_12 {dimension_numbers = #tpu.dot_dimension_numbers<[1], [0], [0], [1], [0, 0, 1, 1], [], []>} : vector<64x8xbf16>, vector<8x32xbf16>, vector<64x32xf32> -> vector<64x32xf32>
    %47 = arith.addf %17, %46 : vector<64x32xf32>
    %48 = vector.extract_strided_slice %6 {offsets = [0, 8], sizes = [32, 8], strides = [1, 1]} : vector<32x32xbf16> to vector<32x8xbf16>
    %cst_13 = arith.constant dense<0.000000e+00> : vector<64x8xf32>
    %49 = tpu.matmul %1, %48, %cst_13 {dimension_numbers = #tpu.dot_dimension_numbers<[1], [0], [0], [1], [0, 0, 1, 1], [], []>} : vector<64x32xbf16>, vector<32x8xbf16>, vector<64x8xf32> -> vector<64x8xf32>
    %50 = vector.extract_strided_slice %7 {offsets = [0, 8], sizes = [32, 8], strides = [1, 1]} : vector<32x32xbf16> to vector<32x8xbf16>
    %cst_14 = arith.constant dense<0.000000e+00> : vector<64x8xf32>
    %51 = tpu.matmul %1, %50, %cst_14 {dimension_numbers = #tpu.dot_dimension_numbers<[1], [0], [0], [1], [0, 0, 1, 1], [], []>} : vector<64x32xbf16>, vector<32x8xbf16>, vector<64x8xf32> -> vector<64x8xf32>
    %52 = vector.extract_strided_slice %8 {offsets = [0, 8], sizes = [32, 8], strides = [1, 1]} : vector<32x32xbf16> to vector<32x8xbf16>
    %cst_15 = arith.constant dense<0.000000e+00> : vector<64x8xf32>
    %53 = tpu.matmul %1, %52, %cst_15 {dimension_numbers = #tpu.dot_dimension_numbers<[1], [0], [0], [1], [0, 0, 1, 1], [], []>} : vector<64x32xbf16>, vector<32x8xbf16>, vector<64x8xf32> -> vector<64x8xf32>
    %54 = vector.shape_cast %49 : vector<64x8xf32> to vector<8x8x8xf32>
    %55 = arith.truncf %54 : vector<8x8x8xf32> to vector<8x8x8xbf16>
    %56 = vector.shape_cast %51 : vector<64x8xf32> to vector<8x8x8xf32>
    %57 = arith.truncf %56 : vector<8x8x8xf32> to vector<8x8x8xbf16>
    %58 = vector.shape_cast %53 : vector<64x8xf32> to vector<8x8x8xf32>
    %59 = arith.truncf %58 : vector<8x8x8xf32> to vector<8x8x8xbf16>
    "tpu.trace_start"() <{level = 10 : i32, message = "gne,gme->gnm"}> : () -> ()
    %cst_16 = arith.constant dense<0.000000e+00> : vector<8x8x8xf32>
    %60 = tpu.matmul %55, %57, %cst_16 {dimension_numbers = #tpu.dot_dimension_numbers<[2], [2], [1], [1], [0, 0, 0, 1, 1, 1], [0], [0]>} : vector<8x8x8xbf16>, vector<8x8x8xbf16>, vector<8x8x8xf32> -> vector<8x8x8xf32>
    "tpu.trace_stop"() : () -> ()
    %cst_17 = arith.constant dense<0xFF800000> : vector<8x8xf32>
    %61 = vector.multi_reduction <maximumf>, %60, %cst_17 [2] : vector<8x8x8xf32> to vector<8x8xf32>
    %62 = vector.shape_cast %61 : vector<8x8xf32> to vector<8x8x1xf32>
    %63 = vector.broadcast %62 : vector<8x8x1xf32> to vector<8x8x8xf32>
    %64 = arith.subf %60, %63 : vector<8x8x8xf32>
    %65 = math.exp %64 : vector<8x8x8xf32>
    %cst_18 = arith.constant dense<0.000000e+00> : vector<8x8xf32>
    %66 = vector.multi_reduction <add>, %65, %cst_18 [2] : vector<8x8x8xf32> to vector<8x8xf32>
    %67 = vector.shape_cast %66 : vector<8x8xf32> to vector<8x8x1xf32>
    %68 = tpu.reciprocal %67 {approx = true} : vector<8x8x1xf32> -> vector<8x8x1xf32>
    %69 = vector.broadcast %68 : vector<8x8x1xf32> to vector<8x8x8xf32>
    %70 = arith.mulf %65, %69 : vector<8x8x8xf32>
    %71 = arith.truncf %70 : vector<8x8x8xf32> to vector<8x8x8xbf16>
    "tpu.trace_start"() <{level = 10 : i32, message = "gnm,gme->gne"}> : () -> ()
    %cst_19 = arith.constant dense<0.000000e+00> : vector<8x8x8xf32>
    %72 = tpu.matmul %71, %59, %cst_19 {dimension_numbers = #tpu.dot_dimension_numbers<[2], [1], [1], [2], [0, 0, 0, 1, 1, 2], [0], [0]>} : vector<8x8x8xbf16>, vector<8x8x8xbf16>, vector<8x8x8xf32> -> vector<8x8x8xf32>
    "tpu.trace_stop"() : () -> ()
    %73 = vector.shape_cast %72 : vector<8x8x8xf32> to vector<64x8xf32>
    %74 = arith.truncf %73 : vector<64x8xf32> to vector<64x8xbf16>
    %75 = vector.extract_strided_slice %3 {offsets = [8, 0], sizes = [8, 32], strides = [1, 1]} : vector<32x32xbf16> to vector<8x32xbf16>
    %cst_20 = arith.constant dense<0.000000e+00> : vector<64x32xf32>
    %76 = tpu.matmul %74, %75, %cst_20 {dimension_numbers = #tpu.dot_dimension_numbers<[1], [0], [0], [1], [0, 0, 1, 1], [], []>} : vector<64x8xbf16>, vector<8x32xbf16>, vector<64x32xf32> -> vector<64x32xf32>
    %77 = arith.addf %47, %76 : vector<64x32xf32>
    %78 = vector.extract_strided_slice %6 {offsets = [0, 16], sizes = [32, 8], strides = [1, 1]} : vector<32x32xbf16> to vector<32x8xbf16>
    %cst_21 = arith.constant dense<0.000000e+00> : vector<64x8xf32>
    %79 = tpu.matmul %1, %78, %cst_21 {dimension_numbers = #tpu.dot_dimension_numbers<[1], [0], [0], [1], [0, 0, 1, 1], [], []>} : vector<64x32xbf16>, vector<32x8xbf16>, vector<64x8xf32> -> vector<64x8xf32>
    %80 = vector.extract_strided_slice %7 {offsets = [0, 16], sizes = [32, 8], strides = [1, 1]} : vector<32x32xbf16> to vector<32x8xbf16>
    %cst_22 = arith.constant dense<0.000000e+00> : vector<64x8xf32>
    %81 = tpu.matmul %1, %80, %cst_22 {dimension_numbers = #tpu.dot_dimension_numbers<[1], [0], [0], [1], [0, 0, 1, 1], [], []>} : vector<64x32xbf16>, vector<32x8xbf16>, vector<64x8xf32> -> vector<64x8xf32>
    %82 = vector.extract_strided_slice %8 {offsets = [0, 16], sizes = [32, 8], strides = [1, 1]} : vector<32x32xbf16> to vector<32x8xbf16>
    %cst_23 = arith.constant dense<0.000000e+00> : vector<64x8xf32>
    %83 = tpu.matmul %1, %82, %cst_23 {dimension_numbers = #tpu.dot_dimension_numbers<[1], [0], [0], [1], [0, 0, 1, 1], [], []>} : vector<64x32xbf16>, vector<32x8xbf16>, vector<64x8xf32> -> vector<64x8xf32>
    %84 = vector.shape_cast %79 : vector<64x8xf32> to vector<8x8x8xf32>
    %85 = arith.truncf %84 : vector<8x8x8xf32> to vector<8x8x8xbf16>
    %86 = vector.shape_cast %81 : vector<64x8xf32> to vector<8x8x8xf32>
    %87 = arith.truncf %86 : vector<8x8x8xf32> to vector<8x8x8xbf16>
    %88 = vector.shape_cast %83 : vector<64x8xf32> to vector<8x8x8xf32>
    %89 = arith.truncf %88 : vector<8x8x8xf32> to vector<8x8x8xbf16>
    "tpu.trace_start"() <{level = 10 : i32, message = "gne,gme->gnm"}> : () -> ()
    %cst_24 = arith.constant dense<0.000000e+00> : vector<8x8x8xf32>
    %90 = tpu.matmul %85, %87, %cst_24 {dimension_numbers = #tpu.dot_dimension_numbers<[2], [2], [1], [1], [0, 0, 0, 1, 1, 1], [0], [0]>} : vector<8x8x8xbf16>, vector<8x8x8xbf16>, vector<8x8x8xf32> -> vector<8x8x8xf32>
    "tpu.trace_stop"() : () -> ()
    %cst_25 = arith.constant dense<0xFF800000> : vector<8x8xf32>
    %91 = vector.multi_reduction <maximumf>, %90, %cst_25 [2] : vector<8x8x8xf32> to vector<8x8xf32>
    %92 = vector.shape_cast %91 : vector<8x8xf32> to vector<8x8x1xf32>
    %93 = vector.broadcast %92 : vector<8x8x1xf32> to vector<8x8x8xf32>
    %94 = arith.subf %90, %93 : vector<8x8x8xf32>
    %95 = math.exp %94 : vector<8x8x8xf32>
    %cst_26 = arith.constant dense<0.000000e+00> : vector<8x8xf32>
    %96 = vector.multi_reduction <add>, %95, %cst_26 [2] : vector<8x8x8xf32> to vector<8x8xf32>
    %97 = vector.shape_cast %96 : vector<8x8xf32> to vector<8x8x1xf32>
    %98 = tpu.reciprocal %97 {approx = true} : vector<8x8x1xf32> -> vector<8x8x1xf32>
    %99 = vector.broadcast %98 : vector<8x8x1xf32> to vector<8x8x8xf32>
    %100 = arith.mulf %95, %99 : vector<8x8x8xf32>
    %101 = arith.truncf %100 : vector<8x8x8xf32> to vector<8x8x8xbf16>
    "tpu.trace_start"() <{level = 10 : i32, message = "gnm,gme->gne"}> : () -> ()
    %cst_27 = arith.constant dense<0.000000e+00> : vector<8x8x8xf32>
    %102 = tpu.matmul %101, %89, %cst_27 {dimension_numbers = #tpu.dot_dimension_numbers<[2], [1], [1], [2], [0, 0, 0, 1, 1, 2], [0], [0]>} : vector<8x8x8xbf16>, vector<8x8x8xbf16>, vector<8x8x8xf32> -> vector<8x8x8xf32>
    "tpu.trace_stop"() : () -> ()
    %103 = vector.shape_cast %102 : vector<8x8x8xf32> to vector<64x8xf32>
    %104 = arith.truncf %103 : vector<64x8xf32> to vector<64x8xbf16>
    %105 = vector.extract_strided_slice %3 {offsets = [16, 0], sizes = [8, 32], strides = [1, 1]} : vector<32x32xbf16> to vector<8x32xbf16>
    %cst_28 = arith.constant dense<0.000000e+00> : vector<64x32xf32>
    %106 = tpu.matmul %104, %105, %cst_28 {dimension_numbers = #tpu.dot_dimension_numbers<[1], [0], [0], [1], [0, 0, 1, 1], [], []>} : vector<64x8xbf16>, vector<8x32xbf16>, vector<64x32xf32> -> vector<64x32xf32>
    %107 = arith.addf %77, %106 : vector<64x32xf32>
    %108 = vector.extract_strided_slice %6 {offsets = [0, 24], sizes = [32, 8], strides = [1, 1]} : vector<32x32xbf16> to vector<32x8xbf16>
    %cst_29 = arith.constant dense<0.000000e+00> : vector<64x8xf32>
    %109 = tpu.matmul %1, %108, %cst_29 {dimension_numbers = #tpu.dot_dimension_numbers<[1], [0], [0], [1], [0, 0, 1, 1], [], []>} : vector<64x32xbf16>, vector<32x8xbf16>, vector<64x8xf32> -> vector<64x8xf32>
    %110 = vector.extract_strided_slice %7 {offsets = [0, 24], sizes = [32, 8], strides = [1, 1]} : vector<32x32xbf16> to vector<32x8xbf16>
    %cst_30 = arith.constant dense<0.000000e+00> : vector<64x8xf32>
    %111 = tpu.matmul %1, %110, %cst_30 {dimension_numbers = #tpu.dot_dimension_numbers<[1], [0], [0], [1], [0, 0, 1, 1], [], []>} : vector<64x32xbf16>, vector<32x8xbf16>, vector<64x8xf32> -> vector<64x8xf32>
    %112 = vector.extract_strided_slice %8 {offsets = [0, 24], sizes = [32, 8], strides = [1, 1]} : vector<32x32xbf16> to vector<32x8xbf16>
    %cst_31 = arith.constant dense<0.000000e+00> : vector<64x8xf32>
    %113 = tpu.matmul %1, %112, %cst_31 {dimension_numbers = #tpu.dot_dimension_numbers<[1], [0], [0], [1], [0, 0, 1, 1], [], []>} : vector<64x32xbf16>, vector<32x8xbf16>, vector<64x8xf32> -> vector<64x8xf32>
    %114 = vector.shape_cast %109 : vector<64x8xf32> to vector<8x8x8xf32>
    %115 = arith.truncf %114 : vector<8x8x8xf32> to vector<8x8x8xbf16>
    %116 = vector.shape_cast %111 : vector<64x8xf32> to vector<8x8x8xf32>
    %117 = arith.truncf %116 : vector<8x8x8xf32> to vector<8x8x8xbf16>
    %118 = vector.shape_cast %113 : vector<64x8xf32> to vector<8x8x8xf32>
    %119 = arith.truncf %118 : vector<8x8x8xf32> to vector<8x8x8xbf16>
    "tpu.trace_start"() <{level = 10 : i32, message = "gne,gme->gnm"}> : () -> ()
    %cst_32 = arith.constant dense<0.000000e+00> : vector<8x8x8xf32>
    %120 = tpu.matmul %115, %117, %cst_32 {dimension_numbers = #tpu.dot_dimension_numbers<[2], [2], [1], [1], [0, 0, 0, 1, 1, 1], [0], [0]>} : vector<8x8x8xbf16>, vector<8x8x8xbf16>, vector<8x8x8xf32> -> vector<8x8x8xf32>
    "tpu.trace_stop"() : () -> ()
    %cst_33 = arith.constant dense<0xFF800000> : vector<8x8xf32>
    %121 = vector.multi_reduction <maximumf>, %120, %cst_33 [2] : vector<8x8x8xf32> to vector<8x8xf32>
    %122 = vector.shape_cast %121 : vector<8x8xf32> to vector<8x8x1xf32>
    %123 = vector.broadcast %122 : vector<8x8x1xf32> to vector<8x8x8xf32>
    %124 = arith.subf %120, %123 : vector<8x8x8xf32>
    %125 = math.exp %124 : vector<8x8x8xf32>
    %cst_34 = arith.constant dense<0.000000e+00> : vector<8x8xf32>
    %126 = vector.multi_reduction <add>, %125, %cst_34 [2] : vector<8x8x8xf32> to vector<8x8xf32>
    %127 = vector.shape_cast %126 : vector<8x8xf32> to vector<8x8x1xf32>
    %128 = tpu.reciprocal %127 {approx = true} : vector<8x8x1xf32> -> vector<8x8x1xf32>
    %129 = vector.broadcast %128 : vector<8x8x1xf32> to vector<8x8x8xf32>
    %130 = arith.mulf %125, %129 : vector<8x8x8xf32>
    %131 = arith.truncf %130 : vector<8x8x8xf32> to vector<8x8x8xbf16>
    "tpu.trace_start"() <{level = 10 : i32, message = "gnm,gme->gne"}> : () -> ()
    %cst_35 = arith.constant dense<0.000000e+00> : vector<8x8x8xf32>
    %132 = tpu.matmul %131, %119, %cst_35 {dimension_numbers = #tpu.dot_dimension_numbers<[2], [1], [1], [2], [0, 0, 0, 1, 1, 2], [0], [0]>} : vector<8x8x8xbf16>, vector<8x8x8xbf16>, vector<8x8x8xf32> -> vector<8x8x8xf32>
    "tpu.trace_stop"() : () -> ()
    %133 = vector.shape_cast %132 : vector<8x8x8xf32> to vector<64x8xf32>
    %134 = arith.truncf %133 : vector<64x8xf32> to vector<64x8xbf16>
    %135 = vector.extract_strided_slice %3 {offsets = [24, 0], sizes = [8, 32], strides = [1, 1]} : vector<32x32xbf16> to vector<8x32xbf16>
    %cst_36 = arith.constant dense<0.000000e+00> : vector<64x32xf32>
    %136 = tpu.matmul %134, %135, %cst_36 {dimension_numbers = #tpu.dot_dimension_numbers<[1], [0], [0], [1], [0, 0, 1, 1], [], []>} : vector<64x8xbf16>, vector<8x32xbf16>, vector<64x32xf32> -> vector<64x32xf32>
    %137 = arith.addf %107, %136 : vector<64x32xf32>
    %138 = vector.broadcast %10 : vector<1x32xf32> to vector<64x32xf32>
    %139 = arith.addf %137, %138 : vector<64x32xf32>
    %140 = arith.addf %139, %0 : vector<64x32xf32>
    %cst_37 = arith.constant dense<0.000000e+00> : vector<64xf32>
    %141 = vector.multi_reduction <add>, %140, %cst_37 [1] : vector<64x32xf32> to vector<64xf32>
    %142 = vector.shape_cast %141 : vector<64xf32> to vector<64x1xf32>
    %cst_38 = arith.constant 3.200000e+01 : f32
    %143 = vector.broadcast %cst_38 : f32 to vector<64x1xf32>
    %144 = arith.divf %142, %143 : vector<64x1xf32>
    %145 = arith.mulf %140, %140 : vector<64x32xf32>
    %cst_39 = arith.constant dense<0.000000e+00> : vector<64xf32>
    %146 = vector.multi_reduction <add>, %145, %cst_39 [1] : vector<64x32xf32> to vector<64xf32>
    %147 = vector.shape_cast %146 : vector<64xf32> to vector<64x1xf32>
    %cst_40 = arith.constant 3.200000e+01 : f32
    %148 = vector.broadcast %cst_40 : f32 to vector<64x1xf32>
    %149 = arith.divf %147, %148 : vector<64x1xf32>
    %150 = arith.mulf %144, %144 : vector<64x1xf32>
    %151 = arith.subf %149, %150 : vector<64x1xf32>
    %152 = vector.broadcast %144 : vector<64x1xf32> to vector<64x32xf32>
    %153 = arith.subf %140, %152 : vector<64x32xf32>
    %cst_41 = arith.constant 9.99999974E-6 : f32
    %154 = vector.broadcast %cst_41 : f32 to vector<64x1xf32>
    %155 = arith.addf %151, %154 : vector<64x1xf32>
    %156 = math.rsqrt %155 : vector<64x1xf32>
    %157 = vector.broadcast %156 : vector<64x1xf32> to vector<64x32xf32>
    %158 = arith.mulf %153, %157 : vector<64x32xf32>
    %159 = vector.broadcast %11 : vector<1x32xf32> to vector<64x32xf32>
    %160 = arith.mulf %158, %159 : vector<64x32xf32>
    %161 = vector.broadcast %12 : vector<1x32xf32> to vector<64x32xf32>
    %162 = arith.addf %160, %161 : vector<64x32xf32>
    %163 = arith.truncf %162 : vector<64x32xf32> to vector<64x32xbf16>
    %cst_42 = arith.constant dense<0.000000e+00> : vector<64x64xf32>
    %164 = tpu.matmul %163, %4, %cst_42 {dimension_numbers = #tpu.dot_dimension_numbers<[1], [0], [0], [1], [0, 0, 1, 1], [], []>} : vector<64x32xbf16>, vector<32x64xbf16>, vector<64x64xf32> -> vector<64x64xf32>
    %165 = vector.broadcast %16 : vector<1x64xf32> to vector<64x64xf32>
    %166 = arith.addf %164, %165 : vector<64x64xf32>
    %cst_43 = arith.constant 0.000000e+00 : f32
    %167 = vector.broadcast %cst_43 : f32 to vector<64x64xf32>
    %168 = arith.maximumf %166, %167 : vector<64x64xf32>
    %169 = arith.truncf %168 : vector<64x64xf32> to vector<64x64xbf16>
    %cst_44 = arith.constant dense<0.000000e+00> : vector<64x32xf32>
    %170 = tpu.matmul %169, %5, %cst_44 {dimension_numbers = #tpu.dot_dimension_numbers<[1], [0], [0], [1], [0, 0, 1, 1], [], []>} : vector<64x64xbf16>, vector<64x32xbf16>, vector<64x32xf32> -> vector<64x32xf32>
    %171 = vector.broadcast %13 : vector<1x32xf32> to vector<64x32xf32>
    %172 = arith.addf %170, %171 : vector<64x32xf32>
    %173 = arith.addf %172, %162 : vector<64x32xf32>
    %cst_45 = arith.constant dense<0.000000e+00> : vector<64xf32>
    %174 = vector.multi_reduction <add>, %173, %cst_45 [1] : vector<64x32xf32> to vector<64xf32>
    %175 = vector.shape_cast %174 : vector<64xf32> to vector<64x1xf32>
    %cst_46 = arith.constant 3.200000e+01 : f32
    %176 = vector.broadcast %cst_46 : f32 to vector<64x1xf32>
    %177 = arith.divf %175, %176 : vector<64x1xf32>
    %178 = arith.mulf %173, %173 : vector<64x32xf32>
    %cst_47 = arith.constant dense<0.000000e+00> : vector<64xf32>
    %179 = vector.multi_reduction <add>, %178, %cst_47 [1] : vector<64x32xf32> to vector<64xf32>
    %180 = vector.shape_cast %179 : vector<64xf32> to vector<64x1xf32>
    %cst_48 = arith.constant 3.200000e+01 : f32
    %181 = vector.broadcast %cst_48 : f32 to vector<64x1xf32>
    %182 = arith.divf %180, %181 : vector<64x1xf32>
    %183 = arith.mulf %177, %177 : vector<64x1xf32>
    %184 = arith.subf %182, %183 : vector<64x1xf32>
    %185 = vector.broadcast %177 : vector<64x1xf32> to vector<64x32xf32>
    %186 = arith.subf %173, %185 : vector<64x32xf32>
    %cst_49 = arith.constant 9.99999974E-6 : f32
    %187 = vector.broadcast %cst_49 : f32 to vector<64x1xf32>
    %188 = arith.addf %184, %187 : vector<64x1xf32>
    %189 = math.rsqrt %188 : vector<64x1xf32>
    %190 = vector.broadcast %189 : vector<64x1xf32> to vector<64x32xf32>
    %191 = arith.mulf %186, %190 : vector<64x32xf32>
    %192 = vector.broadcast %14 : vector<1x32xf32> to vector<64x32xf32>
    %193 = arith.mulf %191, %192 : vector<64x32xf32>
    %194 = vector.broadcast %15 : vector<1x32xf32> to vector<64x32xf32>
    %195 = arith.addf %193, %194 : vector<64x32xf32>
    %c0_50 = arith.constant 0 : index
    %c0_51 = arith.constant 0 : index
    %196 = vector.load %arg4[%c0_50, %c0_51] : memref<64x32xf32, #tpu.memory_space<vmem>>, vector<64x32xf32>
    tpu.vector_store %arg4[%c0_50, %c0_51], %195 {strides = array<i32>} : memref<64x32xf32, #tpu.memory_space<vmem>>, vector<64x32xf32>,
    return
  }
  func.func @transform_0(%arg0: i32) -> (i32, i32) {
    %c0_i32 = arith.constant 0 : i32
    %c0_i32_0 = arith.constant 0 : i32
    return %arg0, %c0_i32 : i32, i32
  }
  func.func @transform_1(%arg0: i32) -> (i32, i32) {
    %c0_i32 = arith.constant 0 : i32
    %c0_i32_0 = arith.constant 0 : i32
    %c0_i32_1 = arith.constant 0 : i32
    return %c0_i32, %c0_i32_0 : i32, i32
  }
  func.func @transform_2(%arg0: i32) -> (i32, i32) {
    %c0_i32 = arith.constant 0 : i32
    %c0_i32_0 = arith.constant 0 : i32
    %c0_i32_1 = arith.constant 0 : i32
    return %c0_i32, %c0_i32_0 : i32, i32
  }
  func.func @transform_3(%arg0: i32) -> (i32, i32) {
    %c0_i32 = arith.constant 0 : i32
    %c0_i32_0 = arith.constant 0 : i32
    return %arg0, %c0_i32 : i32, i32
  }
}

</mosaic_0001>

<bundles_post_ra>
// kernel: tpu_custom_call.1
= control target key start
LH: loop header
LB: loop body
LE: loop exit
PB: predicated region body
PF: predicated region fallthrough
CT: control target
= control target key end

     0   :  { %s6680_s12 = smov 0   ;;  %s7884_s0 = inlined_call_operand.vmem [shape: f32[256,32], index: 0, kind: input, shape index: {}]   ;;  %s7885_s1 = inlined_call_operand.vmem [shape: bf16[96,192], index: 1, kind: input, shape index: {}]   ;;  %s7886_s2 = inlined_call_operand.vmem [shape: f32[8,64], index: 2, kind: input, shape index: {}]   ;;  %s7887_s3 = inlined_call_operand.vmem [shape: f32[256,32], index: 3, kind: output, shape index: {}]  }
   0x1 LB: > { %s5445_s13 = sadd.s32 4294967295, %s6645_s12   ;;  %p5449_p0 = scmp.ge.s32.totalorder %s6645_s12, 1  ;;  %s6645_s12 = sphi %s6680_s12, %s13_s12  }
   0x2   : > { %p138_p1 = scmp.lt.s32.totalorder %s6645_s12, 5 }
   0x4   : > { %p139_p2 = pnand %p5449_p0, %p138_p1 }
   0x5   : > { %s5450_s20 = sshll.u32 (!%p139_p2), %s5445_s13, 3  ;;  %s6647_s23 = smov (!%p139_p2), 32  }
   0x6   : > { %142 = sbr.rel (%p139_p2) target bundleno = 4688 (0x1250), region = 32  ;;  %p163_p3 = scmp.lt.s32.totalorder (!%p139_p2), %s5450_s20, 31 }
   0x7   : > { %s6648_s28 = smov (!%p139_p2), 96   ;;  %s6651_s29 = smov (!%p139_p2), 120  }
   0x8   : > { %s6652_s30 = smov (!%p139_p2), 24   ;;  %s6653_s4 = smov (!%p139_p2), 88  }
   0x9   : > { %s6654_s5 = smov (!%p139_p2), 112   ;;  %s6655_s6 = smov (!%p139_p2), 16  }
   0xa   : > { %s6656_s11 = smov (!%p139_p2), 80   ;;  %s6657_s13 = smov (!%p139_p2), 104  }
   0xb   : > { %v189_v0 = vld [vmem:[%s7885_s1 + $0x10] sm:$0xff]  ;;  %v190_v1 = vld [vmem:[%s7885_s1 + $0x18] sm:$0xff]  ;;  %v187_v2 = vld [vmem:[%s7885_s1] sm:$0xff]  ;;  %s7889_s20 = smov (!%p163_p3, %s5450_s20), 31  ;;  %vm216_vm0 = vcmask 261120   ;;  %v6649_v24 = vmov 0.0  }
   0xc   : > { %v6697_v3 = vcombine.low %v189_v0, %v190_v1  ;;  %v188_v4 = vld [vmem:[%s7885_s1 + $0x8] sm:$0xff]  ;;  %s5451_s24 = sshll.u32 %s7889_s20, 3  ;;  %v6728_v12 = vcombine.high %v189_v0, %v190_v1  ;;  %vm6650_vm1 = vmmov 0   ;;  %vm462_vm2 = vcmask 64512   ;;  %s6658_s14 = smov 8  }
   0xd   : > { %v6703_v5 = vcombine.low %v187_v2, %v188_v4  ;;  %s6713_s27 = scalar_lea.vmem %s7884_s0, %s5451_s24  ;;  %v6732_v13 = vcombine.high %v187_v2, %v188_v4  ;;  %vm930_vm3 = vcmask 1043456   ;;  %s6659_s17 = smov 72   ;;  %vm5151_vm4 = vcmask 523264  }
   0xe   : > { %212 = vrot.lane.b32.xlu0 %v6697_v3, %s6647_s23  ;;  %v179_v6 = vld [vmem:[%s6713_s27 + $0x20] sm:$0xff]  ;;  %v180_v7 = vld [vmem:[%s6713_s27 + $0x28] sm:$0xff]  ;;  %369 = vrot.lane.b32.xlu1 %v6728_v12, %s6648_s28  ;;  %s7841_s7 = scalar_lea.vmem %s7887_s3, %s5451_s24 }
   0xf   : > { %v6718_v8 = vpack.c.bf16 %v180_v7, %v179_v6  ;;  %v175_v9 = vld [vmem:[%s6713_s27] sm:$0xff]  ;;  %v176_v10 = vld [vmem:[%s6713_s27 + $0x8] sm:$0xff]  ;;  %v181_v15 = vld [vmem:[%s6713_s27 + $0x30] sm:$0xff] }
  0x10   : > { %v6722_v11 = vpack.c.bf16 %v176_v10, %v175_v9  ;;  %v182_v16 = vld [vmem:[%s6713_s27 + $0x38] sm:$0xff]  ;;  %v177_v18 = vld [vmem:[%s6713_s27 + $0x10] sm:$0xff] }
  0x11   : > { %5842 = vmatprep.mubr.msk.bf16.mxu1 %vm216_vm0, %v6718_v8  ;;  %v178_v19 = vld [vmem:[%s6713_s27 + $0x18] sm:$0xff]  ;;  %v6740_v20 = vpack.c.bf16 %v182_v16, %v181_v15 }
  0x12   : > { %210 = vrot.lane.b32.xlu0 %v6703_v5, %s6647_s23  ;;  %5838 = vmatprep.mubr.msk.bf16.mxu0 %vm216_vm0, %v6722_v11  ;;  %v6743_v21 = vpack.c.bf16 %v178_v19, %v177_v18 }
  0x13   : > { %367 = vrot.lane.b32.xlu1 %v6732_v13, %s6648_s28 }
  0x80   : > { %v213_v14 = vpop.permute.xlu0 %212  ;;  %v370_v22 = vpop.permute.xlu1 %369 }
  0x81   : > { %5834 = vmatprep.subr.bf16.mxu0 %v213_v14  ;;  %6430 = vmatprep.subr.bf16.mxu1 %v213_v14 }
  0x82   : > { %5835 = vmatpush3.bf16.msra.mxu0 %v213_v14  ;;  %6432 = vmatpush3.bf16.msra.mxu1 %v213_v14 }
  0x84   : > { %v211_v17 = vpop.permute.xlu0 %210 }
  0x85   : > { %5836 = vmatprep.subr.bf16.mxu0 %v211_v17  ;;  %6431 = vmatprep.subr.bf16.mxu1 %v211_v17  ;;  %v368_v23 = vpop.permute.xlu1 %367 }
  0x86   : > { %5837 = vmatpush3.bf16.msra.mxu0 %v211_v17  ;;  %6433 = vmatpush3.bf16.msra.mxu1 %v211_v17 }
  0x87   : > { %5846 = vmatprep.subr.bf16.mxu1 %v6728_v12  ;;  %5858 = vmatprep.subr.bf16.mxu0 %v370_v22 }
  0x89   : > { %5843 = vmatmul.mubr.msk.bf16.vlgmr.msra.gmra.mxu1 %vm216_vm0, %v6740_v20  ;;  %5839 = vmatmul.mubr.msk.bf16.vlgmr.msra.gmra.mxu0 %vm216_vm0, %v6743_v21 }
  0x8a   : > { %5847 = vmatpush3.bf16.msra.mxu1 %v6728_v12  ;;  %5850 = vmatprep.mubr.msk.bf16.mxu1 %vm216_vm0, %v6722_v11 }
  0x8b   : > { %5848 = vmatprep.subr.bf16.mxu1 %v6732_v13  ;;  %5862 = vmatprep.mubr.msk.bf16.mxu0 %vm216_vm0, %v6722_v11 }
  0x8c   : > { %5859 = vmatpush3.bf16.msra.mxu0 %v370_v22 }
  0x8d   : > { %5860 = vmatprep.subr.bf16.mxu0 %v368_v23 }
  0x8e   : > { %5849 = vmatpush3.bf16.msra.mxu1 %v6732_v13 }
  0x8f   : > { %5870 = vmatprep.subr.bf16.mxu1 %v6649_v24 }
  0x90   : > { %5861 = vmatpush3.bf16.msra.mxu0 %v368_v23 }
  0x91   : > { %5851 = vmatmul.mubr.msk.bf16.vlgmr.msra.gmra.mxu1 %vm216_vm0, %v6743_v21  ;;  %5882 = vmatprep.subr.bf16.mxu0 %v6649_v24 }
  0x92   : > { %5854 = vmatprep.mubr.msk.bf16.mxu1 %vm216_vm0, %v6718_v8 }
  0x93   : > { %5863 = vmatmul.mubr.msk.bf16.vlgmr.msra.gmra.mxu0 %vm216_vm0, %v6743_v21 }
  0x94   : > { %5866 = vmatprep.mubr.msk.bf16.mxu0 %vm216_vm0, %v6718_v8 }
  0x99   : > { %5855 = vmatmul.mubr.msk.bf16.gmra.mxu1 %vm216_vm0, %v6740_v20 }
  0x9a   : > { %5872 = vmatprep.mubr.msk.bf16.mxu1 %vm6650_vm1, %v6649_v24 }
  0x9b   : > { %5867 = vmatmul.mubr.msk.bf16.gmra.mxu0 %vm216_vm0, %v6740_v20 }
  0x9c   : > { %5884 = vmatprep.mubr.msk.bf16.mxu0 %vm6650_vm1, %v6649_v24 }
 0x149   : > { %v6774_v25 = vpop.f32.mrf.mxu1  ;;  %v5840_v34 = vpop.f32.mrf.mxu0 }
 0x14a   : > { %v440_v38 = vpack.c.bf16 %v5840_v34, %v5840_v34  ;;  %v444_v61 = vpack.c.bf16 %v6774_v25, %v6774_v25 }
 0x14b   : > { %v279_v26 = vpop.f32.mrf.mxu1  ;;  %v263_v39 = vpop.f32.mrf.mxu0 }
 0x14c   : > { %v438_v43 = vpack.c.bf16 %v263_v39, %v263_v39  ;;  %v442_v52 = vpack.c.bf16 %v279_v26, %v279_v26 }
 0x14d   : > { %v6776_v27 = vpop.f32.mrf.mxu1  ;;  %v5841_v45 = vpop.f32.mrf.mxu0 }
 0x14e   : > { %v441_v62 = vpack.c.bf16 %v5841_v45, %v5841_v45  ;;  %v445_v6 = vpack.c.bf16 %v6776_v27, %v6776_v27 }
 0x14f   : > { %v6778_v28 = vpop.f32.mrf.mxu1  ;;  %v266_v49 = vpop.f32.mrf.mxu0 }
 0x150   : > { %v439_v53 = vpack.c.bf16 %v266_v49, %v266_v49  ;;  %v443_v2 = vpack.c.bf16 %v6778_v28, %v6778_v28 }
 0x151   : > { %v5852_v29 = vpop.f32.mrf.mxu1 }
 0x152   : > { %v448_v30 = vpack.c.bf16 %v5852_v29, %v5852_v29 }
 0x153   : > { %v336_v31 = vpop.f32.mrf.mxu1  ;;  %v6795_v55 = vpop.f32.mrf.mxu0 }
 0x154   : > { %v559_v32 = vsel %vm462_vm2, %v448_v30, 0  ;;  %v446_v33 = vpack.c.bf16 %v336_v31, %v336_v31 }
 0x155   : > { %v5853_v35 = vpop.f32.mrf.mxu1  ;;  %5883 = vmatpush3.bf16.xpose.msra.mxu0 %v559_v32  ;;  %v407_v58 = vpop.f32.mrf.mxu0 }
 0x156   : > { %v467_v36 = vsel %vm462_vm2, %v446_v33, 0  ;;  %5894 = vmatprep.subr.bf16.mxu0 %v6649_v24  ;;  %v449_v50 = vpack.c.bf16 %v5853_v35, %v5853_v35  ;;  %v454_v59 = vpack.c.bf16 %v407_v58, %v407_v58 }
 0x157   : > { %v339_v37 = vpop.f32.mrf.mxu1  ;;  %5871 = vmatpush3.bf16.xpose.msra.mxu1 %v467_v36  ;;  %v6830_v7 = vpop.f32.mrf.mxu0 }
 0x158   : > { %5876 = vmatprep.subr.bf16.mxu1 %v6649_v24  ;;  %v447_v41 = vpack.c.bf16 %v339_v37, %v339_v37  ;;  %v605_v56 = vsel %vm462_vm2, %v449_v50, 0  ;;  %v932_v63 = vsel %vm930_vm3, %v454_v59, 0 }
 0x159   : > { %v5856_v40 = vpop.f32.mrf.mxu1  ;;  %v410_v9 = vpop.f32.mrf.mxu0 }
 0x15a   : > { %v513_v47 = vsel %vm462_vm2, %v447_v41, 0  ;;  %v452_v48 = vpack.c.bf16 %v5856_v40, %v5856_v40  ;;  %v455_v10 = vpack.c.bf16 %v410_v9, %v410_v9 }
 0x15b   : > { %v352_v42 = vpop.f32.mrf.mxu1  ;;  %v6834_v15 = vpop.f32.mrf.mxu0 }
 0x15c   : > { %v450_v44 = vpack.c.bf16 %v352_v42, %v352_v42  ;;  %5885 = vmatmul.mubr.msk.bf16.vlgmr.msra.gmra.mxu0 %vm462_vm2, %v440_v38  ;;  %v743_v54 = vsel %vm462_vm2, %v452_v48, 0  ;;  %v978_v14 = vsel %vm930_vm3, %v455_v10, 0 }
 0x15d   : > { %5896 = vmatprep.mubr.msk.bf16.mxu0 %vm6650_vm1, %v6649_v24  ;;  %v5857_v51 = vpop.f32.mrf.mxu1  ;;  %v6836_v16 = vpop.f32.mrf.mxu0 }
 0x15e   : > { %v651_v46 = vsel %vm462_vm2, %v450_v44, 0  ;;  %5873 = vmatmul.mubr.msk.bf16.vlgmr.msra.gmra.mxu1 %vm462_vm2, %v438_v43  ;;  %v453_v1 = vpack.c.bf16 %v5857_v51, %v5857_v51 }
 0x15f   : > { %5877 = vmatpush3.bf16.xpose.msra.mxu1 %v513_v47  ;;  %5895 = vmatpush3.bf16.xpose.msra.mxu0 %v651_v46  ;;  %v355_v57 = vpop.f32.mrf.mxu1  ;;  %v6838_v17 = vpop.f32.mrf.mxu0 }
 0x160   : > { %5878 = vmatprep.mubr.msk.bf16.mxu1 %vm6650_vm1, %v6649_v24  ;;  %5888 = vmatprep.subr.bf16.mxu1 %v6649_v24  ;;  %v451_v60 = vpack.c.bf16 %v355_v57, %v355_v57  ;;  %v789_v4 = vsel %vm462_vm2, %v453_v1, 0 }
 0x161   : > { %5906 = vmatprep.subr.bf16.mxu0 %v6649_v24  ;;  %v6840_v18 = vpop.f32.mrf.mxu0 }
 0x162   : > { %v697_v0 = vsel %vm462_vm2, %v451_v60, 0 }
 0x166   : > { %5879 = vmatmul.mubr.msk.bf16.vlgmr.msra.gmra.mxu1 %vm462_vm2, %v439_v53  ;;  %5897 = vmatmul.mubr.msk.bf16.vlgmr.msra.gmra.mxu0 %vm462_vm2, %v442_v52 }
 0x167   : > { %5889 = vmatpush3.bf16.xpose.msra.mxu1 %v605_v56  ;;  %5907 = vmatpush3.bf16.xpose.msra.mxu0 %v743_v54 }
 0x168   : > { %5890 = vmatprep.mubr.msk.bf16.mxu1 %vm6650_vm1, %v6649_v24  ;;  %5908 = vmatprep.mubr.msk.bf16.mxu0 %vm6650_vm1, %v6649_v24 }
 0x169   : > { %5900 = vmatprep.subr.bf16.mxu1 %v6649_v24  ;;  %5918 = vmatprep.subr.bf16.mxu0 %v6649_v24 }
 0x16e   : > { %5891 = vmatmul.mubr.msk.bf16.vlgmr.msra.gmra.mxu1 %vm462_vm2, %v441_v62  ;;  %5909 = vmatmul.mubr.msk.bf16.vlgmr.msra.gmra.mxu0 %vm462_vm2, %v444_v61 }
 0x16f   : > { %5901 = vmatpush3.bf16.xpose.msra.mxu1 %v697_v0  ;;  %5902 = vmatprep.mubr.msk.bf16.mxu1 %vm6650_vm1, %v6649_v24 }
 0x170   : > { %5912 = vmatprep.subr.bf16.mxu1 %v6649_v24  ;;  %5919 = vmatpush3.bf16.msra.mxu0 %v932_v63 }
 0x171   : > { %5920 = vmatprep.mubr.msk.bf16.mxu0 %vm6650_vm1, %v6649_v24  ;;  %5930 = vmatprep.subr.bf16.mxu0 %v6649_v24 }
 0x176   : > { %5903 = vmatmul.mubr.msk.bf16.vlgmr.msra.gmra.mxu1 %vm462_vm2, %v443_v2 }
 0x177   : > { %5913 = vmatpush3.bf16.xpose.msra.mxu1 %v789_v4  ;;  %5914 = vmatprep.mubr.msk.bf16.mxu1 %vm6650_vm1, %v6649_v24 }
 0x178   : > { %5924 = vmatprep.subr.bf16.mxu1 %v6649_v24 }
 0x17e   : > { %5915 = vmatmul.mubr.msk.bf16.vlgmr.msra.gmra.mxu1 %vm462_vm2, %v445_v6 }
 0x17f   : > { %5926 = vmatprep.mubr.msk.bf16.mxu1 %vm6650_vm1, %v6649_v24  ;;  %5925 = vmatpush3.bf16.msra.mxu1 %v978_v14 }
 0x180   : > { %5936 = vmatprep.subr.bf16.mxu1 %v6649_v24 }
 0x21c   : > { %v6842_v19 = vpop.f32.mrf.mxu0 }
 0x21d   : > { %v837_v47 = vsel %vm462_vm2, %v6842_v19, -inf }
 0x21e   : > { %v503_v22 = vpop.f32.mrf.mxu1  ;;  %v5886_v23 = vpop.f32.mrf.mxu0 }
 0x21f   : > { %v831_v25 = vsel %vm462_vm2, %v503_v22, -inf }
 0x220   : > { %832 = vmax.xlane.f32.xlu1 %v831_v25  ;;  %v5874_v26 = vpop.f32.mrf.mxu1  ;;  %v598_v27 = vpop.f32.mrf.mxu0 }
 0x222   : > { %v506_v28 = vpop.f32.mrf.mxu1  ;;  %v5887_v29 = vpop.f32.mrf.mxu0 }
 0x224   : > { %v5875_v30 = vpop.f32.mrf.mxu1 }
 0x226   : > { %v549_v31 = vpop.f32.mrf.mxu1  ;;  %v687_v32 = vpop.f32.mrf.mxu0 }
 0x227   : > { %v834_v33 = vsel %vm462_vm2, %v549_v31, -inf  ;;  %v843_v52 = vsel %vm462_vm2, %v687_v32, -inf }
 0x228   : > { %835 = vmax.xlane.f32.xlu0 %v834_v33  ;;  %v5880_v34 = vpop.f32.mrf.mxu1  ;;  %v5898_v35 = vpop.f32.mrf.mxu0 }
 0x22a   : > { %v552_v36 = vpop.f32.mrf.mxu1  ;;  %v690_v37 = vpop.f32.mrf.mxu0 }
 0x22c   : > { %v5881_v38 = vpop.f32.mrf.mxu1  ;;  %v5899_v39 = vpop.f32.mrf.mxu0 }
 0x22e   : > { %v641_v40 = vpop.f32.mrf.mxu1  ;;  %v779_v41 = vpop.f32.mrf.mxu0 }
 0x22f   : > { %v840_v42 = vsel %vm462_vm2, %v641_v40, -inf  ;;  %v849_v56 = vsel %vm462_vm2, %v779_v41, -inf }
 0x230   : > { %841 = vmax.xlane.f32.xlu0 %v840_v42  ;;  %v5892_v43 = vpop.f32.mrf.mxu1  ;;  %v5910_v44 = vpop.f32.mrf.mxu0 }
 0x232   : > { %v644_v45 = vpop.f32.mrf.mxu1  ;;  %v782_v46 = vpop.f32.mrf.mxu0 }
 0x234   : > { %v5893_v48 = vpop.f32.mrf.mxu1  ;;  %838 = vmax.xlane.f32.xlu0 %v837_v47  ;;  %v5911_v49 = vpop.f32.mrf.mxu0 }
 0x236   : > { %v733_v50 = vpop.f32.mrf.mxu1 }
 0x237   : > { %v846_v51 = vsel %vm462_vm2, %v733_v50, -inf }
 0x238   : > { %847 = vmax.xlane.f32.xlu1 %v846_v51  ;;  %v5904_v53 = vpop.f32.mrf.mxu1  ;;  %844 = vmax.xlane.f32.xlu0 %v843_v52 }
 0x23a   : > { %v736_v54 = vpop.f32.mrf.mxu1 }
 0x23c   : > { %v5905_v57 = vpop.f32.mrf.mxu1  ;;  %850 = vmax.xlane.f32.xlu0 %v849_v56 }
 0x23d   : > { %v456_v57 = vpack.c.bf16 %v6795_v55, %v6795_v55  ;;  %v457_v55 = vpack.c.bf16 %v6830_v7, %v6830_v7  ;;  %v459_v7 = vpack.c.bf16 %v6840_v18, %v6840_v18 }
 0x23e   : > { %v825_v58 = vpop.f32.mrf.mxu1 }
 0x23f   : > { %v852_v59 = vsel %vm462_vm2, %v825_v58, -inf }
 0x240   : > { %853 = vmax.xlane.f32.xlu1 %v852_v59  ;;  %v5916_v60 = vpop.f32.mrf.mxu1 }
 0x242   : > { %v828_v61 = vpop.f32.mrf.mxu1 }
 0x243   : > { %v1024_v61 = vsel %vm930_vm3, %v456_v57, 0 }
 0x244   : > { %v5917_v62 = vpop.f32.mrf.mxu1 }
 0x2a9   : > { %v833_v63 = vpop.xlane.xlu1 %832 }
 0x2aa   : > { %v855_v0 = vsub.f32 %v503_v22, %v833_v63 }
 0x2ac   : > { %v863_v1 = vmul.f32 1.442695, %v855_v0 }
 0x2ae   : > { %6467 = vpow2.f32 %v863_v1 }
 0x2b1   : > { %v836_v2 = vpop.xlane.xlu0 %835 }
 0x2b2   : > { %v856_v4 = vsub.f32 %v549_v31, %v836_v2 }
 0x2b4   : > { %v865_v6 = vmul.f32 1.442695, %v856_v4 }
 0x2b6   : > { %6469 = vpow2.f32 %v865_v6  ;;  %v1070_v6 = vsel %vm930_vm3, %v457_v55, 0 }
 0x2b9   : > { %v842_v9 = vpop.xlane.xlu0 %841 }
 0x2ba   : > { %v858_v10 = vsub.f32 %v641_v40, %v842_v9 }
 0x2bb   : > { %v6468_v14 = vpop.eup %6467 }
 0x2bc   : > { %v869_v23 = vmul.f32 1.442695, %v858_v10  ;;  %v879_v25 = vsel %vm462_vm2, %v6468_v14, 0.0 }
 0x2bd   : > { %v839_v26 = vpop.xlane.xlu0 %838  ;;  %880 = vadd.xlane.f32.xlu0 %v879_v25 }
 0x2be   : > { %6471 = vpow2.f32 %v869_v23  ;;  %v857_v27 = vsub.f32 %v6842_v19, %v839_v26 }
 0x2c0   : > { %v867_v28 = vmul.f32 1.442695, %v857_v27  ;;  %v458_v27 = vpack.c.bf16 %v6836_v16, %v6836_v16  ;;  %v461_v16 = vpack.c.bf16 %v6838_v17, %v6838_v17 }
 0x2c1   : > { %v848_v29 = vpop.xlane.xlu1 %847  ;;  %v845_v22 = vpop.xlane.xlu0 %844 }
 0x2c2   : > { %6473 = vpow2.f32 %v867_v28  ;;  %v860_v30 = vsub.f32 %v733_v50, %v848_v29  ;;  %v859_v33 = vsub.f32 %v687_v32, %v845_v22  ;;  %v1162_v28 = vsel %vm930_vm3, %v459_v7, 0 }
 0x2c3   : > { %v6470_v31 = vpop.eup %6469 }
 0x2c4   : > { %v873_v34 = vmul.f32 1.442695, %v860_v30  ;;  %v871_v35 = vmul.f32 1.442695, %v859_v33  ;;  %v882_v36 = vsel %vm462_vm2, %v6470_v31, 0.0  ;;  %v1116_v33 = vsel %vm930_vm3, %v458_v27, 0 }
 0x2c5   : > { %883 = vadd.xlane.f32.xlu1 %v882_v36  ;;  %v851_v37 = vpop.xlane.xlu0 %850 }
 0x2c6   : > { %6475 = vpow2.f32 %v873_v34  ;;  %v861_v38 = vsub.f32 %v779_v41, %v851_v37  ;;  %v460_v37 = vpack.c.bf16 %v6834_v15, %v6834_v15 }
 0x2c7   : > { %6477 = vpow2.f32 %v871_v35 }
 0x2c8   : > { %v875_v39 = vmul.f32 1.442695, %v861_v38  ;;  %v1254_v38 = vsel %vm930_vm3, %v461_v16, 0 }
 0x2c9   : > { %v854_v40 = vpop.xlane.xlu1 %853 }
 0x2ca   : > { %6479 = vpow2.f32 %v875_v39  ;;  %v862_v19 = vsub.f32 %v825_v58, %v854_v40 }
 0x2cb   : > { %v6472_v42 = vpop.eup %6471 }
 0x2cc   : > { %v877_v43 = vmul.f32 1.442695, %v862_v19  ;;  %v888_v44 = vsel %vm462_vm2, %v6472_v42, 0.0 }
 0x2cd   : > { %889 = vadd.xlane.f32.xlu1 %v888_v44 }
 0x2ce   : > { %6481 = vpow2.f32 %v877_v43 }
 0x2cf   : > { %v6857_v32 = vpop.eup %6473 }
 0x2d0   : > { %v885_v45 = vsel %vm462_vm2, %v6857_v32, 0.0 }
 0x2d1   : > { %886 = vadd.xlane.f32.xlu0 %v885_v45 }
 0x2d3   : > { %v6861_v46 = vpop.eup %6475 }
 0x2d4   : > { %v6863_v41 = vpop.eup %6477  ;;  %v894_v47 = vsel %vm462_vm2, %v6861_v46, 0.0 }
 0x2d5   : > { %895 = vadd.xlane.f32.xlu1 %v894_v47  ;;  %v891_v48 = vsel %vm462_vm2, %v6863_v41, 0.0 }
 0x2d6   : > { %892 = vadd.xlane.f32.xlu0 %v891_v48 }
 0x2d7   : > { %v6869_v49 = vpop.eup %6479 }
 0x2d8   : > { %v897_v50 = vsel %vm462_vm2, %v6869_v49, 0.0 }
 0x2da   : > { %898 = vadd.xlane.f32.xlu0 %v897_v50 }
 0x2db   : > { %v6873_v51 = vpop.eup %6481 }
 0x2dc   : > { %v900_v52 = vsel %vm462_vm2, %v6873_v51, 0.0 }
 0x2dd   : > { %901 = vadd.xlane.f32.xlu1 %v900_v52 }
 0x2ee   : > { %1373 = vrot.lane.b32.xlu1 %v6728_v12, %s6651_s29 }
 0x2f0   : > { %1371 = vrot.lane.b32.xlu0 %v6732_v13, %s6651_s29 }
 0x2f2   : > { %1302 = vrot.lane.b32.xlu1 %v6697_v3, %s6652_s30 }
 0x2f4   : > { %1444 = vrot.lane.b32.xlu0 %v6728_v12, %s6653_s4 }
 0x2f6   : > { %1300 = vrot.lane.b32.xlu1 %v6703_v5, %s6652_s30 }
 0x2fa   : > { %1442 = vrot.lane.b32.xlu1 %v6732_v13, %s6653_s4 }
 0x346   : > { %v881_v53 = vpop.xlane.xlu0 %880 }
 0x347   : > { %6483 = vrcp.f32 %v881_v53 }
 0x34e   : > { %v884_v54 = vpop.xlane.xlu1 %883 }
 0x34f   : > { %6485 = vrcp.f32 %v884_v54 }
 0x354   : > { %v6484_v56 = vpop.eup %6483 }
 0x355   : > { %v911_v58 = vmul.f32 %v6484_v56, %v6468_v14 }
 0x356   : > { %v890_v59 = vpop.xlane.xlu1 %889 }
 0x357   : > { %6487 = vrcp.f32 %v890_v59  ;;  %v919_v60 = vpack.c.bf16 %v911_v58, %v911_v58 }
 0x359   : > { %5921 = vmatmul.mubr.msk.bf16.vlgmr.msra.gmra.mxu0 %vm462_vm2, %v919_v60 }
 0x35a   : > { %5931 = vmatpush3.bf16.msra.mxu0 %v1024_v61  ;;  %v887_v62 = vpop.xlane.xlu0 %886  ;;  %5932 = vmatprep.mubr.msk.bf16.mxu0 %vm6650_vm1, %v6649_v24 }
 0x35b   : > { %6489 = vrcp.f32 %v887_v62  ;;  %5942 = vmatprep.subr.bf16.mxu0 %v6649_v24 }
 0x35c   : > { %v6486_v63 = vpop.eup %6485 }
 0x35d   : > { %v912_v0 = vmul.f32 %v6486_v63, %v6470_v31 }
 0x35e   : > { %v896_v1 = vpop.xlane.xlu1 %895 }
 0x35f   : > { %6491 = vrcp.f32 %v896_v1  ;;  %v893_v2 = vpop.xlane.xlu0 %892  ;;  %v920_v4 = vpack.c.bf16 %v912_v0, %v912_v0 }
 0x360   : > { %6493 = vrcp.f32 %v893_v2 }
 0x361   : > { %5927 = vmatmul.mubr.msk.bf16.vlgmr.msra.gmra.mxu1 %vm462_vm2, %v920_v4 }
 0x362   : > { %5937 = vmatpush3.bf16.msra.mxu1 %v1070_v6  ;;  %5938 = vmatprep.mubr.msk.bf16.mxu1 %vm6650_vm1, %v6649_v24 }
 0x363   : > { %v899_v9 = vpop.xlane.xlu0 %898  ;;  %5948 = vmatprep.subr.bf16.mxu1 %v6649_v24 }
 0x364   : > { %v6488_v10 = vpop.eup %6487  ;;  %6495 = vrcp.f32 %v899_v9 }
 0x365   : > { %v914_v14 = vmul.f32 %v6488_v10, %v6472_v42  ;;  %v1208_v42 = vsel %vm930_vm3, %v460_v37, 0 }
 0x366   : > { %v902_v23 = vpop.xlane.xlu1 %901 }
 0x367   : > { %6497 = vrcp.f32 %v902_v23  ;;  %v922_v25 = vpack.c.bf16 %v914_v14, %v914_v14 }
 0x368   : > { %v6490_v26 = vpop.eup %6489 }
 0x369   : > { %5939 = vmatmul.mubr.msk.bf16.vlgmr.msra.gmra.mxu1 %vm462_vm2, %v922_v25  ;;  %v913_v29 = vmul.f32 %v6490_v26, %v6857_v32  ;;  %v1372_v32 = vpop.permute.xlu0 %1371 }
 0x36a   : > { %5949 = vmatpush3.bf16.msra.mxu1 %v1162_v28  ;;  %5950 = vmatprep.mubr.msk.bf16.mxu1 %vm6650_vm1, %v6649_v24  ;;  %v1374_v34 = vpop.permute.xlu1 %1373 }
 0x36b   : > { %v921_v18 = vpack.c.bf16 %v913_v29, %v913_v29  ;;  %5960 = vmatprep.subr.bf16.mxu1 %v6649_v24 }
 0x36c   : > { %v6492_v22 = vpop.eup %6491 }
 0x36d   : > { %v6494_v30 = vpop.eup %6493  ;;  %5933 = vmatmul.mubr.msk.bf16.vlgmr.msra.gmra.mxu0 %vm462_vm2, %v921_v18  ;;  %v916_v31 = vmul.f32 %v6492_v22, %v6861_v46 }
 0x36e   : > { %5943 = vmatpush3.bf16.msra.mxu0 %v1116_v33  ;;  %5944 = vmatprep.mubr.msk.bf16.mxu0 %vm6650_vm1, %v6649_v24  ;;  %v915_v36 = vmul.f32 %v6494_v30, %v6863_v41  ;;  %v1303_v19 = vpop.permute.xlu1 %1302  ;;  %v1445_v41 = vpop.permute.xlu0 %1444 }
 0x36f   : > { %v924_v35 = vpack.c.bf16 %v916_v31, %v916_v31  ;;  %5954 = vmatprep.subr.bf16.mxu0 %v6649_v24 }
 0x370   : > { %v923_v39 = vpack.c.bf16 %v915_v36, %v915_v36 }
 0x371   : > { %5951 = vmatmul.mubr.msk.bf16.vlgmr.msra.gmra.mxu1 %vm462_vm2, %v924_v35  ;;  %v6496_v17 = vpop.eup %6495 }
 0x372   : > { %5961 = vmatpush3.bf16.msra.mxu1 %v1254_v38  ;;  %5962 = vmatprep.mubr.msk.bf16.mxu1 %vm6650_vm1, %v6649_v24  ;;  %v917_v44 = vmul.f32 %v6496_v17, %v6869_v49  ;;  %v1301_v46 = vpop.permute.xlu1 %1300 }
 0x373   : > { %5978 = vmatprep.subr.bf16.mxu1 %v1374_v34 }
 0x374   : > { %v6498_v40 = vpop.eup %6497  ;;  %v925_v45 = vpack.c.bf16 %v917_v44, %v917_v44 }
 0x375   : > { %5945 = vmatmul.mubr.msk.bf16.vlgmr.msra.gmra.mxu0 %vm462_vm2, %v923_v39  ;;  %v918_v43 = vmul.f32 %v6498_v40, %v6873_v51 }
 0x376   : > { %5955 = vmatpush3.bf16.msra.mxu0 %v1208_v42  ;;  %5956 = vmatprep.mubr.msk.bf16.mxu0 %vm6650_vm1, %v6649_v24  ;;  %v1443_v47 = vpop.permute.xlu1 %1442 }
 0x377   : > { %v926_v15 = vpack.c.bf16 %v918_v43, %v918_v43  ;;  %5966 = vmatprep.subr.bf16.mxu0 %v1303_v19 }
 0x379   : > { %5963 = vmatmul.mubr.msk.bf16.vlgmr.msra.gmra.mxu1 %vm462_vm2, %v926_v15 }
 0x37a   : > { %5979 = vmatpush3.bf16.msra.mxu1 %v1374_v34  ;;  %5982 = vmatprep.mubr.msk.bf16.mxu1 %vm216_vm0, %v6722_v11 }
 0x37b   : > { %5980 = vmatprep.subr.bf16.mxu1 %v1372_v32 }
 0x37d   : > { %5957 = vmatmul.mubr.msk.bf16.vlgmr.msra.gmra.mxu0 %vm462_vm2, %v925_v45 }
 0x37e   : > { %5981 = vmatpush3.bf16.msra.mxu1 %v1372_v32  ;;  %5967 = vmatpush3.bf16.msra.mxu0 %v1303_v19 }
 0x37f   : > { %5968 = vmatprep.subr.bf16.mxu0 %v1301_v46  ;;  %5970 = vmatprep.mubr.msk.bf16.mxu0 %vm216_vm0, %v6722_v11 }
 0x380   : > { %6002 = vmatprep.subr.bf16.mxu1 %v6649_v24 }
 0x381   : > { %5983 = vmatmul.mubr.msk.bf16.vlgmr.msra.gmra.mxu1 %vm216_vm0, %v6743_v21 }
 0x382   : > { %5969 = vmatpush3.bf16.msra.mxu0 %v1301_v46  ;;  %5986 = vmatprep.mubr.msk.bf16.mxu1 %vm216_vm0, %v6718_v8 }
 0x383   : > { %5990 = vmatprep.subr.bf16.mxu0 %v1445_v41 }
 0x385   : > { %5971 = vmatmul.mubr.msk.bf16.vlgmr.msra.gmra.mxu0 %vm216_vm0, %v6743_v21 }
 0x386   : > { %5974 = vmatprep.mubr.msk.bf16.mxu0 %vm216_vm0, %v6718_v8  ;;  %5991 = vmatpush3.bf16.msra.mxu0 %v1445_v41 }
 0x387   : > { %5992 = vmatprep.subr.bf16.mxu0 %v1443_v47 }
 0x389   : > { %5987 = vmatmul.mubr.msk.bf16.gmra.mxu1 %vm216_vm0, %v6740_v20 }
 0x38a   : > { %6004 = vmatprep.mubr.msk.bf16.mxu1 %vm6650_vm1, %v6649_v24  ;;  %5993 = vmatpush3.bf16.msra.mxu0 %v1443_v47 }
 0x38b   : > { %6014 = vmatprep.subr.bf16.mxu0 %v6649_v24 }
 0x38d   : > { %5975 = vmatmul.mubr.msk.bf16.gmra.mxu0 %vm216_vm0, %v6740_v20 }
 0x38e   : > { %5994 = vmatprep.mubr.msk.bf16.mxu0 %vm216_vm0, %v6722_v11 }
 0x395   : > { %5995 = vmatmul.mubr.msk.bf16.vlgmr.msra.gmra.mxu0 %vm216_vm0, %v6743_v21 }
 0x396   : > { %5998 = vmatprep.mubr.msk.bf16.mxu0 %vm216_vm0, %v6718_v8 }
 0x39d   : > { %5999 = vmatmul.mubr.msk.bf16.gmra.mxu0 %vm216_vm0, %v6740_v20 }
 0x39e   : > { %6016 = vmatprep.mubr.msk.bf16.mxu0 %vm6650_vm1, %v6649_v24 }
 0x419   : > { %v6960_v48 = vpop.f32.mrf.mxu0 }
 0x41b   : > { %v5922_v49 = vpop.f32.mrf.mxu0 }
 0x41d   : > { %v971_v50 = vpop.f32.mrf.mxu0 }
 0x41f   : > { %v5923_v51 = vpop.f32.mrf.mxu0 }
 0x421   : > { %v6962_v52 = vpop.f32.mrf.mxu1 }
 0x422   : > { %v1296_v53 = vpack.c.bf16 %v6962_v52, %v6960_v48 }
 0x423   : > { %v5928_v54 = vpop.f32.mrf.mxu1 }
 0x425   : > { %v1017_v56 = vpop.f32.mrf.mxu1 }
 0x427   : > { %v5929_v57 = vpop.f32.mrf.mxu1 }
 0x429   : > { %v6966_v58 = vpop.f32.mrf.mxu1 }
 0x42b   : > { %v5940_v59 = vpop.f32.mrf.mxu1 }
 0x42d   : > { %v6968_v60 = vpop.f32.mrf.mxu0  ;;  %v1109_v61 = vpop.f32.mrf.mxu1 }
 0x42e   : > { %v1297_v62 = vpack.c.bf16 %v6966_v58, %v6968_v60 }
 0x42f   : > { %v5934_v63 = vpop.f32.mrf.mxu0  ;;  %v5941_v55 = vpop.f32.mrf.mxu1 }
 0x431   : > { %v1063_v0 = vpop.f32.mrf.mxu0  ;;  %v6972_v1 = vpop.f32.mrf.mxu1 }
 0x433   : > { %v5935_v2 = vpop.f32.mrf.mxu0  ;;  %v5952_v4 = vpop.f32.mrf.mxu1 }
 0x435   : > { %v6974_v6 = vpop.f32.mrf.mxu0  ;;  %v1201_v9 = vpop.f32.mrf.mxu1 }
 0x436   : > { %v1298_v10 = vpack.c.bf16 %v6972_v1, %v6974_v6 }
 0x437   : > { %v5946_v7 = vpop.f32.mrf.mxu0  ;;  %v5953_v14 = vpop.f32.mrf.mxu1 }
 0x439   : > { %v1155_v23 = vpop.f32.mrf.mxu0  ;;  %v6978_v25 = vpop.f32.mrf.mxu1 }
 0x43b   : > { %v5947_v26 = vpop.f32.mrf.mxu0  ;;  %v5964_v27 = vpop.f32.mrf.mxu1 }
 0x43d   : > { %v6980_v28 = vpop.f32.mrf.mxu0  ;;  %v1293_v29 = vpop.f32.mrf.mxu1 }
 0x43e   : > { %v1299_v18 = vpack.c.bf16 %v6978_v25, %v6980_v28 }
 0x43f   : > { %v5958_v22 = vpop.f32.mrf.mxu0  ;;  %v5965_v30 = vpop.f32.mrf.mxu1 }
 0x441   : > { %v1247_v33 = vpop.f32.mrf.mxu0  ;;  %v5984_v16 = vpop.f32.mrf.mxu1 }
 0x442   : > { %v1523_v31 = vpack.c.bf16 %v5984_v16, %v5984_v16 }
 0x443   : > { %v5959_v34 = vpop.f32.mrf.mxu0  ;;  %v1411_v35 = vpop.f32.mrf.mxu1 }
 0x444   : > { %v1633_v36 = vsel %vm462_vm2, %v1523_v31, 0  ;;  %v1521_v37 = vpack.c.bf16 %v1411_v35, %v1411_v35 }
 0x445   : > { %v5972_v38 = vpop.f32.mrf.mxu0  ;;  %v5985_v17 = vpop.f32.mrf.mxu1  ;;  %6015 = vmatpush3.bf16.xpose.msra.mxu0 %v1633_v36 }
 0x446   : > { %v1541_v39 = vsel %vm462_vm2, %v1521_v37, 0  ;;  %6026 = vmatprep.subr.bf16.mxu0 %v6649_v24  ;;  %v1515_v42 = vpack.c.bf16 %v5972_v38, %v5972_v38  ;;  %v1524_v56 = vpack.c.bf16 %v5985_v17, %v5985_v17 }
 0x447   : > { %v1340_v40 = vpop.f32.mrf.mxu0  ;;  %v1414_v19 = vpop.f32.mrf.mxu1  ;;  %6003 = vmatpush3.bf16.xpose.msra.mxu1 %v1541_v39 }
 0x448   : > { %6008 = vmatprep.subr.bf16.mxu1 %v6649_v24  ;;  %v1522_v44 = vpack.c.bf16 %v1414_v19, %v1414_v19  ;;  %v1513_v46 = vpack.c.bf16 %v1340_v40, %v1340_v40  ;;  %v1679_v55 = vsel %vm462_vm2, %v1524_v56, 0 }
 0x449   : > { %v5973_v43 = vpop.f32.mrf.mxu0  ;;  %v5988_v15 = vpop.f32.mrf.mxu1 }
 0x44a   : > { %v1587_v50 = vsel %vm462_vm2, %v1522_v44, 0  ;;  %v1527_v54 = vpack.c.bf16 %v5988_v15, %v5988_v15  ;;  %v1516_v9 = vpack.c.bf16 %v5973_v43, %v5973_v43 }
 0x44b   : > { %v1343_v32 = vpop.f32.mrf.mxu0  ;;  %v1427_v45 = vpop.f32.mrf.mxu1 }
 0x44c   : > { %v1525_v41 = vpack.c.bf16 %v1427_v45, %v1427_v45  ;;  %6017 = vmatmul.mubr.msk.bf16.vlgmr.msra.gmra.mxu0 %vm462_vm2, %v1515_v42  ;;  %v1817_v61 = vsel %vm462_vm2, %v1527_v54, 0  ;;  %v1514_v63 = vpack.c.bf16 %v1343_v32, %v1343_v32 }
 0x44d   : > { %v5976_v47 = vpop.f32.mrf.mxu0  ;;  %6028 = vmatprep.mubr.msk.bf16.mxu0 %vm6650_vm1, %v6649_v24  ;;  %v5989_v59 = vpop.f32.mrf.mxu1 }
 0x44e   : > { %v1725_v49 = vsel %vm462_vm2, %v1525_v41, 0  ;;  %6005 = vmatmul.mubr.msk.bf16.vlgmr.msra.gmra.mxu1 %vm462_vm2, %v1513_v46  ;;  %v1519_v2 = vpack.c.bf16 %v5976_v47, %v5976_v47  ;;  %v1528_v26 = vpack.c.bf16 %v5989_v59, %v5989_v59 }
 0x44f   : > { %6009 = vmatpush3.bf16.xpose.msra.mxu1 %v1587_v50  ;;  %6027 = vmatpush3.bf16.xpose.msra.mxu0 %v1725_v49  ;;  %v1356_v51 = vpop.f32.mrf.mxu0  ;;  %v1430_v0 = vpop.f32.mrf.mxu1 }
 0x450   : > { %6010 = vmatprep.mubr.msk.bf16.mxu1 %vm6650_vm1, %v6649_v24  ;;  %6020 = vmatprep.subr.bf16.mxu1 %v6649_v24  ;;  %v1517_v57 = vpack.c.bf16 %v1356_v51, %v1356_v51  ;;  %v1526_v4 = vpack.c.bf16 %v1430_v0, %v1430_v0  ;;  %v1863_v29 = vsel %vm462_vm2, %v1528_v26, 0 }
 0x451   : > { %6038 = vmatprep.subr.bf16.mxu0 %v6649_v24  ;;  %v5977_v7 = vpop.f32.mrf.mxu0 }
 0x452   : > { %v1771_v14 = vsel %vm462_vm2, %v1526_v4, 0  ;;  %v1520_v22 = vpack.c.bf16 %v5977_v7, %v5977_v7 }
 0x453   : > { %v1359_v23 = vpop.f32.mrf.mxu0 }
 0x454   : > { %v1518_v27 = vpack.c.bf16 %v1359_v23, %v1359_v23 }
 0x455   : > { %v7024_v30 = vpop.f32.mrf.mxu0 }
 0x456   : > { %6011 = vmatmul.mubr.msk.bf16.vlgmr.msra.gmra.mxu1 %vm462_vm2, %v1514_v63  ;;  %6029 = vmatmul.mubr.msk.bf16.vlgmr.msra.gmra.mxu0 %vm462_vm2, %v1517_v57 }
 0x457   : > { %6021 = vmatpush3.bf16.xpose.msra.mxu1 %v1679_v55  ;;  %6039 = vmatpush3.bf16.xpose.msra.mxu0 %v1817_v61  ;;  %v1482_v33 = vpop.f32.mrf.mxu0 }
 0x458   : > { %6022 = vmatprep.mubr.msk.bf16.mxu1 %vm6650_vm1, %v6649_v24  ;;  %6040 = vmatprep.mubr.msk.bf16.mxu0 %vm6650_vm1, %v6649_v24  ;;  %v1529_v16 = vpack.c.bf16 %v1482_v33, %v1482_v33 }
 0x459   : > { %6032 = vmatprep.subr.bf16.mxu1 %v6649_v24  ;;  %6050 = vmatprep.subr.bf16.mxu0 %v6649_v24  ;;  %v7028_v34 = vpop.f32.mrf.mxu0 }
 0x45a   : > { %v2005_v31 = vsel %vm930_vm3, %v1529_v16, 0 }
 0x45b   : > { %v1485_v35 = vpop.f32.mrf.mxu0 }
 0x45c   : > { %v1530_v36 = vpack.c.bf16 %v1485_v35, %v1485_v35 }
 0x45d   : > { %v7032_v38 = vpop.f32.mrf.mxu0 }
 0x45e   : > { %6023 = vmatmul.mubr.msk.bf16.vlgmr.msra.gmra.mxu1 %vm462_vm2, %v1516_v9  ;;  %6041 = vmatmul.mubr.msk.bf16.vlgmr.msra.gmra.mxu0 %vm462_vm2, %v1519_v2  ;;  %v2051_v37 = vsel %vm930_vm3, %v1530_v36, 0 }
 0x45f   : > { %6033 = vmatpush3.bf16.xpose.msra.mxu1 %v1771_v14  ;;  %6034 = vmatprep.mubr.msk.bf16.mxu1 %vm6650_vm1, %v6649_v24  ;;  %v7034_v17 = vpop.f32.mrf.mxu0 }
 0x460   : > { %6044 = vmatprep.subr.bf16.mxu1 %v6649_v24  ;;  %6052 = vmatprep.mubr.msk.bf16.mxu0 %vm6650_vm1, %v6649_v24 }
 0x461   : > { %6051 = vmatpush3.bf16.msra.mxu0 %v2005_v31  ;;  %v7036_v39 = vpop.f32.mrf.mxu0 }
 0x462   : > { %6062 = vmatprep.subr.bf16.mxu0 %v6649_v24 }
 0x463   : > { %v7038_v40 = vpop.f32.mrf.mxu0 }
 0x466   : > { %6035 = vmatmul.mubr.msk.bf16.vlgmr.msra.gmra.mxu1 %vm462_vm2, %v1518_v27 }
 0x467   : > { %6045 = vmatpush3.bf16.xpose.msra.mxu1 %v1863_v29  ;;  %6046 = vmatprep.mubr.msk.bf16.mxu1 %vm6650_vm1, %v6649_v24 }
 0x468   : > { %6056 = vmatprep.subr.bf16.mxu1 %v6649_v24 }
 0x46e   : > { %6047 = vmatmul.mubr.msk.bf16.vlgmr.msra.gmra.mxu1 %vm462_vm2, %v1520_v22 }
 0x46f   : > { %6058 = vmatprep.mubr.msk.bf16.mxu1 %vm6650_vm1, %v6649_v24  ;;  %6057 = vmatpush3.bf16.msra.mxu1 %v2051_v37 }
 0x470   : > { %6068 = vmatprep.subr.bf16.mxu1 %v6649_v24 }
 0x50c   : > { %v1669_v19 = vpop.f32.mrf.mxu0 }
 0x50d   : > { %v1911_v41 = vsel %vm462_vm2, %v1669_v19, -inf }
 0x50e   : > { %v1577_v42 = vpop.f32.mrf.mxu1  ;;  %v6018_v43 = vpop.f32.mrf.mxu0 }
 0x50f   : > { %v1905_v15 = vsel %vm462_vm2, %v1577_v42, -inf }
 0x510   : > { %v1672_v44 = vpop.f32.mrf.mxu0  ;;  %1906 = vmax.xlane.f32.xlu0 %v1905_v15  ;;  %v6006_v32 = vpop.f32.mrf.mxu1 }
 0x512   : > { %v1580_v45 = vpop.f32.mrf.mxu1  ;;  %v6019_v46 = vpop.f32.mrf.mxu0 }
 0x514   : > { %1912 = vmax.xlane.f32.xlu0 %v1911_v41  ;;  %v6007_v47 = vpop.f32.mrf.mxu1 }
 0x516   : > { %v1623_v49 = vpop.f32.mrf.mxu1  ;;  %v1761_v50 = vpop.f32.mrf.mxu0 }
 0x517   : > { %v1908_v51 = vsel %vm462_vm2, %v1623_v49, -inf  ;;  %v1917_v57 = vsel %vm462_vm2, %v1761_v50, -inf }
 0x518   : > { %v6030_v54 = vpop.f32.mrf.mxu0  ;;  %1909 = vmax.xlane.f32.xlu1 %v1908_v51  ;;  %v6012_v56 = vpop.f32.mrf.mxu1 }
 0x51a   : > { %v1626_v59 = vpop.f32.mrf.mxu1  ;;  %v1764_v61 = vpop.f32.mrf.mxu0 }
 0x51c   : > { %v6031_v63 = vpop.f32.mrf.mxu0  ;;  %1918 = vmax.xlane.f32.xlu1 %v1917_v57  ;;  %v6013_v55 = vpop.f32.mrf.mxu1 }
 0x51e   : > { %v1715_v0 = vpop.f32.mrf.mxu1  ;;  %v1853_v2 = vpop.f32.mrf.mxu0 }
 0x51f   : > { %v1923_v4 = vsel %vm462_vm2, %v1853_v2, -inf  ;;  %v1914_v9 = vsel %vm462_vm2, %v1715_v0, -inf }
 0x520   : > { %v6042_v7 = vpop.f32.mrf.mxu0  ;;  %1924 = vmax.xlane.f32.xlu1 %v1923_v4  ;;  %1915 = vmax.xlane.f32.xlu0 %v1914_v9  ;;  %v6024_v14 = vpop.f32.mrf.mxu1 }
 0x522   : > { %v1718_v23 = vpop.f32.mrf.mxu1  ;;  %v1856_v26 = vpop.f32.mrf.mxu0 }
 0x524   : > { %v6025_v27 = vpop.f32.mrf.mxu1  ;;  %v6043_v29 = vpop.f32.mrf.mxu0 }
 0x526   : > { %v1807_v22 = vpop.f32.mrf.mxu1 }
 0x527   : > { %v1920_v33 = vsel %vm462_vm2, %v1807_v22, -inf }
 0x528   : > { %1921 = vmax.xlane.f32.xlu0 %v1920_v33  ;;  %v6036_v16 = vpop.f32.mrf.mxu1 }
 0x52a   : > { %v1810_v31 = vpop.f32.mrf.mxu1 }
 0x52c   : > { %v6037_v35 = vpop.f32.mrf.mxu1 }
 0x52e   : > { %v1899_v36 = vpop.f32.mrf.mxu1 }
 0x52f   : > { %v1926_v37 = vsel %vm462_vm2, %v1899_v36, -inf }
 0x530   : > { %1927 = vmax.xlane.f32.xlu0 %v1926_v37  ;;  %v6048_v43 = vpop.f32.mrf.mxu1 }
 0x532   : > { %v1902_v15 = vpop.f32.mrf.mxu1 }
 0x534   : > { %v6049_v44 = vpop.f32.mrf.mxu1 }
 0x599   : > { %v1907_v32 = vpop.xlane.xlu0 %1906 }
 0x59a   : > { %v1929_v45 = vsub.f32 %v1577_v42, %v1907_v32 }
 0x59c   : > { %v1937_v46 = vmul.f32 1.442695, %v1929_v45 }
 0x59d   : > { %v1913_v41 = vpop.xlane.xlu0 %1912 }
 0x59e   : > { %6499 = vpow2.f32 %v1937_v46  ;;  %v1931_v47 = vsub.f32 %v1669_v19, %v1913_v41 }
 0x5a0   : > { %v1941_v51 = vmul.f32 1.442695, %v1931_v47 }
 0x5a1   : > { %v1910_v54 = vpop.xlane.xlu1 %1909 }
 0x5a2   : > { %6501 = vpow2.f32 %v1941_v51  ;;  %v1930_v56 = vsub.f32 %v1623_v49, %v1910_v54 }
 0x5a4   : > { %v1939_v57 = vmul.f32 1.442695, %v1930_v56 }
 0x5a5   : > { %v1919_v59 = vpop.xlane.xlu1 %1918 }
 0x5a6   : > { %6503 = vpow2.f32 %v1939_v57  ;;  %v1933_v61 = vsub.f32 %v1761_v50, %v1919_v59  ;;  %v1531_v57 = vpack.c.bf16 %v7024_v30, %v7024_v30  ;;  %v1532_v30 = vpack.c.bf16 %v7028_v34, %v7028_v34 }
 0x5a8   : > { %v1945_v63 = vmul.f32 1.442695, %v1933_v61 }
 0x5a9   : > { %v1925_v55 = vpop.xlane.xlu1 %1924  ;;  %v1916_v4 = vpop.xlane.xlu0 %1915 }
 0x5aa   : > { %6505 = vpow2.f32 %v1945_v63  ;;  %v1935_v9 = vsub.f32 %v1853_v2, %v1925_v55  ;;  %v1932_v7 = vsub.f32 %v1715_v0, %v1916_v4 }
 0x5ab   : > { %v6500_v14 = vpop.eup %6499 }
 0x5ac   : > { %v1949_v42 = vmul.f32 1.442695, %v1935_v9  ;;  %v1943_v23 = vmul.f32 1.442695, %v1932_v7  ;;  %v1953_v26 = vsel %vm462_vm2, %v6500_v14, 0.0  ;;  %v2097_v9 = vsel %vm930_vm3, %v1531_v57, 0 }
 0x5ad   : > { %1954 = vadd.xlane.f32.xlu1 %v1953_v26 }
 0x5ae   : > { %6507 = vpow2.f32 %v1949_v42 }
 0x5af   : > { %v6502_v19 = vpop.eup %6501  ;;  %6509 = vpow2.f32 %v1943_v23 }
 0x5b0   : > { %v1959_v49 = vsel %vm462_vm2, %v6502_v19, 0.0 }
 0x5b1   : > { %1960 = vadd.xlane.f32.xlu1 %v1959_v49  ;;  %v1922_v27 = vpop.xlane.xlu0 %1921 }
 0x5b2   : > { %v1934_v50 = vsub.f32 %v1807_v22, %v1922_v27 }
 0x5b3   : > { %v6504_v29 = vpop.eup %6503 }
 0x5b4   : > { %v1947_v33 = vmul.f32 1.442695, %v1934_v50  ;;  %v1956_v16 = vsel %vm462_vm2, %v6504_v29, 0.0 }
 0x5b5   : > { %1957 = vadd.xlane.f32.xlu0 %v1956_v16 }
 0x5b6   : > { %6511 = vpow2.f32 %v1947_v33  ;;  %v2143_v33 = vsel %vm930_vm3, %v1532_v30, 0 }
 0x5b7   : > { %v7051_v0 = vpop.eup %6505 }
 0x5b8   : > { %v1965_v2 = vsel %vm462_vm2, %v7051_v0, 0.0 }
 0x5b9   : > { %1966 = vadd.xlane.f32.xlu1 %v1965_v2  ;;  %v1928_v31 = vpop.xlane.xlu0 %1927 }
 0x5ba   : > { %v1936_v35 = vsub.f32 %v1899_v36, %v1928_v31 }
 0x5bb   : > { %v7055_v37 = vpop.eup %6507 }
 0x5bc   : > { %v7057_v43 = vpop.eup %6509  ;;  %v1951_v15 = vmul.f32 1.442695, %v1936_v35  ;;  %v1971_v22 = vsel %vm462_vm2, %v7055_v37, 0.0 }
 0x5bd   : > { %1972 = vadd.xlane.f32.xlu1 %v1971_v22  ;;  %v1962_v44 = vsel %vm462_vm2, %v7057_v43, 0.0 }
 0x5be   : > { %6513 = vpow2.f32 %v1951_v15  ;;  %1963 = vadd.xlane.f32.xlu0 %v1962_v44 }
 0x5c3   : > { %v7063_v32 = vpop.eup %6511 }
 0x5c4   : > { %v1968_v45 = vsel %vm462_vm2, %v7063_v32, 0.0 }
 0x5c5   : > { %1969 = vadd.xlane.f32.xlu0 %v1968_v45  ;;  %v6627_v45 = vld [vmem:[%s7885_s1 + $0x8] sm:$0xff] }
 0x5c6   : > { %v2386_v48 = vsel %vm930_vm3, %v6627_v45, 0 }
 0x5cb   : > { %v7067_v36 = vpop.eup %6513 }
 0x5cc   : > { %v1974_v46 = vsel %vm462_vm2, %v7067_v36, 0.0 }
 0x5cd   : > { %1975 = vadd.xlane.f32.xlu0 %v1974_v46  ;;  %v1536_v46 = vpack.c.bf16 %v7036_v39, %v7036_v39 }
 0x5ce   : > { %2606 = vrot.lane.b32.xlu1 %v6728_v12, %s6654_s5 }
 0x5d2   : > { %2535 = vrot.lane.b32.xlu1 %v6697_v3, %s6655_s6 }
 0x5d6   : > { %2533 = vrot.lane.b32.xlu1 %v6703_v5, %s6655_s6 }
 0x5da   : > { %2675 = vrot.lane.b32.xlu1 %v6732_v13, %s6656_s11 }
 0x5e3   : > { %2604 = vrot.lane.b32.xlu0 %v6732_v13, %s6654_s5 }
 0x5e7   : > { %2677 = vrot.lane.b32.xlu0 %v6728_v12, %s6656_s11 }
 0x636   : > { %v1955_v41 = vpop.xlane.xlu1 %1954 }
 0x637   : > { %6515 = vrcp.f32 %v1955_v41 }
 0x63a   : > { %v1961_v47 = vpop.xlane.xlu1 %1960 }
 0x63b   : > { %6517 = vrcp.f32 %v1961_v47 }
 0x63e   : > { %v1958_v51 = vpop.xlane.xlu0 %1957 }
 0x63f   : > { %6519 = vrcp.f32 %v1958_v51  ;;  %v6628_v51 = vld [vmem:[%s7885_s1] sm:$0xff] }
 0x642   : > { %v1967_v54 = vpop.xlane.xlu1 %1966 }
 0x643   : > { %6521 = vrcp.f32 %v1967_v54 }
 0x644   : > { %v6516_v56 = vpop.eup %6515 }
 0x645   : > { %v1985_v59 = vmul.f32 %v6516_v56, %v6500_v14  ;;  %v1533_v14 = vpack.c.bf16 %v7034_v17, %v7034_v17  ;;  %v2466_v56 = vsel %vm930_vm3, %v6628_v51, 0 }
 0x646   : > { %v1973_v4 = vpop.xlane.xlu1 %1972 }
 0x647   : > { %v1964_v61 = vpop.xlane.xlu0 %1963  ;;  %v1993_v63 = vpack.c.bf16 %v1985_v59, %v1985_v59  ;;  %v2189_v16 = vsel %vm930_vm3, %v1533_v14, 0 }
 0x648   : > { %v6518_v55 = vpop.eup %6517  ;;  %6523 = vrcp.f32 %v1964_v61 }
 0x649   : > { %6053 = vmatmul.mubr.msk.bf16.vlgmr.msra.gmra.mxu0 %vm462_vm2, %v1993_v63  ;;  %6525 = vrcp.f32 %v1973_v4  ;;  %v1987_v7 = vmul.f32 %v6518_v55, %v6502_v19  ;;  %v1535_v19 = vpack.c.bf16 %v7032_v38, %v7032_v38 }
 0x64a   : > { %6063 = vmatpush3.bf16.msra.mxu0 %v2097_v9  ;;  %6064 = vmatprep.mubr.msk.bf16.mxu0 %vm6650_vm1, %v6649_v24  ;;  %v2607_v52 = vpop.permute.xlu1 %2606 }
 0x64b   : > { %6074 = vmatprep.subr.bf16.mxu0 %v6649_v24  ;;  %v1995_v27 = vpack.c.bf16 %v1987_v7, %v1987_v7 }
 0x64c   : > { %v6520_v42 = vpop.eup %6519 }
 0x64d   : > { %v1986_v23 = vmul.f32 %v6520_v42, %v6504_v29  ;;  %v1534_v29 = vpack.c.bf16 %v7038_v40, %v7038_v40 }
 0x64e   : > { %v1970_v26 = vpop.xlane.xlu0 %1969  ;;  %v2536_v58 = vpop.permute.xlu1 %2535 }
 0x64f   : > { %6527 = vrcp.f32 %v1970_v26  ;;  %v1994_v49 = vpack.c.bf16 %v1986_v23, %v1986_v23  ;;  %v2235_v44 = vsel %vm930_vm3, %v1534_v29, 0 }
 0x650   : > { %v6522_v50 = vpop.eup %6521 }
 0x651   : > { %6059 = vmatmul.mubr.msk.bf16.vlgmr.msra.gmra.mxu1 %vm462_vm2, %v1994_v49  ;;  %6065 = vmatmul.mubr.msk.bf16.vlgmr.msra.gmra.mxu0 %vm462_vm2, %v1995_v27  ;;  %v1989_v34 = vmul.f32 %v6522_v50, %v7051_v0  ;;  %v2281_v0 = vsel %vm930_vm3, %v1535_v19, 0 }
 0x652   : > { %6069 = vmatpush3.bf16.msra.mxu1 %v2143_v33  ;;  %6075 = vmatpush3.bf16.msra.mxu0 %v2189_v16  ;;  %v2534_v30 = vpop.permute.xlu1 %2533 }
 0x653   : > { %6070 = vmatprep.mubr.msk.bf16.mxu1 %vm6650_vm1, %v6649_v24  ;;  %6076 = vmatprep.mubr.msk.bf16.mxu0 %vm6650_vm1, %v6649_v24  ;;  %v1997_v35 = vpack.c.bf16 %v1989_v34, %v1989_v34 }
 0x654   : > { %6080 = vmatprep.subr.bf16.mxu1 %v6649_v24  ;;  %6086 = vmatprep.subr.bf16.mxu0 %v6649_v24 }
 0x655   : > { %v6524_v17 = vpop.eup %6523 }
 0x656   : > { %v1976_v2 = vpop.xlane.xlu0 %1975  ;;  %v1988_v31 = vmul.f32 %v6524_v17, %v7057_v43  ;;  %v6526_v15 = vpop.eup %6525 }
 0x657   : > { %6529 = vrcp.f32 %v1976_v2  ;;  %v1991_v38 = vmul.f32 %v6526_v15, %v7055_v37  ;;  %v2327_v37 = vsel %vm930_vm3, %v1536_v46, 0 }
 0x658   : > { %v1996_v22 = vpack.c.bf16 %v1988_v31, %v1988_v31 }
 0x659   : > { %6077 = vmatmul.mubr.msk.bf16.vlgmr.msra.gmra.mxu0 %vm462_vm2, %v1997_v35  ;;  %v1999_v47 = vpack.c.bf16 %v1991_v38, %v1991_v38 }
 0x65a   : > { %6071 = vmatmul.mubr.msk.bf16.vlgmr.msra.gmra.mxu1 %vm462_vm2, %v1996_v22  ;;  %6087 = vmatpush3.bf16.msra.mxu0 %v2281_v0 }
 0x65b   : > { %6081 = vmatpush3.bf16.msra.mxu1 %v2235_v44  ;;  %6082 = vmatprep.mubr.msk.bf16.mxu1 %vm6650_vm1, %v6649_v24 }
 0x65c   : > { %v6528_v40 = vpop.eup %6527  ;;  %6088 = vmatprep.mubr.msk.bf16.mxu0 %vm6650_vm1, %v6649_v24  ;;  %6092 = vmatprep.subr.bf16.mxu1 %v6649_v24 }
 0x65d   : > { %v1990_v43 = vmul.f32 %v6528_v40, %v7063_v32  ;;  %6434 = vmatprep.subr.msk.bf16.mxu0 %vm930_vm3, %v6627_v45 }
 0x65f   : > { %v1998_v41 = vpack.c.bf16 %v1990_v43, %v1990_v43 }
 0x661   : > { %6089 = vmatmul.mubr.msk.bf16.vlgmr.msra.gmra.mxu0 %vm462_vm2, %v1999_v47 }
 0x662   : > { %6083 = vmatmul.mubr.msk.bf16.vlgmr.msra.gmra.mxu1 %vm462_vm2, %v1998_v41  ;;  %6099 = vmatpush3.bf16.msra.mxu0 %v2386_v48 }
 0x663   : > { %6093 = vmatpush3.bf16.msra.mxu1 %v2327_v37  ;;  %6094 = vmatprep.mubr.msk.bf16.mxu1 %vm6650_vm1, %v6649_v24  ;;  %v2676_v37 = vpop.permute.xlu1 %2675 }
 0x664   : > { %v6530_v32 = vpop.eup %6529  ;;  %6435 = vmatprep.subr.msk.bf16.mxu1 %vm930_vm3, %v6628_v51  ;;  %6118 = vmatprep.subr.bf16.mxu0 %v2536_v58 }
 0x665   : > { %v1992_v39 = vmul.f32 %v6530_v32, %v7067_v36 }
 0x667   : > { %v2000_v54 = vpack.c.bf16 %v1992_v39, %v1992_v39 }
 0x66a   : > { %6095 = vmatmul.mubr.msk.bf16.vlgmr.msra.gmra.mxu1 %vm462_vm2, %v2000_v54 }
 0x66b   : > { %6110 = vmatprep.mubr.msk.bf16.mxu1 %vm462_vm2, %v1296_v53  ;;  %6109 = vmatpush3.bf16.msra.mxu1 %v2466_v56  ;;  %v2605_v53 = vpop.permute.xlu0 %2604 }
 0x66c   : > { %6130 = vmatprep.subr.bf16.mxu1 %v2607_v52 }
 0x66f   : > { %v2678_v41 = vpop.permute.xlu0 %2677 }
 0x672   : > { %6111 = vmatmul.mubr.msk.bf16.vlgmr.msra.gmra.mxu1 %vm462_vm2, %v1297_v62 }
 0x673   : > { %6114 = vmatprep.mubr.msk.bf16.mxu1 %vm462_vm2, %v1298_v10  ;;  %6131 = vmatpush3.bf16.msra.mxu1 %v2607_v52 }
 0x674   : > { %6132 = vmatprep.subr.bf16.mxu1 %v2605_v53 }
 0x677   : > { %6133 = vmatpush3.bf16.msra.mxu1 %v2605_v53 }
 0x678   : > { %6154 = vmatprep.subr.bf16.mxu1 %v6649_v24 }
 0x67a   : > { %6115 = vmatmul.mubr.msk.bf16.gmra.mxu1 %vm462_vm2, %v1299_v18 }
 0x67b   : > { %6134 = vmatprep.mubr.msk.bf16.mxu1 %vm216_vm0, %v6722_v11 }
 0x682   : > { %6135 = vmatmul.mubr.msk.bf16.vlgmr.msra.gmra.mxu1 %vm216_vm0, %v6743_v21 }
 0x683   : > { %6138 = vmatprep.mubr.msk.bf16.mxu1 %vm216_vm0, %v6718_v8 }
 0x68a   : > { %6139 = vmatmul.mubr.msk.bf16.gmra.mxu1 %vm216_vm0, %v6740_v20 }
 0x68b   : > { %6156 = vmatprep.mubr.msk.bf16.mxu1 %vm6650_vm1, %v6649_v24 }
 0x709   : > { %v2041_v60 = vpop.f32.mrf.mxu0 }
 0x70b   : > { %v6054_v62 = vpop.f32.mrf.mxu0 }
 0x70d   : > { %v2044_v1 = vpop.f32.mrf.mxu0 }
 0x70f   : > { %v6055_v6 = vpop.f32.mrf.mxu0 }
 0x711   : > { %v2087_v10 = vpop.f32.mrf.mxu1  ;;  %v2133_v25 = vpop.f32.mrf.mxu0 }
 0x712   : > { %v2369_v28 = vpack.c.bf16 %v2087_v10, %v2041_v60 }
 0x713   : > { %v6060_v18 = vpop.f32.mrf.mxu1  ;;  %v6066_v36 = vpop.f32.mrf.mxu0 }
 0x714   : > { %6100 = vmatprep.mubr.msk.bf16.mxu0 %vm462_vm2, %v2369_v28 }
 0x715   : > { %v2090_v57 = vpop.f32.mrf.mxu1  ;;  %v2136_v59 = vpop.f32.mrf.mxu0 }
 0x717   : > { %v6061_v61 = vpop.f32.mrf.mxu1  ;;  %v6067_v63 = vpop.f32.mrf.mxu0 }
 0x719   : > { %v2225_v55 = vpop.f32.mrf.mxu0 }
 0x71a   : > { %v2179_v4 = vpop.f32.mrf.mxu1 }
 0x71b   : > { %v2370_v9 = vpack.c.bf16 %v2179_v4, %v2133_v25  ;;  %v6078_v7 = vpop.f32.mrf.mxu0 }
 0x71c   : > { %v6072_v42 = vpop.f32.mrf.mxu1 }
 0x71d   : > { %6101 = vmatmul.mubr.msk.bf16.vlgmr.msra.gmra.mxu0 %vm462_vm2, %v2370_v9  ;;  %v2228_v14 = vpop.f32.mrf.mxu0 }
 0x71e   : > { %v2182_v23 = vpop.f32.mrf.mxu1  ;;  %6119 = vmatpush3.bf16.msra.mxu0 %v2536_v58 }
 0x71f   : > { %v6079_v26 = vpop.f32.mrf.mxu0  ;;  %6120 = vmatprep.subr.bf16.mxu0 %v2534_v30 }
 0x720   : > { %v6073_v49 = vpop.f32.mrf.mxu1 }
 0x721   : > { %v2317_v27 = vpop.f32.mrf.mxu0 }
 0x722   : > { %v2271_v50 = vpop.f32.mrf.mxu1  ;;  %6121 = vmatpush3.bf16.msra.mxu0 %v2534_v30 }
 0x723   : > { %v2371_v33 = vpack.c.bf16 %v2271_v50, %v2225_v55  ;;  %v6090_v16 = vpop.f32.mrf.mxu0  ;;  %6142 = vmatprep.subr.bf16.mxu0 %v2678_v41 }
 0x724   : > { %v6084_v34 = vpop.f32.mrf.mxu1 }
 0x725   : > { %6104 = vmatprep.mubr.msk.bf16.mxu0 %vm462_vm2, %v2371_v33  ;;  %v2320_v17 = vpop.f32.mrf.mxu0 }
 0x726   : > { %v2274_v19 = vpop.f32.mrf.mxu1 }
 0x727   : > { %v6091_v29 = vpop.f32.mrf.mxu0 }
 0x728   : > { %v6085_v2 = vpop.f32.mrf.mxu1 }
 0x72a   : > { %v2363_v31 = vpop.f32.mrf.mxu1 }
 0x72b   : > { %v2372_v35 = vpack.c.bf16 %v2363_v31, %v2317_v27 }
 0x72c   : > { %v6096_v15 = vpop.f32.mrf.mxu1 }
 0x72d   : > { %6105 = vmatmul.mubr.msk.bf16.gmra.mxu0 %vm462_vm2, %v2372_v35 }
 0x72e   : > { %v2366_v22 = vpop.f32.mrf.mxu1  ;;  %6122 = vmatprep.mubr.msk.bf16.mxu0 %vm216_vm0, %v6722_v11 }
 0x730   : > { %v6097_v0 = vpop.f32.mrf.mxu1 }
 0x732   : > { %v7175_v44 = vpop.f32.mrf.mxu1 }
 0x734   : > { %v7177_v38 = vpop.f32.mrf.mxu1 }
 0x735   : > { %6123 = vmatmul.mubr.msk.bf16.vlgmr.msra.gmra.mxu0 %vm216_vm0, %v6743_v21 }
 0x736   : > { %6126 = vmatprep.mubr.msk.bf16.mxu0 %vm216_vm0, %v6718_v8  ;;  %v7179_v40 = vpop.f32.mrf.mxu1  ;;  %6143 = vmatpush3.bf16.msra.mxu0 %v2678_v41 }
 0x737   : > { %6144 = vmatprep.subr.bf16.mxu0 %v2676_v37 }
 0x738   : > { %v7181_v43 = vpop.f32.mrf.mxu1 }
 0x73a   : > { %v7183_v45 = vpop.f32.mrf.mxu1  ;;  %6145 = vmatpush3.bf16.msra.mxu0 %v2676_v37 }
 0x73b   : > { %6166 = vmatprep.subr.bf16.mxu0 %v6649_v24 }
 0x73c   : > { %v7185_v46 = vpop.f32.mrf.mxu1 }
 0x73d   : > { %6127 = vmatmul.mubr.msk.bf16.gmra.mxu0 %vm216_vm0, %v6740_v20 }
 0x73e   : > { %6146 = vmatprep.mubr.msk.bf16.mxu0 %vm216_vm0, %v6722_v11  ;;  %v7187_v47 = vpop.f32.mrf.mxu1 }
 0x740   : > { %v7189_v32 = vpop.f32.mrf.mxu1 }
 0x742   : > { %v6136_v51 = vpop.f32.mrf.mxu1 }
 0x743   : > { %v2756_v39 = vpack.c.bf16 %v6136_v51, %v6136_v51 }
 0x744   : > { %v2644_v54 = vpop.f32.mrf.mxu1 }
 0x745   : > { %6147 = vmatmul.mubr.msk.bf16.vlgmr.msra.gmra.mxu0 %vm216_vm0, %v6743_v21  ;;  %v2866_v56 = vsel %vm462_vm2, %v2756_v39, 0  ;;  %v2754_v48 = vpack.c.bf16 %v2644_v54, %v2644_v54 }
 0x746   : > { %6150 = vmatprep.mubr.msk.bf16.mxu0 %vm216_vm0, %v6718_v8  ;;  %6167 = vmatpush3.bf16.xpose.msra.mxu0 %v2866_v56  ;;  %v6137_v60 = vpop.f32.mrf.mxu1 }
 0x747   : > { %v2774_v52 = vsel %vm462_vm2, %v2754_v48, 0  ;;  %6178 = vmatprep.subr.bf16.mxu0 %v6649_v24  ;;  %v2757_v49 = vpack.c.bf16 %v6137_v60, %v6137_v60 }
 0x748   : > { %6155 = vmatpush3.bf16.xpose.msra.mxu1 %v2774_v52  ;;  %v2647_v1 = vpop.f32.mrf.mxu1 }
 0x749   : > { %6160 = vmatprep.subr.bf16.mxu1 %v6649_v24  ;;  %v2755_v63 = vpack.c.bf16 %v2647_v1, %v2647_v1  ;;  %v2912_v17 = vsel %vm462_vm2, %v2757_v49, 0 }
 0x74a   : > { %v6140_v10 = vpop.f32.mrf.mxu1 }
 0x74b   : > { %v2820_v30 = vsel %vm462_vm2, %v2755_v63, 0  ;;  %v2760_v23 = vpack.c.bf16 %v6140_v10, %v6140_v10 }
 0x74c   : > { %v2660_v18 = vpop.f32.mrf.mxu1 }
 0x74d   : > { %6151 = vmatmul.mubr.msk.bf16.gmra.mxu0 %vm216_vm0, %v6740_v20  ;;  %v2758_v57 = vpack.c.bf16 %v2660_v18, %v2660_v18  ;;  %v3050_v33 = vsel %vm462_vm2, %v2760_v23, 0 }
 0x74e   : > { %6168 = vmatprep.mubr.msk.bf16.mxu0 %vm6650_vm1, %v6649_v24  ;;  %v6141_v50 = vpop.f32.mrf.mxu1 }
 0x74f   : > { %v2958_v4 = vsel %vm462_vm2, %v2758_v57, 0  ;;  %v2761_v0 = vpack.c.bf16 %v6141_v50, %v6141_v50 }
 0x750   : > { %v2663_v19 = vpop.f32.mrf.mxu1 }
 0x751   : > { %v2759_v2 = vpack.c.bf16 %v2663_v19, %v2663_v19  ;;  %v3096_v37 = vsel %vm462_vm2, %v2761_v0, 0 }
 0x753   : > { %v3004_v15 = vsel %vm462_vm2, %v2759_v2, 0 }
 0x7dd   : > { %v7204_v53 = vpop.f32.mrf.mxu0 }
 0x7df   : > { %v7206_v58 = vpop.f32.mrf.mxu0 }
 0x7e1   : > { %v7208_v62 = vpop.f32.mrf.mxu0 }
 0x7e3   : > { %v7210_v6 = vpop.f32.mrf.mxu0 }
 0x7ed   : > { %v7212_v25 = vpop.f32.mrf.mxu0 }
 0x7ef   : > { %v7214_v28 = vpop.f32.mrf.mxu0 }
 0x7f1   : > { %v7216_v36 = vpop.f32.mrf.mxu0 }
 0x7f3   : > { %v7218_v59 = vpop.f32.mrf.mxu0 }
 0x7f5   : > { %v6124_v61 = vpop.f32.mrf.mxu0 }
 0x7f6   : > { %v2748_v55 = vpack.c.bf16 %v6124_v61, %v6124_v61 }
 0x7f7   : > { %v2573_v9 = vpop.f32.mrf.mxu0 }
 0x7f8   : > { %v2746_v7 = vpack.c.bf16 %v2573_v9, %v2573_v9  ;;  %6169 = vmatmul.mubr.msk.bf16.vlgmr.msra.gmra.mxu0 %vm462_vm2, %v2748_v55 }
 0x7f9   : > { %v6125_v42 = vpop.f32.mrf.mxu0  ;;  %6179 = vmatpush3.bf16.xpose.msra.mxu0 %v2958_v4  ;;  %6180 = vmatprep.mubr.msk.bf16.mxu0 %vm6650_vm1, %v6649_v24 }
 0x7fa   : > { %6157 = vmatmul.mubr.msk.bf16.vlgmr.msra.gmra.mxu1 %vm462_vm2, %v2746_v7  ;;  %6190 = vmatprep.subr.bf16.mxu0 %v6649_v24  ;;  %v2749_v31 = vpack.c.bf16 %v6125_v42, %v6125_v42 }
 0x7fb   : > { %6161 = vmatpush3.bf16.xpose.msra.mxu1 %v2820_v30  ;;  %v2576_v14 = vpop.f32.mrf.mxu0  ;;  %6162 = vmatprep.mubr.msk.bf16.mxu1 %vm6650_vm1, %v6649_v24 }
 0x7fc   : > { %6172 = vmatprep.subr.bf16.mxu1 %v6649_v24  ;;  %v2747_v16 = vpack.c.bf16 %v2576_v14, %v2576_v14 }
 0x7fd   : > { %v6128_v26 = vpop.f32.mrf.mxu0 }
 0x7fe   : > { %v2752_v29 = vpack.c.bf16 %v6128_v26, %v6128_v26 }
 0x7ff   : > { %v2589_v27 = vpop.f32.mrf.mxu0 }
 0x800   : > { %v2750_v34 = vpack.c.bf16 %v2589_v27, %v2589_v27 }
 0x801   : > { %v6129_v35 = vpop.f32.mrf.mxu0 }
 0x802   : > { %6163 = vmatmul.mubr.msk.bf16.vlgmr.msra.gmra.mxu1 %vm462_vm2, %v2747_v16  ;;  %6181 = vmatmul.mubr.msk.bf16.vlgmr.msra.gmra.mxu0 %vm462_vm2, %v2750_v34  ;;  %v2753_v51 = vpack.c.bf16 %v6129_v35, %v6129_v35 }
 0x803   : > { %6173 = vmatpush3.bf16.xpose.msra.mxu1 %v2912_v17  ;;  %6191 = vmatpush3.bf16.xpose.msra.mxu0 %v3050_v33  ;;  %v2592_v22 = vpop.f32.mrf.mxu0 }
 0x804   : > { %6174 = vmatprep.mubr.msk.bf16.mxu1 %vm6650_vm1, %v6649_v24  ;;  %6184 = vmatprep.subr.bf16.mxu1 %v6649_v24  ;;  %v2751_v41 = vpack.c.bf16 %v2592_v22, %v2592_v22 }
 0x805   : > { %6192 = vmatprep.mubr.msk.bf16.mxu0 %vm6650_vm1, %v6649_v24  ;;  %6202 = vmatprep.subr.bf16.mxu0 %v6649_v24  ;;  %v7256_v39 = vpop.f32.mrf.mxu0 }
 0x807   : > { %v2715_v54 = vpop.f32.mrf.mxu0 }
 0x808   : > { %v2762_v56 = vpack.c.bf16 %v2715_v54, %v2715_v54 }
 0x809   : > { %v7258_v48 = vpop.f32.mrf.mxu0 }
 0x80a   : > { %6175 = vmatmul.mubr.msk.bf16.vlgmr.msra.gmra.mxu1 %vm462_vm2, %v2749_v31  ;;  %6193 = vmatmul.mubr.msk.bf16.vlgmr.msra.gmra.mxu0 %vm462_vm2, %v2752_v29  ;;  %v3238_v52 = vsel %vm930_vm3, %v2762_v56, 0 }
 0x80b   : > { %6185 = vmatpush3.bf16.xpose.msra.mxu1 %v3004_v15  ;;  %6186 = vmatprep.mubr.msk.bf16.mxu1 %vm6650_vm1, %v6649_v24  ;;  %v2718_v60 = vpop.f32.mrf.mxu0 }
 0x80c   : > { %6196 = vmatprep.subr.bf16.mxu1 %v6649_v24  ;;  %6204 = vmatprep.mubr.msk.bf16.mxu0 %vm6650_vm1, %v6649_v24  ;;  %v2763_v1 = vpack.c.bf16 %v2718_v60, %v2718_v60 }
 0x80d   : > { %6203 = vmatpush3.bf16.msra.mxu0 %v3238_v52  ;;  %v7264_v18 = vpop.f32.mrf.mxu0 }
 0x80e   : > { %6214 = vmatprep.subr.bf16.mxu0 %v6649_v24  ;;  %v3284_v10 = vsel %vm930_vm3, %v2763_v1, 0 }
 0x80f   : > { %v7266_v57 = vpop.f32.mrf.mxu0 }
 0x811   : > { %v7268_v61 = vpop.f32.mrf.mxu0 }
 0x812   : > { %6187 = vmatmul.mubr.msk.bf16.vlgmr.msra.gmra.mxu1 %vm462_vm2, %v2751_v41 }
 0x813   : > { %6197 = vmatpush3.bf16.xpose.msra.mxu1 %v3096_v37  ;;  %6198 = vmatprep.mubr.msk.bf16.mxu1 %vm6650_vm1, %v6649_v24  ;;  %v7270_v63 = vpop.f32.mrf.mxu0 }
 0x814   : > { %6208 = vmatprep.subr.bf16.mxu1 %v6649_v24 }
 0x81a   : > { %6199 = vmatmul.mubr.msk.bf16.vlgmr.msra.gmra.mxu1 %vm462_vm2, %v2753_v51 }
 0x81b   : > { %6210 = vmatprep.mubr.msk.bf16.mxu1 %vm6650_vm1, %v6649_v24  ;;  %6209 = vmatpush3.bf16.msra.mxu1 %v3284_v10 }
 0x81c   : > { %6220 = vmatprep.subr.bf16.mxu1 %v6649_v24 }
 0x8b8   : > { %v2902_v55 = vpop.f32.mrf.mxu0 }
 0x8b9   : > { %v3144_v26 = vsel %vm462_vm2, %v2902_v55, -inf }
 0x8ba   : > { %v2810_v4 = vpop.f32.mrf.mxu1  ;;  %v6170_v9 = vpop.f32.mrf.mxu0 }
 0x8bb   : > { %v3138_v7 = vsel %vm462_vm2, %v2810_v4, -inf }
 0x8bc   : > { %v2905_v42 = vpop.f32.mrf.mxu0  ;;  %3139 = vmax.xlane.f32.xlu0 %v3138_v7  ;;  %v6158_v30 = vpop.f32.mrf.mxu1 }
 0x8be   : > { %v2813_v14 = vpop.f32.mrf.mxu1  ;;  %v6171_v23 = vpop.f32.mrf.mxu0 }
 0x8c0   : > { %3145 = vmax.xlane.f32.xlu0 %v3144_v26  ;;  %v6159_v49 = vpop.f32.mrf.mxu1 }
 0x8c2   : > { %v2856_v27 = vpop.f32.mrf.mxu1  ;;  %v2994_v50 = vpop.f32.mrf.mxu0 }
 0x8c3   : > { %v3141_v33 = vsel %vm462_vm2, %v2856_v27, -inf  ;;  %v3150_v17 = vsel %vm462_vm2, %v2994_v50, -inf }
 0x8c4   : > { %v6182_v16 = vpop.f32.mrf.mxu0  ;;  %3142 = vmax.xlane.f32.xlu1 %v3141_v33  ;;  %v6164_v34 = vpop.f32.mrf.mxu1 }
 0x8c6   : > { %v2859_v19 = vpop.f32.mrf.mxu1  ;;  %v2997_v29 = vpop.f32.mrf.mxu0 }
 0x8c8   : > { %v6183_v2 = vpop.f32.mrf.mxu0  ;;  %3151 = vmax.xlane.f32.xlu1 %v3150_v17  ;;  %v6165_v31 = vpop.f32.mrf.mxu1 }
 0x8ca   : > { %v2948_v35 = vpop.f32.mrf.mxu1  ;;  %v3086_v15 = vpop.f32.mrf.mxu0 }
 0x8cb   : > { %v3156_v22 = vsel %vm462_vm2, %v3086_v15, -inf  ;;  %v3147_v0 = vsel %vm462_vm2, %v2948_v35, -inf }
 0x8cc   : > { %v6194_v41 = vpop.f32.mrf.mxu0  ;;  %3157 = vmax.xlane.f32.xlu1 %v3156_v22  ;;  %3148 = vmax.xlane.f32.xlu0 %v3147_v0  ;;  %v6176_v37 = vpop.f32.mrf.mxu1 }
 0x8ce   : > { %v2951_v51 = vpop.f32.mrf.mxu1  ;;  %v3089_v54 = vpop.f32.mrf.mxu0 }
 0x8d0   : > { %v6177_v56 = vpop.f32.mrf.mxu1  ;;  %v6195_v52 = vpop.f32.mrf.mxu0 }
 0x8d2   : > { %v3040_v60 = vpop.f32.mrf.mxu1 }
 0x8d3   : > { %v3153_v1 = vsel %vm462_vm2, %v3040_v60, -inf }
 0x8d4   : > { %3154 = vmax.xlane.f32.xlu0 %v3153_v1  ;;  %v6188_v10 = vpop.f32.mrf.mxu1 }
 0x8d6   : > { %v3043_v9 = vpop.f32.mrf.mxu1 }
 0x8d8   : > { %v6189_v7 = vpop.f32.mrf.mxu1 }
 0x8da   : > { %v3132_v42 = vpop.f32.mrf.mxu1 }
 0x8db   : > { %v3159_v30 = vsel %vm462_vm2, %v3132_v42, -inf }
 0x8dc   : > { %3160 = vmax.xlane.f32.xlu0 %v3159_v30  ;;  %v6200_v14 = vpop.f32.mrf.mxu1 }
 0x8de   : > { %v3135_v23 = vpop.f32.mrf.mxu1 }
 0x8e0   : > { %v6201_v26 = vpop.f32.mrf.mxu1 }
 0x945   : > { %v3140_v49 = vpop.xlane.xlu0 %3139 }
 0x946   : > { %v3162_v33 = vsub.f32 %v2810_v4, %v3140_v49 }
 0x948   : > { %v3170_v16 = vmul.f32 1.442695, %v3162_v33 }
 0x949   : > { %v3146_v34 = vpop.xlane.xlu0 %3145 }
 0x94a   : > { %6531 = vpow2.f32 %v3170_v16  ;;  %v3164_v17 = vsub.f32 %v2902_v55, %v3146_v34 }
 0x94c   : > { %v3174_v19 = vmul.f32 1.442695, %v3164_v17 }
 0x94d   : > { %v3143_v29 = vpop.xlane.xlu1 %3142 }
 0x94e   : > { %6533 = vpow2.f32 %v3174_v19  ;;  %v3163_v2 = vsub.f32 %v2856_v27, %v3143_v29 }
 0x950   : > { %v3172_v31 = vmul.f32 1.442695, %v3163_v2 }
 0x951   : > { %v3152_v22 = vpop.xlane.xlu1 %3151 }
 0x952   : > { %6535 = vpow2.f32 %v3172_v31  ;;  %v3166_v0 = vsub.f32 %v2994_v50, %v3152_v22 }
 0x954   : > { %v3178_v41 = vmul.f32 1.442695, %v3166_v0 }
 0x955   : > { %v3158_v37 = vpop.xlane.xlu1 %3157  ;;  %v3149_v51 = vpop.xlane.xlu0 %3148 }
 0x956   : > { %6537 = vpow2.f32 %v3178_v41  ;;  %v3168_v54 = vsub.f32 %v3086_v15, %v3158_v37  ;;  %v3165_v56 = vsub.f32 %v2948_v35, %v3149_v51  ;;  %v2764_v37 = vpack.c.bf16 %v7256_v39, %v7256_v39 }
 0x957   : > { %v6532_v52 = vpop.eup %6531  ;;  %v2765_v39 = vpack.c.bf16 %v7258_v48, %v7258_v48 }
 0x958   : > { %v3182_v4 = vmul.f32 1.442695, %v3168_v54  ;;  %v3176_v1 = vmul.f32 1.442695, %v3165_v56  ;;  %v3186_v10 = vsel %vm462_vm2, %v6532_v52, 0.0 }
 0x959   : > { %3187 = vadd.xlane.f32.xlu1 %v3186_v10  ;;  %v3330_v10 = vsel %vm930_vm3, %v2764_v37, 0 }
 0x95a   : > { %6539 = vpow2.f32 %v3182_v4 }
 0x95b   : > { %v6534_v55 = vpop.eup %6533  ;;  %6541 = vpow2.f32 %v3176_v1 }
 0x95c   : > { %v3192_v27 = vsel %vm462_vm2, %v6534_v55, 0.0 }
 0x95d   : > { %3193 = vadd.xlane.f32.xlu1 %v3192_v27  ;;  %v3155_v9 = vpop.xlane.xlu0 %3154 }
 0x95e   : > { %v3167_v50 = vsub.f32 %v3040_v60, %v3155_v9 }
 0x95f   : > { %v6536_v7 = vpop.eup %6535 }
 0x960   : > { %v3180_v30 = vmul.f32 1.442695, %v3167_v50  ;;  %v3189_v14 = vsel %vm462_vm2, %v6536_v7, 0.0 }
 0x961   : > { %3190 = vadd.xlane.f32.xlu0 %v3189_v14 }
 0x962   : > { %6543 = vpow2.f32 %v3180_v30 }
 0x963   : > { %v7283_v35 = vpop.eup %6537 }
 0x964   : > { %v3198_v15 = vsel %vm462_vm2, %v7283_v35, 0.0 }
 0x965   : > { %3199 = vadd.xlane.f32.xlu1 %v3198_v15  ;;  %v3161_v23 = vpop.xlane.xlu0 %3160 }
 0x966   : > { %v3169_v26 = vsub.f32 %v3132_v42, %v3161_v23 }
 0x967   : > { %v7287_v49 = vpop.eup %6539 }
 0x968   : > { %v7289_v33 = vpop.eup %6541  ;;  %v3184_v16 = vmul.f32 1.442695, %v3169_v26  ;;  %v3204_v60 = vsel %vm462_vm2, %v7287_v49, 0.0  ;;  %v3376_v26 = vsel %vm930_vm3, %v2765_v39, 0 }
 0x969   : > { %3205 = vadd.xlane.f32.xlu1 %v3204_v60  ;;  %v3195_v34 = vsel %vm462_vm2, %v7289_v33, 0.0 }
 0x96a   : > { %6545 = vpow2.f32 %v3184_v16  ;;  %3196 = vadd.xlane.f32.xlu0 %v3195_v34  ;;  %v2767_v16 = vpack.c.bf16 %v7270_v63, %v7270_v63 }
 0x96f   : > { %v7295_v17 = vpop.eup %6543 }
 0x970   : > { %v3201_v19 = vsel %vm462_vm2, %v7295_v17, 0.0 }
 0x971   : > { %3202 = vadd.xlane.f32.xlu0 %v3201_v19 }
 0x977   : > { %v7299_v42 = vpop.eup %6545 }
 0x978   : > { %v3207_v29 = vsel %vm462_vm2, %v7299_v42, 0.0 }
 0x979   : > { %3208 = vadd.xlane.f32.xlu0 %v3207_v29 }
 0x97a   : > { %3767 = vrot.lane.b32.xlu1 %v6728_v12, %s6657_s13 }
 0x97e   : > { %3696 = vrot.lane.b32.xlu1 %v6697_v3, %s6658_s14 }
 0x982   : > { %3694 = vrot.lane.b32.xlu1 %v6703_v5, %s6658_s14 }
 0x986   : > { %3836 = vrot.lane.b32.xlu1 %v6732_v13, %s6659_s17 }
 0x98f   : > { %3765 = vrot.lane.b32.xlu0 %v6732_v13, %s6657_s13 }
 0x993   : > { %3838 = vrot.lane.b32.xlu0 %v6728_v12, %s6659_s17 }
 0x9e2   : > { %v3188_v2 = vpop.xlane.xlu1 %3187 }
 0x9e3   : > { %6547 = vrcp.f32 %v3188_v2 }
 0x9e6   : > { %v3194_v31 = vpop.xlane.xlu1 %3193 }
 0x9e7   : > { %6549 = vrcp.f32 %v3194_v31  ;;  %v3468_v31 = vsel %vm930_vm3, %v2767_v16, 0 }
 0x9ea   : > { %v3191_v22 = vpop.xlane.xlu0 %3190 }
 0x9eb   : > { %6551 = vrcp.f32 %v3191_v22  ;;  %v6629_v22 = vld [vmem:[%s7885_s1 + $0x10] sm:$0xff] }
 0x9ee   : > { %v3200_v0 = vpop.xlane.xlu1 %3199 }
 0x9ef   : > { %6553 = vrcp.f32 %v3200_v0 }
 0x9f0   : > { %v6548_v41 = vpop.eup %6547 }
 0x9f1   : > { %v3218_v51 = vmul.f32 %v6548_v41, %v6532_v52  ;;  %v2766_v52 = vpack.c.bf16 %v7266_v57, %v7266_v57 }
 0x9f2   : > { %v3206_v1 = vpop.xlane.xlu1 %3205 }
 0x9f3   : > { %v3226_v54 = vpack.c.bf16 %v3218_v51, %v3218_v51  ;;  %v3197_v56 = vpop.xlane.xlu0 %3196 }
 0x9f4   : > { %v6550_v4 = vpop.eup %6549  ;;  %6555 = vrcp.f32 %v3197_v56 }
 0x9f5   : > { %6205 = vmatmul.mubr.msk.bf16.vlgmr.msra.gmra.mxu0 %vm462_vm2, %v3226_v54  ;;  %v3220_v27 = vmul.f32 %v6550_v4, %v6534_v55  ;;  %6557 = vrcp.f32 %v3206_v1  ;;  %v3422_v55 = vsel %vm930_vm3, %v2766_v52, 0 }
 0x9f6   : > { %6215 = vmatpush3.bf16.msra.mxu0 %v3330_v10  ;;  %6216 = vmatprep.mubr.msk.bf16.mxu0 %vm6650_vm1, %v6649_v24  ;;  %v3768_v56 = vpop.permute.xlu1 %3767 }
 0x9f7   : > { %6226 = vmatprep.subr.bf16.mxu0 %v6649_v24  ;;  %v3228_v14 = vpack.c.bf16 %v3220_v27, %v3220_v27 }
 0x9f8   : > { %v6552_v9 = vpop.eup %6551 }
 0x9f9   : > { %v3219_v50 = vmul.f32 %v6552_v9, %v6536_v7  ;;  %v2768_v7 = vpack.c.bf16 %v7264_v18, %v7264_v18 }
 0x9fa   : > { %v3203_v30 = vpop.xlane.xlu0 %3202  ;;  %v3697_v4 = vpop.permute.xlu1 %3696 }
 0x9fb   : > { %v3227_v15 = vpack.c.bf16 %v3219_v50, %v3219_v50  ;;  %6559 = vrcp.f32 %v3203_v30  ;;  %v3514_v2 = vsel %vm930_vm3, %v2768_v7, 0 }
 0x9fc   : > { %v6554_v23 = vpop.eup %6553 }
 0x9fd   : > { %6211 = vmatmul.mubr.msk.bf16.vlgmr.msra.gmra.mxu1 %vm462_vm2, %v3227_v15  ;;  %6217 = vmatmul.mubr.msk.bf16.vlgmr.msra.gmra.mxu0 %vm462_vm2, %v3228_v14  ;;  %v3222_v48 = vmul.f32 %v6554_v23, %v7283_v35 }
 0x9fe   : > { %6221 = vmatpush3.bf16.msra.mxu1 %v3376_v26  ;;  %6227 = vmatpush3.bf16.msra.mxu0 %v3422_v55  ;;  %v3695_v1 = vpop.permute.xlu1 %3694 }
 0x9ff   : > { %6222 = vmatprep.mubr.msk.bf16.mxu1 %vm6650_vm1, %v6649_v24  ;;  %6228 = vmatprep.mubr.msk.bf16.mxu0 %vm6650_vm1, %v6649_v24  ;;  %v3230_v34 = vpack.c.bf16 %v3222_v48, %v3222_v48 }
 0xa00   : > { %6232 = vmatprep.subr.bf16.mxu1 %v6649_v24  ;;  %6238 = vmatprep.subr.bf16.mxu0 %v6649_v24 }
 0xa01   : > { %v6556_v57 = vpop.eup %6555 }
 0xa02   : > { %v3221_v60 = vmul.f32 %v6556_v57, %v7289_v33  ;;  %v3209_v35 = vpop.xlane.xlu0 %3208  ;;  %v6558_v19 = vpop.eup %6557 }
 0xa03   : > { %6561 = vrcp.f32 %v3209_v35  ;;  %v3224_v18 = vmul.f32 %v6558_v19, %v7287_v49  ;;  %v2769_v49 = vpack.c.bf16 %v7268_v61, %v7268_v61  ;;  %v3619_v61 = vsel %vm930_vm3, %v6629_v22, 0 }
 0xa04   : > { %v3229_v29 = vpack.c.bf16 %v3221_v60, %v3221_v60 }
 0xa05   : > { %6229 = vmatmul.mubr.msk.bf16.vlgmr.msra.gmra.mxu0 %vm462_vm2, %v3230_v34  ;;  %v3232_v0 = vpack.c.bf16 %v3224_v18, %v3224_v18  ;;  %v3560_v37 = vsel %vm930_vm3, %v2769_v49, 0 }
 0xa06   : > { %6223 = vmatmul.mubr.msk.bf16.vlgmr.msra.gmra.mxu1 %vm462_vm2, %v3229_v29  ;;  %6239 = vmatpush3.bf16.msra.mxu0 %v3514_v2  ;;  %v3766_v16 = vpop.permute.xlu0 %3765 }
 0xa07   : > { %6233 = vmatpush3.bf16.msra.mxu1 %v3468_v31  ;;  %6234 = vmatprep.mubr.msk.bf16.mxu1 %vm6650_vm1, %v6649_v24 }
 0xa08   : > { %v6560_v63 = vpop.eup %6559  ;;  %6240 = vmatprep.mubr.msk.bf16.mxu0 %vm6650_vm1, %v6649_v24  ;;  %6244 = vmatprep.subr.bf16.mxu1 %v6649_v24 }
 0xa09   : > { %v3223_v33 = vmul.f32 %v6560_v63, %v7295_v17  ;;  %6436 = vmatprep.subr.msk.bf16.mxu0 %vm930_vm3, %v6629_v22 }
 0xa0b   : > { %v3231_v41 = vpack.c.bf16 %v3223_v33, %v3223_v33 }
 0xa0d   : > { %6241 = vmatmul.mubr.msk.bf16.vlgmr.msra.gmra.mxu0 %vm462_vm2, %v3232_v0 }
 0xa0e   : > { %6235 = vmatmul.mubr.msk.bf16.vlgmr.msra.gmra.mxu1 %vm462_vm2, %v3231_v41  ;;  %6251 = vmatpush3.bf16.msra.mxu0 %v3619_v61  ;;  %v3839_v61 = vpop.permute.xlu0 %3838 }
 0xa0f   : > { %6245 = vmatpush3.bf16.msra.mxu1 %v3560_v37  ;;  %6246 = vmatprep.mubr.msk.bf16.mxu1 %vm6650_vm1, %v6649_v24 }
 0xa10   : > { %v6562_v17 = vpop.eup %6561  ;;  %6272 = vmatprep.subr.bf16.mxu0 %v3768_v56  ;;  %6260 = vmatprep.subr.bf16.mxu1 %v3697_v4 }
 0xa11   : > { %v3225_v51 = vmul.f32 %v6562_v17, %v7299_v42 }
 0xa13   : > { %v3233_v54 = vpack.c.bf16 %v3225_v51, %v3225_v51 }
 0xa16   : > { %6247 = vmatmul.mubr.msk.bf16.vlgmr.msra.gmra.mxu1 %vm462_vm2, %v3233_v54 }
 0xa17   : > { %6264 = vmatprep.mubr.msk.bf16.mxu1 %vm216_vm0, %v6722_v11  ;;  %6261 = vmatpush3.bf16.msra.mxu1 %v3697_v4 }
 0xa18   : > { %6262 = vmatprep.subr.bf16.mxu1 %v3695_v1 }
 0xa1b   : > { %6263 = vmatpush3.bf16.msra.mxu1 %v3695_v1  ;;  %v2503_v1 = vadd.f32 %v7177_v38, %v7206_v58  ;;  %v2519_v38 = vadd.f32 %v7185_v46, %v7214_v28 }
 0xa1c   : > { %6284 = vmatprep.subr.bf16.mxu1 %v3839_v61 }
 0xa1e   : > { %6265 = vmatmul.mubr.msk.bf16.vlgmr.msra.gmra.mxu1 %vm216_vm0, %v6743_v21 }
 0xa1f   : > { %6268 = vmatprep.mubr.msk.bf16.mxu1 %vm216_vm0, %v6718_v8  ;;  %6285 = vmatpush3.bf16.msra.mxu1 %v3839_v61 }
 0xa26   : > { %6269 = vmatmul.mubr.msk.bf16.gmra.mxu1 %vm216_vm0, %v6740_v20 }
 0xa27   : > { %6288 = vmatprep.mubr.msk.bf16.mxu1 %vm216_vm0, %v6722_v11 }
 0xab5   : > { %v3274_v42 = vpop.f32.mrf.mxu0 }
 0xab7   : > { %v6206_v10 = vpop.f32.mrf.mxu0 }
 0xab9   : > { %v3277_v27 = vpop.f32.mrf.mxu0 }
 0xabb   : > { %v6207_v9 = vpop.f32.mrf.mxu0 }
 0xabd   : > { %v3320_v39 = vpop.f32.mrf.mxu1  ;;  %v3366_v52 = vpop.f32.mrf.mxu0 }
 0xabe   : > { %v3602_v50 = vpack.c.bf16 %v3320_v39, %v3274_v42 }
 0xabf   : > { %v6212_v30 = vpop.f32.mrf.mxu1  ;;  %v6218_v14 = vpop.f32.mrf.mxu0 }
 0xac0   : > { %6252 = vmatprep.mubr.msk.bf16.mxu0 %vm462_vm2, %v3602_v50  ;;  %v2522_v50 = vadd.f32 %v7189_v32, %v7218_v59 }
 0xac1   : > { %v3323_v12 = vpop.f32.mrf.mxu1  ;;  %v3369_v15 = vpop.f32.mrf.mxu0 }
 0xac3   : > { %v6213_v13 = vpop.f32.mrf.mxu1  ;;  %v6219_v23 = vpop.f32.mrf.mxu0 }
 0xac5   : > { %v3458_v26 = vpop.f32.mrf.mxu0 }
 0xac6   : > { %v3412_v55 = vpop.f32.mrf.mxu1 }
 0xac7   : > { %v3603_v48 = vpack.c.bf16 %v3412_v55, %v3366_v52  ;;  %v6230_v57 = vpop.f32.mrf.mxu0 }
 0xac8   : > { %v6224_v7 = vpop.f32.mrf.mxu1 }
 0xac9   : > { %6253 = vmatmul.mubr.msk.bf16.vlgmr.msra.gmra.mxu0 %vm462_vm2, %v3603_v48  ;;  %v3461_v60 = vpop.f32.mrf.mxu0 }
 0xaca   : > { %v3415_v35 = vpop.f32.mrf.mxu1  ;;  %6273 = vmatpush3.bf16.msra.mxu0 %v3768_v56  ;;  %v3837_v56 = vpop.permute.xlu1 %3836 }
 0xacb   : > { %v6231_v34 = vpop.f32.mrf.mxu0  ;;  %6274 = vmatprep.subr.bf16.mxu0 %v3766_v16  ;;  %6286 = vmatprep.subr.bf16.mxu1 %v3837_v56 }
 0xacc   : > { %v6225_v19 = vpop.f32.mrf.mxu1  ;;  %6287 = vmatpush3.bf16.msra.mxu1 %v3837_v56 }
 0xacd   : > { %v3550_v29 = vpop.f32.mrf.mxu0  ;;  %6302 = vmatprep.subr.bf16.mxu1 %v6649_v24 }
 0xace   : > { %v3504_v2 = vpop.f32.mrf.mxu1  ;;  %6275 = vmatpush3.bf16.msra.mxu0 %v3766_v16 }
 0xacf   : > { %v3604_v31 = vpack.c.bf16 %v3504_v2, %v3458_v26  ;;  %v6242_v18 = vpop.f32.mrf.mxu0  ;;  %6296 = vmatprep.subr.bf16.mxu0 %v6649_v24  ;;  %6289 = vmatmul.mubr.msk.bf16.vlgmr.msra.gmra.mxu1 %vm216_vm0, %v6743_v21 }
 0xad0   : > { %v6236_v63 = vpop.f32.mrf.mxu1  ;;  %6292 = vmatprep.mubr.msk.bf16.mxu1 %vm216_vm0, %v6718_v8 }
 0xad1   : > { %6256 = vmatprep.mubr.msk.bf16.mxu0 %vm462_vm2, %v3604_v31  ;;  %v3553_v33 = vpop.f32.mrf.mxu0 }
 0xad2   : > { %v3507_v22 = vpop.f32.mrf.mxu1 }
 0xad3   : > { %v6243_v49 = vpop.f32.mrf.mxu0 }
 0xad4   : > { %v6237_v0 = vpop.f32.mrf.mxu1 }
 0xad6   : > { %v3596_v41 = vpop.f32.mrf.mxu1 }
 0xad7   : > { %v3605_v37 = vpack.c.bf16 %v3596_v41, %v3550_v29  ;;  %6293 = vmatmul.mubr.msk.bf16.gmra.mxu1 %vm216_vm0, %v6740_v20 }
 0xad8   : > { %v6248_v17 = vpop.f32.mrf.mxu1  ;;  %6304 = vmatprep.mubr.msk.bf16.mxu1 %vm6650_vm1, %v6649_v24 }
 0xad9   : > { %6257 = vmatmul.mubr.msk.bf16.gmra.mxu0 %vm462_vm2, %v3605_v37 }
 0xada   : > { %v3599_v51 = vpop.f32.mrf.mxu1  ;;  %6276 = vmatprep.mubr.msk.bf16.mxu0 %vm216_vm0, %v6722_v11  ;;  %v2511_v11 = vadd.f32 %v7175_v44, %v7204_v53  ;;  %v2527_v44 = vadd.f32 %v7183_v45, %v7212_v25 }
 0xadc   : > { %v6249_v54 = vpop.f32.mrf.mxu1 }
 0xade   : > { %v6266_v12 = vpop.f32.mrf.mxu1 }
 0xadf   : > { %v3909_v18 = vpack.c.bf16 %v6266_v12, %v6266_v12 }
 0xae0   : > { %v3734_v13 = vpop.f32.mrf.mxu1 }
 0xae1   : > { %6277 = vmatmul.mubr.msk.bf16.vlgmr.msra.gmra.mxu0 %vm216_vm0, %v6743_v21  ;;  %v2514_v21 = vadd.f32 %v7179_v40, %v7208_v62  ;;  %v2530_v40 = vadd.f32 %v7187_v47, %v7216_v36  ;;  %v3907_v57 = vpack.c.bf16 %v3734_v13, %v3734_v13 }
 0xae2   : > { %6280 = vmatprep.mubr.msk.bf16.mxu0 %vm216_vm0, %v6718_v8  ;;  %v6267_v26 = vpop.f32.mrf.mxu1 }
 0xae3   : > { %v3910_v49 = vpack.c.bf16 %v6267_v26, %v6267_v26 }
 0xae4   : > { %v3737_v7 = vpop.f32.mrf.mxu1 }
 0xae5   : > { %v3908_v34 = vpack.c.bf16 %v3737_v7, %v3737_v7 }
 0xae6   : > { %v6270_v19 = vpop.f32.mrf.mxu1 }
 0xae8   : > { %v3750_v63 = vpop.f32.mrf.mxu1 }
 0xae9   : > { %6281 = vmatmul.mubr.msk.bf16.gmra.mxu0 %vm216_vm0, %v6740_v20  ;;  %v3911_v17 = vpack.c.bf16 %v3750_v63, %v3750_v63 }
 0xaea   : > { %6298 = vmatprep.mubr.msk.bf16.mxu0 %vm6650_vm1, %v6649_v24  ;;  %v6271_v0 = vpop.f32.mrf.mxu1 }
 0xaec   : > { %v3753_v51 = vpop.f32.mrf.mxu1 }
 0xaed   : > { %v3912_v56 = vpack.c.bf16 %v3753_v51, %v3753_v51 }
 0xb89   : > { %v6254_v4 = vpop.f32.mrf.mxu0 }
 0xb8a   : > { %v7399_v42 = vadd.f32 %v6254_v4, %v2511_v11  ;;  %v3913_v4 = vpack.c.bf16 %v6270_v19, %v6270_v19 }
 0xb8b   : > { %v3655_v10 = vpop.f32.mrf.mxu0 }
 0xb8c   : > { %v7403_v8 = vadd.f32 %v3655_v10, %v2503_v1  ;;  %v3914_v1 = vpack.c.bf16 %v6271_v0, %v6271_v0 }
 0xb8d   : > { %v6255_v27 = vpop.f32.mrf.mxu0 }
 0xb8e   : > { %v7405_v20 = vadd.f32 %v6255_v27, %v2514_v21 }
 0xb8f   : > { %v7407_v9 = vpop.f32.mrf.mxu0  ;;  %v7465_v10 = vpop.f32.mrf.mxu1 }
 0xb91   : > { %v3876_v21 = vpop.f32.mrf.mxu1 }
 0xb92   : > { %v3923_v27 = vpack.c.bf16 %v3876_v21, %v3876_v21 }
 0xb99   : > { %v6258_v53 = vpop.f32.mrf.mxu0 }
 0xb9a   : > { %v7413_v58 = vadd.f32 %v6258_v53, %v2527_v44  ;;  %v7467_v44 = vpop.f32.mrf.mxu1  ;;  %v4399_v53 = vsel %vm930_vm3, %v3923_v27, 0 }
 0xb9b   : > { %v3671_v39 = vpop.f32.mrf.mxu0 }
 0xb9c   : > { %v7417_v62 = vadd.f32 %v3671_v39, %v2519_v38  ;;  %v3879_v38 = vpop.f32.mrf.mxu1 }
 0xb9d   : > { %v6259_v52 = vpop.f32.mrf.mxu0  ;;  %v3924_v39 = vpack.c.bf16 %v3879_v38, %v3879_v38 }
 0xb9e   : > { %v7421_v30 = vadd.f32 %v6259_v52, %v2530_v40  ;;  %v7473_v52 = vpop.f32.mrf.mxu1 }
 0xb9f   : > { %v3674_v14 = vpop.f32.mrf.mxu0  ;;  %v4445_v40 = vsel %vm930_vm3, %v3924_v39, 0 }
 0xba0   : > { %v7423_v45 = vadd.f32 %v3674_v14, %v2522_v50  ;;  %v7475_v50 = vpop.f32.mrf.mxu1 }
 0xba1   : > { %v6278_v25 = vpop.f32.mrf.mxu0 }
 0xba2   : > { %v3917_v59 = vpack.c.bf16 %v6278_v25, %v6278_v25  ;;  %v7477_v14 = vpop.f32.mrf.mxu1 }
 0xba3   : > { %v3805_v46 = vpop.f32.mrf.mxu0 }
 0xba4   : > { %v3915_v28 = vpack.c.bf16 %v3805_v46, %v3805_v46  ;;  %v4027_v16 = vsel %vm462_vm2, %v3917_v59, 0  ;;  %v7480_v46 = vpop.f32.mrf.mxu1 }
 0xba5   : > { %v6279_v15 = vpop.f32.mrf.mxu0 }
 0xba6   : > { %v3935_v23 = vsel %vm462_vm2, %v3915_v28, 0  ;;  %v3918_v60 = vpack.c.bf16 %v6279_v15, %v6279_v15 }
 0xba7   : > { %v3808_v47 = vpop.f32.mrf.mxu0  ;;  %6297 = vmatpush3.bf16.xpose.msra.mxu0 %v3935_v23 }
 0xba8   : > { %v3916_v36 = vpack.c.bf16 %v3808_v47, %v3808_v47  ;;  %6308 = vmatprep.subr.bf16.mxu0 %v6649_v24  ;;  %v4073_v29 = vsel %vm462_vm2, %v3918_v60, 0 }
 0xba9   : > { %v6282_v32 = vpop.f32.mrf.mxu0 }
 0xbaa   : > { %v3981_v55 = vsel %vm462_vm2, %v3916_v36, 0  ;;  %v3921_v41 = vpack.c.bf16 %v6282_v32, %v6282_v32 }
 0xbab   : > { %6303 = vmatpush3.bf16.xpose.msra.mxu1 %v3981_v55  ;;  %v3821_v48 = vpop.f32.mrf.mxu0 }
 0xbac   : > { %6314 = vmatprep.subr.bf16.mxu1 %v6649_v24  ;;  %v3919_v2 = vpack.c.bf16 %v3821_v48, %v3821_v48  ;;  %v4211_v54 = vsel %vm462_vm2, %v3921_v41, 0 }
 0xbad   : > { %v6283_v35 = vpop.f32.mrf.mxu0 }
 0xbae   : > { %6299 = vmatmul.mubr.msk.bf16.vlgmr.msra.gmra.mxu0 %vm462_vm2, %v3907_v57  ;;  %v4119_v33 = vsel %vm462_vm2, %v3919_v2, 0  ;;  %v3922_v61 = vpack.c.bf16 %v6283_v35, %v6283_v35 }
 0xbaf   : > { %6309 = vmatpush3.bf16.xpose.msra.mxu0 %v4027_v16  ;;  %6310 = vmatprep.mubr.msk.bf16.mxu0 %vm6650_vm1, %v6649_v24  ;;  %v3824_v31 = vpop.f32.mrf.mxu0 }
 0xbb0   : > { %6320 = vmatprep.subr.bf16.mxu0 %v6649_v24  ;;  %v3920_v22 = vpack.c.bf16 %v3824_v31, %v3824_v31  ;;  %v4257_v11 = vsel %vm462_vm2, %v3922_v61, 0 }
 0xbb2   : > { %6305 = vmatmul.mubr.msk.bf16.vlgmr.msra.gmra.mxu1 %vm462_vm2, %v3908_v34  ;;  %v4165_v37 = vsel %vm462_vm2, %v3920_v22, 0 }
 0xbb3   : > { %6315 = vmatpush3.bf16.xpose.msra.mxu1 %v4073_v29  ;;  %6316 = vmatprep.mubr.msk.bf16.mxu1 %vm6650_vm1, %v6649_v24 }
 0xbb4   : > { %6326 = vmatprep.subr.bf16.mxu1 %v6649_v24 }
 0xbb6   : > { %6311 = vmatmul.mubr.msk.bf16.vlgmr.msra.gmra.mxu0 %vm462_vm2, %v3909_v18 }
 0xbb7   : > { %6321 = vmatpush3.bf16.xpose.msra.mxu0 %v4119_v33  ;;  %6322 = vmatprep.mubr.msk.bf16.mxu0 %vm6650_vm1, %v6649_v24 }
 0xbb8   : > { %6332 = vmatprep.subr.bf16.mxu0 %v6649_v24 }
 0xbba   : > { %6317 = vmatmul.mubr.msk.bf16.vlgmr.msra.gmra.mxu1 %vm462_vm2, %v3910_v49 }
 0xbbb   : > { %6327 = vmatpush3.bf16.xpose.msra.mxu1 %v4165_v37  ;;  %6328 = vmatprep.mubr.msk.bf16.mxu1 %vm6650_vm1, %v6649_v24 }
 0xbbc   : > { %6338 = vmatprep.subr.bf16.mxu1 %v6649_v24 }
 0xbbe   : > { %6323 = vmatmul.mubr.msk.bf16.vlgmr.msra.gmra.mxu0 %vm462_vm2, %v3911_v17 }
 0xbbf   : > { %6333 = vmatpush3.bf16.xpose.msra.mxu0 %v4211_v54  ;;  %6334 = vmatprep.mubr.msk.bf16.mxu0 %vm6650_vm1, %v6649_v24 }
 0xbc0   : > { %6344 = vmatprep.subr.bf16.mxu0 %v6649_v24 }
 0xbc2   : > { %6329 = vmatmul.mubr.msk.bf16.vlgmr.msra.gmra.mxu1 %vm462_vm2, %v3912_v56 }
 0xbc3   : > { %6339 = vmatpush3.bf16.xpose.msra.mxu1 %v4257_v11  ;;  %6340 = vmatprep.mubr.msk.bf16.mxu1 %vm6650_vm1, %v6649_v24 }
 0xbc4   : > { %6350 = vmatprep.subr.bf16.mxu1 %v6649_v24 }
 0xbc6   : > { %6335 = vmatmul.mubr.msk.bf16.vlgmr.msra.gmra.mxu0 %vm462_vm2, %v3913_v4 }
 0xbc7   : > { %6346 = vmatprep.mubr.msk.bf16.mxu0 %vm6650_vm1, %v6649_v24  ;;  %6345 = vmatpush3.bf16.msra.mxu0 %v4399_v53 }
 0xbc8   : > { %6356 = vmatprep.subr.bf16.mxu0 %v6649_v24 }
 0xbca   : > { %6341 = vmatmul.mubr.msk.bf16.vlgmr.msra.gmra.mxu1 %vm462_vm2, %v3914_v1 }
 0xbcb   : > { %6352 = vmatprep.mubr.msk.bf16.mxu1 %vm6650_vm1, %v6649_v24  ;;  %6351 = vmatpush3.bf16.msra.mxu1 %v4445_v40 }
 0xbcc   : > { %6362 = vmatprep.subr.bf16.mxu1 %v6649_v24 }
 0xc6e   : > { %v3971_v25 = vpop.f32.mrf.mxu0 }
 0xc6f   : > { %v4299_v12 = vsel %vm462_vm2, %v3971_v25, -inf }
 0xc70   : > { %4300 = vmax.xlane.f32.xlu0 %v4299_v12  ;;  %v6300_v28 = vpop.f32.mrf.mxu0 }
 0xc72   : > { %v3974_v15 = vpop.f32.mrf.mxu0  ;;  %v4017_v13 = vpop.f32.mrf.mxu1 }
 0xc73   : > { %v4302_v23 = vsel %vm462_vm2, %v4017_v13, -inf }
 0xc74   : > { %v6301_v47 = vpop.f32.mrf.mxu0  ;;  %4303 = vmax.xlane.f32.xlu1 %v4302_v23  ;;  %v6306_v36 = vpop.f32.mrf.mxu1 }
 0xc76   : > { %v4020_v26 = vpop.f32.mrf.mxu1  ;;  %v4063_v32 = vpop.f32.mrf.mxu0 }
 0xc77   : > { %v4305_v59 = vsel %vm462_vm2, %v4063_v32, -inf }
 0xc78   : > { %4306 = vmax.xlane.f32.xlu0 %v4305_v59  ;;  %v6307_v55 = vpop.f32.mrf.mxu1  ;;  %v6312_v48 = vpop.f32.mrf.mxu0 }
 0xc7a   : > { %v4066_v57 = vpop.f32.mrf.mxu0  ;;  %v4109_v7 = vpop.f32.mrf.mxu1 }
 0xc7b   : > { %v4308_v16 = vsel %vm462_vm2, %v4109_v7, -inf }
 0xc7c   : > { %v6313_v60 = vpop.f32.mrf.mxu0  ;;  %4309 = vmax.xlane.f32.xlu0 %v4308_v16  ;;  %v6318_v35 = vpop.f32.mrf.mxu1 }
 0xc7e   : > { %v4112_v34 = vpop.f32.mrf.mxu1  ;;  %v4155_v19 = vpop.f32.mrf.mxu0 }
 0xc7f   : > { %v4311_v29 = vsel %vm462_vm2, %v4155_v19, -inf }
 0xc80   : > { %v6324_v2 = vpop.f32.mrf.mxu0  ;;  %4312 = vmax.xlane.f32.xlu1 %v4311_v29  ;;  %v6319_v31 = vpop.f32.mrf.mxu1 }
 0xc82   : > { %v4158_v18 = vpop.f32.mrf.mxu0  ;;  %v4201_v63 = vpop.f32.mrf.mxu1 }
 0xc83   : > { %v4314_v33 = vsel %vm462_vm2, %v4201_v63, -inf }
 0xc84   : > { %v6325_v22 = vpop.f32.mrf.mxu0  ;;  %4315 = vmax.xlane.f32.xlu0 %v4314_v33  ;;  %v6330_v49 = vpop.f32.mrf.mxu1 }
 0xc86   : > { %v4204_v0 = vpop.f32.mrf.mxu1  ;;  %v4247_v41 = vpop.f32.mrf.mxu0 }
 0xc87   : > { %v4317_v37 = vsel %vm462_vm2, %v4247_v41, -inf }
 0xc88   : > { %v6336_v17 = vpop.f32.mrf.mxu0  ;;  %4318 = vmax.xlane.f32.xlu1 %v4317_v37  ;;  %v6331_v51 = vpop.f32.mrf.mxu1 }
 0xc8a   : > { %v4250_v54 = vpop.f32.mrf.mxu0  ;;  %v4293_v61 = vpop.f32.mrf.mxu1 }
 0xc8b   : > { %v4320_v56 = vsel %vm462_vm2, %v4293_v61, -inf }
 0xc8c   : > { %v6337_v11 = vpop.f32.mrf.mxu0  ;;  %4321 = vmax.xlane.f32.xlu0 %v4320_v56  ;;  %v6342_v4 = vpop.f32.mrf.mxu1 }
 0xc8e   : > { %v4296_v1 = vpop.f32.mrf.mxu1 }
 0xc90   : > { %v6343_v21 = vpop.f32.mrf.mxu1 }
 0xcf9   : > { %v4301_v27 = vpop.xlane.xlu0 %4300 }
 0xcfa   : > { %v4323_v53 = vsub.f32 %v3971_v25, %v4301_v27  ;;  %v3925_v27 = vpack.c.bf16 %v7465_v10, %v7465_v10 }
 0xcfc   : > { %v4331_v38 = vmul.f32 1.442695, %v4323_v53 }
 0xcfd   : > { %v4304_v39 = vpop.xlane.xlu1 %4303 }
 0xcfe   : > { %6563 = vpow2.f32 %v4331_v38  ;;  %v4324_v40 = vsub.f32 %v4017_v13, %v4304_v39 }
 0xd00   : > { %v4333_v12 = vmul.f32 1.442695, %v4324_v40 }
 0xd01   : > { %v4307_v28 = vpop.xlane.xlu0 %4306 }
 0xd02   : > { %6565 = vpow2.f32 %v4333_v12  ;;  %v4325_v15 = vsub.f32 %v4063_v32, %v4307_v28  ;;  %v4491_v12 = vsel %vm930_vm3, %v3925_v27, 0  ;;  %v3926_v28 = vpack.c.bf16 %v7467_v44, %v7467_v44 }
 0xd04   : > { %v4335_v23 = vmul.f32 1.442695, %v4325_v15 }
 0xd05   : > { %v4310_v47 = vpop.xlane.xlu0 %4309 }
 0xd06   : > { %6567 = vpow2.f32 %v4335_v23  ;;  %v4326_v36 = vsub.f32 %v4109_v7, %v4310_v47 }
 0xd08   : > { %v4337_v26 = vmul.f32 1.442695, %v4326_v36  ;;  %v4537_v36 = vsel %vm930_vm3, %v3926_v28, 0 }
 0xd09   : > { %v4313_v59 = vpop.xlane.xlu1 %4312 }
 0xd0a   : > { %6569 = vpow2.f32 %v4337_v26  ;;  %v4327_v55 = vsub.f32 %v4155_v19, %v4313_v59  ;;  %v3927_v26 = vpack.c.bf16 %v7475_v50, %v7475_v50 }
 0xd0b   : > { %v6564_v48 = vpop.eup %6563 }
 0xd0c   : > { %v4339_v57 = vmul.f32 1.442695, %v4327_v55  ;;  %v4347_v25 = vsel %vm462_vm2, %v6564_v48, 0.0 }
 0xd0d   : > { %4348 = vadd.xlane.f32.xlu1 %v4347_v25  ;;  %v4316_v16 = vpop.xlane.xlu0 %4315  ;;  %v3928_v25 = vpack.c.bf16 %v7480_v46, %v7480_v46 }
 0xd0e   : > { %6571 = vpow2.f32 %v4339_v57  ;;  %v4328_v13 = vsub.f32 %v4201_v63, %v4316_v16  ;;  %v4583_v57 = vsel %vm930_vm3, %v3927_v26, 0 }
 0xd0f   : > { %v6566_v60 = vpop.eup %6565 }
 0xd10   : > { %v4341_v35 = vmul.f32 1.442695, %v4328_v13  ;;  %v4350_v32 = vsel %vm462_vm2, %v6566_v60, 0.0 }
 0xd11   : > { %v4319_v34 = vpop.xlane.xlu1 %4318  ;;  %4351 = vadd.xlane.f32.xlu0 %v4350_v32  ;;  %v4629_v32 = vsel %vm930_vm3, %v3928_v25, 0 }
 0xd12   : > { %6573 = vpow2.f32 %v4341_v35  ;;  %v4329_v7 = vsub.f32 %v4247_v41, %v4319_v34  ;;  %v3929_v35 = vpack.c.bf16 %v7473_v52, %v7473_v52 }
 0xd13   : > { %v6568_v29 = vpop.eup %6567 }
 0xd14   : > { %v4343_v2 = vmul.f32 1.442695, %v4329_v7  ;;  %v4353_v19 = vsel %vm462_vm2, %v6568_v29, 0.0 }
 0xd15   : > { %4354 = vadd.xlane.f32.xlu1 %v4353_v19  ;;  %v4322_v31 = vpop.xlane.xlu0 %4321 }
 0xd16   : > { %6575 = vpow2.f32 %v4343_v2  ;;  %v4330_v18 = vsub.f32 %v4293_v61, %v4322_v31  ;;  %v3930_v2 = vpack.c.bf16 %v7477_v14, %v7477_v14  ;;  %v6630_v31 = vld [vmem:[%s7885_s1 + $0x18] sm:$0xff] }
 0xd17   : > { %v6570_v33 = vpop.eup %6569 }
 0xd18   : > { %v4345_v22 = vmul.f32 1.442695, %v4330_v18  ;;  %v4356_v63 = vsel %vm462_vm2, %v6570_v33, 0.0 }
 0xd19   : > { %4357 = vadd.xlane.f32.xlu0 %v4356_v63 }
 0xd1a   : > { %6577 = vpow2.f32 %v4345_v22 }
 0xd1b   : > { %v6572_v49 = vpop.eup %6571 }
 0xd1c   : > { %v4359_v0 = vsel %vm462_vm2, %v6572_v49, 0.0 }
 0xd1d   : > { %4360 = vadd.xlane.f32.xlu1 %v4359_v0 }
 0xd1f   : > { %v7494_v37 = vpop.eup %6573 }
 0xd20   : > { %v4362_v41 = vsel %vm462_vm2, %v7494_v37, 0.0 }
 0xd21   : > { %4363 = vadd.xlane.f32.xlu0 %v4362_v41 }
 0xd23   : > { %v7498_v17 = vpop.eup %6575 }
 0xd24   : > { %v4365_v51 = vsel %vm462_vm2, %v7498_v17, 0.0 }
 0xd25   : > { %4366 = vadd.xlane.f32.xlu1 %v4365_v51 }
 0xd27   : > { %v7502_v54 = vpop.eup %6577 }
 0xd28   : > { %v4368_v61 = vsel %vm462_vm2, %v7502_v54, 0.0 }
 0xd29   : > { %4369 = vadd.xlane.f32.xlu0 %v4368_v61 }
 0xd96   : > { %v4349_v56 = vpop.xlane.xlu1 %4348 }
 0xd97   : > { %6579 = vrcp.f32 %v4349_v56 }
 0xd9a   : > { %v4352_v11 = vpop.xlane.xlu0 %4351 }
 0xd9b   : > { %6581 = vrcp.f32 %v4352_v11 }
 0xd9e   : > { %v4355_v4 = vpop.xlane.xlu1 %4354 }
 0xd9f   : > { %6583 = vrcp.f32 %v4355_v4 }
 0xda2   : > { %v4358_v1 = vpop.xlane.xlu0 %4357 }
 0xda3   : > { %6585 = vrcp.f32 %v4358_v1 }
 0xda4   : > { %v6580_v21 = vpop.eup %6579 }
 0xda5   : > { %v4379_v53 = vmul.f32 %v6580_v21, %v6564_v48 }
 0xda6   : > { %v4361_v38 = vpop.xlane.xlu1 %4360 }
 0xda7   : > { %v4387_v39 = vpack.c.bf16 %v4379_v53, %v4379_v53  ;;  %6587 = vrcp.f32 %v4361_v38 }
 0xda8   : > { %v6582_v40 = vpop.eup %6581 }
 0xda9   : > { %v4380_v15 = vmul.f32 %v6582_v40, %v6566_v60  ;;  %6347 = vmatmul.mubr.msk.bf16.vlgmr.msra.gmra.mxu0 %vm462_vm2, %v4387_v39 }
 0xdaa   : > { %6357 = vmatpush3.bf16.msra.mxu0 %v4491_v12  ;;  %v4364_v23 = vpop.xlane.xlu0 %4363  ;;  %6358 = vmatprep.mubr.msk.bf16.mxu0 %vm6650_vm1, %v6649_v24 }
 0xdab   : > { %v4388_v47 = vpack.c.bf16 %v4380_v15, %v4380_v15  ;;  %6589 = vrcp.f32 %v4364_v23  ;;  %6368 = vmatprep.subr.bf16.mxu0 %v6649_v24 }
 0xdac   : > { %v6584_v10 = vpop.eup %6583 }
 0xdad   : > { %v4381_v59 = vmul.f32 %v6584_v10, %v6568_v29  ;;  %6353 = vmatmul.mubr.msk.bf16.vlgmr.msra.gmra.mxu1 %vm462_vm2, %v4388_v47  ;;  %v4675_v29 = vsel %vm930_vm3, %v3929_v35, 0 }
 0xdae   : > { %6363 = vmatpush3.bf16.msra.mxu1 %v4537_v36  ;;  %v4367_v44 = vpop.xlane.xlu1 %4366  ;;  %6364 = vmatprep.mubr.msk.bf16.mxu1 %vm6650_vm1, %v6649_v24 }
 0xdaf   : > { %v4389_v55 = vpack.c.bf16 %v4381_v59, %v4381_v59  ;;  %6591 = vrcp.f32 %v4367_v44  ;;  %6374 = vmatprep.subr.bf16.mxu1 %v6649_v24 }
 0xdb0   : > { %v6586_v48 = vpop.eup %6585 }
 0xdb1   : > { %v4382_v16 = vmul.f32 %v6586_v48, %v6570_v33  ;;  %6359 = vmatmul.mubr.msk.bf16.vlgmr.msra.gmra.mxu0 %vm462_vm2, %v4389_v55  ;;  %v4721_v33 = vsel %vm930_vm3, %v3930_v2, 0 }
 0xdb2   : > { %6369 = vmatpush3.bf16.msra.mxu0 %v4583_v57  ;;  %v4370_v50 = vpop.xlane.xlu0 %4369  ;;  %6370 = vmatprep.mubr.msk.bf16.mxu0 %vm6650_vm1, %v6649_v24 }
 0xdb3   : > { %v4390_v13 = vpack.c.bf16 %v4382_v16, %v4382_v16  ;;  %6593 = vrcp.f32 %v4370_v50  ;;  %6380 = vmatprep.subr.bf16.mxu0 %v6649_v24 }
 0xdb4   : > { %v6588_v60 = vpop.eup %6587 }
 0xdb5   : > { %v4383_v34 = vmul.f32 %v6588_v60, %v6572_v49  ;;  %6365 = vmatmul.mubr.msk.bf16.vlgmr.msra.gmra.mxu1 %vm462_vm2, %v4390_v13 }
 0xdb6   : > { %6375 = vmatpush3.bf16.msra.mxu1 %v4629_v32  ;;  %6376 = vmatprep.mubr.msk.bf16.mxu1 %vm6650_vm1, %v6649_v24 }
 0xdb7   : > { %v4391_v46 = vpack.c.bf16 %v4383_v34, %v4383_v34  ;;  %6386 = vmatprep.subr.bf16.mxu1 %v6649_v24  ;;  %v4855_v34 = vlaneseq }
 0xdb8   : > { %v6590_v7 = vpop.eup %6589 }
 0xdb9   : > { %v4384_v52 = vmul.f32 %v6590_v7, %v7494_v37  ;;  %6371 = vmatmul.mubr.msk.bf16.vlgmr.msra.gmra.mxu0 %vm462_vm2, %v4391_v46  ;;  %v4780_v37 = vsel %vm930_vm3, %v6630_v31, 0  ;;  %v7560_v46 = vshrl.u32 %v4855_v34, 7 }
 0xdba   : > { %6381 = vmatpush3.bf16.msra.mxu0 %v4675_v29  ;;  %6382 = vmatprep.mubr.msk.bf16.mxu0 %vm6650_vm1, %v6649_v24  ;;  %v7566_v29 = vld [vmem:[%s7886_s2] sm:$0xff] }
 0xdbb   : > { %v4392_v19 = vpack.c.bf16 %v4384_v52, %v4384_v52  ;;  %6437 = vmatprep.subr.msk.bf16.mxu0 %vm930_vm3, %v6630_v31  ;;  %v4857_v7 = vsub.s32 0, %v7560_v46 }
 0xdbc   : > { %v6592_v18 = vpop.eup %6591 }
 0xdbd   : > { %v4385_v14 = vmul.f32 %v6592_v18, %v7498_v17  ;;  %6377 = vmatmul.mubr.msk.bf16.vlgmr.msra.gmra.mxu1 %vm462_vm2, %v4392_v19  ;;  %v4858_v2 = vrot.slane %v7566_v29, %v4857_v7  ;;  %v2506_v18 = vadd.f32 %v7181_v43, %v7210_v6 }
 0xdbe   : > { %6387 = vmatpush3.bf16.msra.mxu1 %v4721_v33  ;;  %6388 = vmatprep.mubr.msk.bf16.mxu1 %vm6650_vm1, %v6649_v24 }
 0xdbf   : > { %v4393_v22 = vpack.c.bf16 %v4385_v14, %v4385_v14 }
 0xdc0   : > { %v6594_v63 = vpop.eup %6593 }
 0xdc1   : > { %v4386_v49 = vmul.f32 %v6594_v63, %v7502_v54  ;;  %6383 = vmatmul.mubr.msk.bf16.vlgmr.msra.gmra.mxu0 %vm462_vm2, %v4393_v22  ;;  %v3687_v63 = vadd.f32 %v7407_v9, %v2506_v18 }
 0xdc2   : > { %6393 = vmatpush3.bf16.msra.mxu0 %v4780_v37 }
 0xdc3   : > { %v4394_v0 = vpack.c.bf16 %v4386_v49, %v4386_v49  ;;  %v6631_v49 = vld [vmem:[%s6713_s27 + $0x10] sm:$0xff] }
 0xdc5   : > { %6389 = vmatmul.mubr.msk.bf16.vlgmr.msra.gmra.mxu1 %vm462_vm2, %v4394_v0 }
 0xe69   : > { %v4435_v41 = vpop.f32.mrf.mxu0 }
 0xe6b   : > { %v6348_v17 = vpop.f32.mrf.mxu0 }
 0xe6d   : > { %v4438_v51 = vpop.f32.mrf.mxu0  ;;  %v4481_v61 = vpop.f32.mrf.mxu1 }
 0xe6e   : > { %v4763_v56 = vpack.c.bf16 %v4481_v61, %v4435_v41 }
 0xe6f   : > { %v6349_v11 = vpop.f32.mrf.mxu0  ;;  %v6354_v4 = vpop.f32.mrf.mxu1 }
 0xe70   : > { %6394 = vmatprep.mubr.msk.bf16.mxu0 %vm462_vm2, %v4763_v56  ;;  %v6634_v11 = vld [vmem:[%s6713_s27 + $0x8] sm:$0xff] }
 0xe71   : > { %v4484_v24 = vpop.f32.mrf.mxu1  ;;  %v4527_v1 = vpop.f32.mrf.mxu0 }
 0xe73   : > { %v6355_v54 = vpop.f32.mrf.mxu1  ;;  %v6360_v21 = vpop.f32.mrf.mxu0 }
 0xe75   : > { %v4530_v27 = vpop.f32.mrf.mxu0  ;;  %v4573_v53 = vpop.f32.mrf.mxu1 }
 0xe76   : > { %v4764_v38 = vpack.c.bf16 %v4573_v53, %v4527_v1 }
 0xe77   : > { %v6361_v39 = vpop.f32.mrf.mxu0  ;;  %v6366_v40 = vpop.f32.mrf.mxu1 }
 0xe78   : > { %6395 = vmatmul.mubr.msk.bf16.vlgmr.msra.gmra.mxu0 %vm462_vm2, %v4764_v38 }
 0xe79   : > { %v4576_v12 = vpop.f32.mrf.mxu1  ;;  %v4619_v28 = vpop.f32.mrf.mxu0 }
 0xe7b   : > { %v6367_v15 = vpop.f32.mrf.mxu1  ;;  %v6372_v23 = vpop.f32.mrf.mxu0 }
 0xe7d   : > { %v4622_v47 = vpop.f32.mrf.mxu0  ;;  %v4665_v10 = vpop.f32.mrf.mxu1 }
 0xe7e   : > { %v4765_v36 = vpack.c.bf16 %v4665_v10, %v4619_v28 }
 0xe7f   : > { %v6373_v26 = vpop.f32.mrf.mxu0  ;;  %v6378_v59 = vpop.f32.mrf.mxu1 }
 0xe80   : > { %6398 = vmatprep.mubr.msk.bf16.mxu0 %vm462_vm2, %v4765_v36  ;;  %v6635_v36 = vld [vmem:[%s6713_s27 + $0x30] sm:$0xff] }
 0xe81   : > { %v4668_v44 = vpop.f32.mrf.mxu1  ;;  %v4711_v55 = vpop.f32.mrf.mxu0 }
 0xe83   : > { %v6379_v48 = vpop.f32.mrf.mxu1  ;;  %v6384_v57 = vpop.f32.mrf.mxu0 }
 0xe84   : > { %v6636_v48 = vld [vmem:[%s6713_s27 + $0x20] sm:$0xff] }
 0xe85   : > { %v4714_v25 = vpop.f32.mrf.mxu0  ;;  %v4757_v16 = vpop.f32.mrf.mxu1 }
 0xe86   : > { %v4766_v50 = vpack.c.bf16 %v4757_v16, %v4711_v55 }
 0xe87   : > { %v6385_v13 = vpop.f32.mrf.mxu0  ;;  %v6390_v60 = vpop.f32.mrf.mxu1 }
 0xe88   : > { %6399 = vmatmul.mubr.msk.bf16.gmra.mxu0 %vm462_vm2, %v4766_v50  ;;  %v6637_v50 = vld [vmem:[%s6713_s27 + $0x38] sm:$0xff] }
 0xe89   : > { %v4760_v35 = vpop.f32.mrf.mxu1 }
 0xe8a   : > { %v6638_v35 = vld [vmem:[%s6713_s27 + $0x28] sm:$0xff] }
 0xe8b   : > { %v6391_v32 = vpop.f32.mrf.mxu1 }
 0xf38   : > { %v6396_v52 = vpop.f32.mrf.mxu0 }
 0xf39   : > { %v4849_v19 = vadd.f32 %v6396_v52, %v7399_v42  ;;  %v6632_v42 = vld [vmem:[%s6713_s27] sm:$0xff] }
 0xf3a   : > { %v4816_v31 = vpop.f32.mrf.mxu0 }
 0xf3b   : > { %v4861_v33 = vadd.f32 %v4858_v2, %v4849_v19  ;;  %v4847_v14 = vadd.f32 %v4816_v31, %v7403_v8  ;;  %v6633_v8 = vld [vmem:[%s6713_s27 + $0x18] sm:$0xff] }
 0xf3c   : > { %v6397_v22 = vpop.f32.mrf.mxu0 }
 0xf3d   : > { %v7575_v0 = vadd.f32 %v6631_v49, %v4861_v33  ;;  %v4859_v37 = vadd.f32 %v4858_v2, %v4847_v14  ;;  %v4850_v41 = vadd.f32 %v6397_v22, %v7405_v20  ;;  %v6463_v22 = vld [vmem:[%s7885_s1 + $0x50] ss:$8 sps:$4 sm:$0xff]  }
 0xf3e   : > { %v4819_v17 = vpop.f32.mrf.mxu0  ;;  %6414 = vmatprep.subr.bf16.mxu0 %v6463_v22 }
 0xf3f   : > { %v7579_v51 = vadd.f32 %v6632_v42, %v4859_v37  ;;  %v4862_v61 = vadd.f32 %v4858_v2, %v4850_v41  ;;  %v4848_v43 = vadd.f32 %v4819_v17, %v3687_v63  ;;  %v4881_v6 = vsel %vm216_vm0, %v7575_v0, 0.0  ;;  %6415 = vmatpush3.bf16.msra.mxu0 %v6463_v22 }
 0xf40   : > { %4882 = vadd.xlane.f32.xlu1 %v4881_v6  ;;  %v4910_v1 = vmul.f32 %v7575_v0, %v7575_v0 }
 0xf41   : > { %v7584_v56 = vadd.f32 %v6633_v8, %v4862_v61  ;;  %v4860_v9 = vadd.f32 %v4858_v2, %v4848_v43  ;;  %v4875_v24 = vsel %vm216_vm0, %v7579_v51, 0.0  ;;  %v4908_v53 = vmul.f32 %v7579_v51, %v7579_v51 }
 0xf42   : > { %v4922_v21 = vsel %vm216_vm0, %v4910_v1, 0.0 }
 0xf43   : > { %v7587_v4 = vadd.f32 %v6634_v11, %v4860_v9  ;;  %v4884_v20 = vsel %vm216_vm0, %v7584_v56, 0.0  ;;  %v4911_v27 = vmul.f32 %v7584_v56, %v7584_v56  ;;  %v4916_v47 = vsel %vm216_vm0, %v4908_v53, 0.0 }
 0xf44   : > { %4885 = vadd.xlane.f32.xlu0 %v4884_v20  ;;  %4876 = vadd.xlane.f32.xlu1 %v4875_v24 }
 0xf45   : > { %v4878_v54 = vsel %vm216_vm0, %v7587_v4, 0.0  ;;  %v4909_v12 = vmul.f32 %v7587_v4, %v7587_v4  ;;  %v4925_v23 = vsel %vm216_vm0, %v4911_v27, 0.0 }
 0xf47   : > { %v4919_v55 = vsel %vm216_vm0, %v4909_v12, 0.0 }
 0xf48   : > { %v6400_v38 = vpop.f32.mrf.mxu0  ;;  %4879 = vadd.xlane.f32.xlu0 %v4878_v54  ;;  %4923 = vadd.xlane.f32.xlu1 %v4922_v21 }
 0xf49   : > { %v4853_v39 = vadd.f32 %v6400_v38, %v7413_v58 }
 0xf4a   : > { %v4832_v40 = vpop.f32.mrf.mxu0 }
 0xf4b   : > { %v4865_v28 = vadd.f32 %v4858_v2, %v4853_v39  ;;  %v4851_v15 = vadd.f32 %v4832_v40, %v7417_v62 }
 0xf4c   : > { %v6401_v10 = vpop.f32.mrf.mxu0  ;;  %4926 = vadd.xlane.f32.xlu0 %v4925_v23  ;;  %4917 = vadd.xlane.f32.xlu1 %v4916_v47 }
 0xf4d   : > { %v7609_v26 = vadd.f32 %v6635_v36, %v4865_v28  ;;  %v4863_v58 = vadd.f32 %v4858_v2, %v4851_v15  ;;  %v4854_v59 = vadd.f32 %v6401_v10, %v7421_v30 }
 0xf4e   : > { %v4835_v44 = vpop.f32.mrf.mxu0 }
 0xf4f   : > { %v7614_v62 = vadd.f32 %v6636_v48, %v4863_v58  ;;  %v4866_v57 = vadd.f32 %v4858_v2, %v4854_v59  ;;  %v4852_v25 = vadd.f32 %v4835_v44, %v7423_v45  ;;  %v4893_v16 = vsel %vm216_vm0, %v7609_v26, 0.0 }
 0xf50   : > { %4920 = vadd.xlane.f32.xlu0 %v4919_v55  ;;  %4894 = vadd.xlane.f32.xlu1 %v4893_v16  ;;  %v4914_v45 = vmul.f32 %v7609_v26, %v7609_v26 }
 0xf51   : > { %v7620_v13 = vadd.f32 %v6637_v50, %v4866_v57  ;;  %v4864_v60 = vadd.f32 %v4858_v2, %v4852_v25  ;;  %v4887_v34 = vsel %vm216_vm0, %v7614_v62, 0.0  ;;  %v4912_v19 = vmul.f32 %v7614_v62, %v7614_v62 }
 0xf52   : > { %v4934_v52 = vsel %vm216_vm0, %v4914_v45, 0.0  ;;  %v4998_v50 = vsub.s32 1, %v7560_v46 }
 0xf53   : > { %v7623_v30 = vadd.f32 %v6638_v35, %v4864_v60  ;;  %v4896_v32 = vsel %vm216_vm0, %v7620_v13, 0.0  ;;  %v4915_v2 = vmul.f32 %v7620_v13, %v7620_v13  ;;  %v4928_v18 = vsel %vm216_vm0, %v4912_v19, 0.0 }
 0xf54   : > { %4897 = vadd.xlane.f32.xlu0 %v4896_v32  ;;  %4888 = vadd.xlane.f32.xlu1 %v4887_v34 }
 0xf55   : > { %v4890_v7 = vsel %vm216_vm0, %v7623_v30, 0.0  ;;  %v4937_v31 = vsel %vm216_vm0, %v4915_v2, 0.0  ;;  %v4913_v33 = vmul.f32 %v7623_v30, %v7623_v30 }
 0xf57   : > { %v4931_v14 = vsel %vm216_vm0, %v4913_v33, 0.0 }
 0xf58   : > { %4891 = vadd.xlane.f32.xlu0 %v4890_v7  ;;  %4935 = vadd.xlane.f32.xlu1 %v4934_v52 }
 0xf5c   : > { %4938 = vadd.xlane.f32.xlu0 %v4937_v31  ;;  %4929 = vadd.xlane.f32.xlu1 %v4928_v18 }
 0xf60   : > { %4932 = vadd.xlane.f32.xlu0 %v4931_v14 }
 0xf6d   : > { %5030 = vrot.lane.b32.xlu1 %v6697_v3, %s6648_s28 }
 0xf76   : > { %5028 = vrot.lane.b32.xlu0 %v6703_v5, %s6648_s28 }
 0xfc9   : > { %v4883_v63 = vpop.xlane.xlu1 %4882 }
 0xfca   : > { %v7650_v41 = vmul.f32 0.03125, %v4883_v63 }
 0xfcc   : > { %v4950_v3 = vmul.f32 %v7650_v41, %v7650_v41  ;;  %v4966_v22 = vsub.f32 %v7575_v0, %v7650_v41  ;;  %v5010_v41 = vsub.s32 2, %v7560_v46 }
 0xfcd   : > { %v4886_v49 = vpop.xlane.xlu0 %4885  ;;  %v4877_v37 = vpop.xlane.xlu1 %4876 }
 0xfce   : > { %v4903_v17 = vmul.f32 0.03125, %v4886_v49  ;;  %v7654_v43 = vmul.f32 0.03125, %v4877_v37  ;;  %v4999_v49 = vrot.slane %v7566_v29, %v4998_v50 }
 0xfd0   : > { %v4951_v8 = vmul.f32 %v4903_v17, %v4903_v17  ;;  %v4948_v20 = vmul.f32 %v7654_v43, %v7654_v43  ;;  %v4967_v31 = vsub.f32 %v7584_v56, %v4903_v17  ;;  %v4964_v63 = vsub.f32 %v7579_v51, %v7654_v43 }
 0xfd1   : > { %v4880_v42 = vpop.xlane.xlu0 %4879  ;;  %v4924_v61 = vpop.xlane.xlu1 %4923 }
 0xfd2   : > { %v4942_v5 = vmul.f32 0.03125, %v4924_v61  ;;  %v7658_v24 = vmul.f32 0.03125, %v4880_v42 }
 0xfd4   : > { %v4958_v6 = vsub.f32 %v4942_v5, %v4950_v3  ;;  %v4949_v40 = vmul.f32 %v7658_v24, %v7658_v24  ;;  %v4965_v51 = vsub.f32 %v7587_v4, %v7658_v24 }
 0xfd5   : > { %v4927_v9 = vpop.xlane.xlu0 %4926  ;;  %v4918_v11 = vpop.xlane.xlu1 %4917 }
 0xfd6   : > { %v4943_v1 = vmul.f32 0.03125, %v4927_v9  ;;  %v4940_v54 = vmul.f32 0.03125, %v4918_v11  ;;  %v4974_v21 = vadd.f32 1e-05, %v4958_v6 }
 0xfd8   : > { %v4959_v27 = vsub.f32 %v4943_v1, %v4951_v8  ;;  %v4956_v53 = vsub.f32 %v4940_v54, %v4948_v20  ;;  %6595 = vrsqrt.f32 %v4974_v21 }
 0xfd9   : > { %v4921_v38 = vpop.xlane.xlu0 %4920  ;;  %v4895_v39 = vpop.xlane.xlu1 %4894 }
 0xfda   : > { %v4975_v12 = vadd.f32 1e-05, %v4959_v27  ;;  %v4972_v28 = vadd.f32 1e-05, %v4956_v53  ;;  %v4941_v15 = vmul.f32 0.03125, %v4921_v38  ;;  %v7662_v58 = vmul.f32 0.03125, %v4895_v39 }
 0xfdb   : > { %v5011_v53 = vrot.slane %v7566_v29, %v5010_v41 }
 0xfdc   : > { %6597 = vrsqrt.f32 %v4975_v12  ;;  %v4957_v23 = vsub.f32 %v4941_v15, %v4949_v40  ;;  %v4954_v55 = vmul.f32 %v7662_v58, %v7662_v58 }
 0xfdd   : > { %6599 = vrsqrt.f32 %v4972_v28  ;;  %v4898_v47 = vpop.xlane.xlu0 %4897  ;;  %v4889_v10 = vpop.xlane.xlu1 %4888 }
 0xfde   : > { %v4973_v36 = vadd.f32 1e-05, %v4957_v23  ;;  %v7666_v48 = vmul.f32 0.03125, %v4898_v47  ;;  %v7668_v57 = vmul.f32 0.03125, %v4889_v10  ;;  %v4970_v10 = vsub.f32 %v7609_v26, %v7662_v58 }
 0xfe0   : > { %6601 = vrsqrt.f32 %v4973_v36  ;;  %v4955_v34 = vmul.f32 %v7666_v48, %v7666_v48  ;;  %v4952_v45 = vmul.f32 %v7668_v57, %v7668_v57  ;;  %v4971_v23 = vsub.f32 %v7620_v13, %v7666_v48 }
 0xfe1   : > { %v4892_v59 = vpop.xlane.xlu0 %4891  ;;  %v4936_v44 = vpop.xlane.xlu1 %4935  ;;  %v4968_v36 = vsub.f32 %v7614_v62, %v7668_v57  ;;  %v6464_v57 = vld [vmem:[%s7885_s1 + $0x40] ss:$8 sps:$4 sm:$0xff]  }
 0xfe2   : > { %v4946_v25 = vmul.f32 0.03125, %v4936_v44  ;;  %v7671_v60 = vmul.f32 0.03125, %v4892_v59  ;;  %6416 = vmatprep.subr.bf16.mxu0 %v6464_v57 }
 0xfe3   : > { %6417 = vmatpush3.bf16.msra.mxu0 %v6464_v57 }
 0xfe4   : > { %v4962_v16 = vsub.f32 %v4946_v25, %v4954_v55  ;;  %v4953_v37 = vmul.f32 %v7671_v60, %v7671_v60 }
 0xfe5   : > { %v4939_v35 = vpop.xlane.xlu0 %4938  ;;  %v4930_v32 = vpop.xlane.xlu1 %4929 }
 0xfe6   : > { %v4947_v7 = vmul.f32 0.03125, %v4939_v35  ;;  %v4944_v52 = vmul.f32 0.03125, %v4930_v32  ;;  %v4978_v2 = vadd.f32 1e-05, %v4962_v16  ;;  %v6596_v19 = vpop.eup %6595  ;;  %v4969_v16 = vsub.f32 %v7623_v30, %v7671_v60  ;;  %v6465_v60 = vld [vmem:[%s7885_s1 + $0x30] ss:$8 sps:$4 sm:$0xff]  }
 0xfe7   : > { %v4990_v8 = vmul.f32 %v6596_v19, %v4966_v22  ;;  %6418 = vmatprep.subr.bf16.mxu0 %v6465_v60 }
 0xfe8   : > { %v4963_v18 = vsub.f32 %v4947_v7, %v4955_v34  ;;  %v4960_v33 = vsub.f32 %v4944_v52, %v4952_v45  ;;  %6603 = vrsqrt.f32 %v4978_v2  ;;  %6419 = vmatpush3.bf16.msra.mxu0 %v6465_v60  ;;  %v6466_v52 = vld [vmem:[%s7885_s1 + $0x20] ss:$8 sps:$4 sm:$0xff]   ;;  %v5026_v2 = vsub.s32 6, %v7560_v46 }
 0xfe9   : > { %v6598_v14 = vpop.eup %6597  ;;  %v4933_v42 = vpop.xlane.xlu0 %4932  ;;  %v5002_v27 = vmul.f32 %v4999_v49, %v4990_v8  ;;  %6420 = vmatprep.subr.bf16.mxu0 %v6466_v52 }
 0xfea   : > { %v5031_v61 = vpop.permute.xlu1 %5030  ;;  %v6600_v3 = vpop.eup %6599  ;;  %v4991_v5 = vmul.f32 %v6598_v14, %v4967_v31  ;;  %v4979_v6 = vadd.f32 1e-05, %v4963_v18  ;;  %v4976_v56 = vadd.f32 1e-05, %v4960_v33  ;;  %v4945_v17 = vmul.f32 0.03125, %v4933_v42 }
 0xfeb   : > { %6402 = vmatprep.subr.bf16.mxu1 %v5031_v61  ;;  %v4988_v0 = vmul.f32 %v6600_v3, %v4964_v63  ;;  %v7695_v24 = vadd.f32 %v5011_v53, %v5002_v27  ;;  %v5027_v31 = vrot.slane %v7566_v29, %v5026_v2 }
 0xfec   : > { %6403 = vmatpush3.bf16.msra.mxu1 %v5031_v61  ;;  %6605 = vrsqrt.f32 %v4979_v6  ;;  %v4961_v43 = vsub.f32 %v4945_v17, %v4953_v37  ;;  %v5003_v11 = vmul.f32 %v4999_v49, %v4991_v5  ;;  %6421 = vmatpush3.bf16.msra.mxu0 %v6466_v52 }
 0xfed   : > { %v6602_v9 = vpop.eup %6601  ;;  %6607 = vrsqrt.f32 %v4976_v56  ;;  %v5029_v20 = vpop.permute.xlu0 %5028  ;;  %v5000_v21 = vmul.f32 %v4999_v49, %v4988_v0 }
 0xfee   : > { %v4977_v1 = vadd.f32 1e-05, %v4961_v43  ;;  %6404 = vmatprep.subr.bf16.mxu1 %v5029_v20  ;;  %v4989_v54 = vmul.f32 %v6602_v9, %v4965_v51  ;;  %v7689_v39 = vadd.f32 %v5011_v53, %v5003_v11 }
 0xfef   : > { %v7691_v40 = vadd.f32 %v5011_v53, %v5000_v21 }
 0xff0   : > { %6405 = vmatpush3.bf16.msra.mxu1 %v5029_v20  ;;  %6609 = vrsqrt.f32 %v4977_v1  ;;  %v5001_v38 = vmul.f32 %v4999_v49, %v4989_v54  ;;  %v5021_v28 = vpack.c.bf16 %v7689_v39, %v7695_v24 }
 0xff2   : > { %v7693_v4 = vadd.f32 %v5011_v53, %v5001_v38  ;;  %v5125_v38 = vsub.s32 3, %v7560_v46 }
 0xff4   : > { %v5020_v12 = vpack.c.bf16 %v7693_v4, %v7691_v40 }
 0xff5   : > { %v6604_v15 = vpop.eup %6603 }
 0xff6   : > { %6406 = vmatprep.mubr.msk.bf16.mxu1 %vm216_vm0, %v5020_v12  ;;  %v4994_v55 = vmul.f32 %v6604_v15, %v4970_v10  ;;  %v5126_v12 = vrot.slane %v7566_v29, %v5125_v38 }
 0xff7   : > { %6407 = vmatmul.mubr.msk.bf16.vlgmr.msra.gmra.mxu1 %vm216_vm0, %v5021_v28 }
 0xff8   : > { %v5006_v45 = vmul.f32 %v4999_v49, %v4994_v55 }
 0xff9   : > { %v6606_v47 = vpop.eup %6605 }
 0xffa   : > { %v6608_v59 = vpop.eup %6607  ;;  %v4995_v44 = vmul.f32 %v6606_v47, %v4971_v23  ;;  %v7717_v62 = vadd.f32 %v5011_v53, %v5006_v45 }
 0xffb   : > { %v4992_v25 = vmul.f32 %v6608_v59, %v4968_v36 }
 0xffc   : > { %v5007_v35 = vmul.f32 %v4999_v49, %v4995_v44 }
 0xffd   : > { %v6610_v50 = vpop.eup %6609  ;;  %v5004_v34 = vmul.f32 %v4999_v49, %v4992_v25 }
 0xffe   : > { %v4993_v32 = vmul.f32 %v6610_v50, %v4969_v16  ;;  %v7711_v48 = vadd.f32 %v5011_v53, %v5007_v35 }
 0xfff   : > { %v7713_v7 = vadd.f32 %v5011_v53, %v5004_v34 }
0x1000   : > { %v5005_v13 = vmul.f32 %v4999_v49, %v4993_v32  ;;  %v5023_v30 = vpack.c.bf16 %v7711_v48, %v7717_v62 }
0x1002   : > { %v7715_v26 = vadd.f32 %v5011_v53, %v5005_v13 }
0x1004   : > { %v5022_v58 = vpack.c.bf16 %v7715_v26, %v7713_v7 }
0x1006   : > { %6410 = vmatprep.mubr.msk.bf16.mxu1 %vm216_vm0, %v5022_v58 }
0x1007   : > { %6411 = vmatmul.mubr.msk.bf16.gmra.mxu1 %vm216_vm0, %v5023_v30 }
0x10b7   : > { %v6408_v19 = vpop.f32.mrf.mxu1 }
0x10b8   : > { %v5089_v63 = vadd.f32 %v6408_v19, %v5027_v31 }
0x10b9   : > { %v5080_v18 = vpop.f32.mrf.mxu1 }
0x10ba   : > { %v5081_v14 = vadd.f32 %v5080_v18, %v5027_v31  ;;  %v5113_v5 = vmax.f32 %v5089_v63, 0.0 }
0x10bb   : > { %v6409_v33 = vpop.f32.mrf.mxu1 }
0x10bc   : > { %v5092_v22 = vadd.f32 %v6409_v33, %v5027_v31  ;;  %v5111_v61 = vmax.f32 %v5081_v14, 0.0 }
0x10bd   : > { %v5083_v49 = vpop.f32.mrf.mxu1 }
0x10be   : > { %v5084_v37 = vadd.f32 %v5083_v49, %v5027_v31  ;;  %v5114_v42 = vmax.f32 %v5092_v22, 0.0 }
0x10c0   : > { %v5112_v3 = vmax.f32 %v5084_v37, 0.0  ;;  %v5120_v56 = vpack.c.bf16 %v5114_v42, %v5113_v5 }
0x10c2   : > { %v5119_v6 = vpack.c.bf16 %v5112_v3, %v5111_v61 }
0x10c4   : > { %6422 = vmatprep.mubr.msk.bf16.mxu0 %vm5151_vm4, %v5119_v6 }
0x10c5   : > { %6423 = vmatmul.mubr.msk.bf16.vlgmr.msra.gmra.mxu0 %vm5151_vm4, %v5120_v56 }
0x10c7   : > { %v6412_v17 = vpop.f32.mrf.mxu1 }
0x10c8   : > { %v5105_v43 = vadd.f32 %v6412_v17, %v5027_v31 }
0x10c9   : > { %v5096_v8 = vpop.f32.mrf.mxu1 }
0x10ca   : > { %v5097_v41 = vadd.f32 %v5096_v8, %v5027_v31  ;;  %v5117_v21 = vmax.f32 %v5105_v43, 0.0 }
0x10cb   : > { %v6413_v0 = vpop.f32.mrf.mxu1 }
0x10cc   : > { %v5108_v51 = vadd.f32 %v6413_v0, %v5027_v31  ;;  %v5115_v1 = vmax.f32 %v5097_v41, 0.0 }
0x10cd   : > { %v5099_v9 = vpop.f32.mrf.mxu1 }
0x10ce   : > { %v5100_v11 = vadd.f32 %v5099_v9, %v5027_v31  ;;  %v5118_v20 = vmax.f32 %v5108_v51, 0.0 }
0x10d0   : > { %v5116_v54 = vmax.f32 %v5100_v11, 0.0  ;;  %v5122_v53 = vpack.c.bf16 %v5118_v20, %v5117_v21 }
0x10d2   : > { %v5121_v27 = vpack.c.bf16 %v5116_v54, %v5115_v1 }
0x10d4   : > { %6426 = vmatprep.mubr.msk.bf16.mxu0 %vm5151_vm4, %v5121_v27 }
0x10d5   : > { %6427 = vmatmul.mubr.msk.bf16.gmra.mxu0 %vm5151_vm4, %v5122_v53 }
0x1185   : > { %v6424_v28 = vpop.f32.mrf.mxu0 }
0x1186   : > { %v5207_v15 = vadd.f32 %v6424_v28, %v5126_v12 }
0x1187   : > { %v5198_v23 = vpop.f32.mrf.mxu0 }
0x1188   : > { %v7743_v47 = vadd.f32 %v5207_v15, %v7695_v24  ;;  %v5199_v10 = vadd.f32 %v5198_v23, %v5126_v12 }
0x1189   : > { %v6425_v36 = vpop.f32.mrf.mxu0 }
0x118a   : > { %v7746_v59 = vadd.f32 %v5199_v10, %v7691_v40  ;;  %v5210_v44 = vadd.f32 %v6425_v36, %v5126_v12  ;;  %v5243_v55 = vsel %vm216_vm0, %v7743_v47, 0.0  ;;  %v5271_v32 = vmul.f32 %v7743_v47, %v7743_v47 }
0x118b   : > { %5244 = vadd.xlane.f32.xlu1 %v5243_v55  ;;  %v5201_v25 = vpop.f32.mrf.mxu0 }
0x118c   : > { %v7751_v16 = vadd.f32 %v5210_v44, %v7689_v39  ;;  %v5202_v50 = vadd.f32 %v5201_v25, %v5126_v12  ;;  %v5237_v40 = vsel %vm216_vm0, %v7746_v59, 0.0  ;;  %v5283_v39 = vsel %vm216_vm0, %v5271_v32, 0.0 }
0x118d   : > { %v5269_v45 = vmul.f32 %v7746_v59, %v7746_v59 }
0x118e   : > { %v7754_v35 = vadd.f32 %v5202_v50, %v7693_v4  ;;  %v5246_v24 = vsel %vm216_vm0, %v7751_v16, 0.0  ;;  %v5272_v4 = vmul.f32 %v7751_v16, %v7751_v16 }
0x118f   : > { %5247 = vadd.xlane.f32.xlu0 %v5246_v24  ;;  %5238 = vadd.xlane.f32.xlu1 %v5237_v40  ;;  %v5277_v57 = vsel %vm216_vm0, %v5269_v45, 0.0 }
0x1190   : > { %v5240_v34 = vsel %vm216_vm0, %v7754_v35, 0.0  ;;  %v5286_v30 = vsel %vm216_vm0, %v5272_v4, 0.0  ;;  %v5270_v60 = vmul.f32 %v7754_v35, %v7754_v35 }
0x1192   : > { %v5280_v14 = vsel %vm216_vm0, %v5270_v60, 0.0 }
0x1193   : > { %5241 = vadd.xlane.f32.xlu0 %v5240_v34  ;;  %5284 = vadd.xlane.f32.xlu1 %v5283_v39 }
0x1195   : > { %v6428_v13 = vpop.f32.mrf.mxu0 }
0x1196   : > { %v5223_v58 = vadd.f32 %v6428_v13, %v5126_v12 }
0x1197   : > { %v5214_v52 = vpop.f32.mrf.mxu0  ;;  %5287 = vadd.xlane.f32.xlu0 %v5286_v30  ;;  %5278 = vadd.xlane.f32.xlu1 %v5277_v57  ;;  %v5359_v30 = vsub.s32 4, %v7560_v46  ;;  %v5371_v57 = vsub.s32 5, %v7560_v46 }
0x1198   : > { %v7774_v2 = vadd.f32 %v5223_v58, %v7717_v62  ;;  %v5215_v19 = vadd.f32 %v5214_v52, %v5126_v12 }
0x1199   : > { %v6429_v31 = vpop.f32.mrf.mxu0 }
0x119a   : > { %v7777_v18 = vadd.f32 %v5215_v19, %v7713_v7  ;;  %v5226_v33 = vadd.f32 %v6429_v31, %v5126_v12  ;;  %v5255_v22 = vsel %vm216_vm0, %v7774_v2, 0.0  ;;  %v5275_v5 = vmul.f32 %v7774_v2, %v7774_v2 }
0x119b   : > { %v5217_v63 = vpop.f32.mrf.mxu0  ;;  %5281 = vadd.xlane.f32.xlu0 %v5280_v14  ;;  %5256 = vadd.xlane.f32.xlu1 %v5255_v22 }
0x119c   : > { %v7783_v49 = vadd.f32 %v5226_v33, %v7711_v48  ;;  %v5218_v37 = vadd.f32 %v5217_v63, %v5126_v12  ;;  %v5249_v42 = vsel %vm216_vm0, %v7777_v18, 0.0  ;;  %v5273_v61 = vmul.f32 %v7777_v18, %v7777_v18 }
0x119d   : > { %v5295_v56 = vsel %vm216_vm0, %v5275_v5, 0.0  ;;  %v7824_v63 = vrot.slane %v7566_v29, %v5359_v30 }
0x119e   : > { %v7786_v62 = vadd.f32 %v5218_v37, %v7715_v26  ;;  %v5258_v7 = vsel %vm216_vm0, %v7783_v49, 0.0  ;;  %v5289_v48 = vsel %vm216_vm0, %v5273_v61, 0.0  ;;  %v5276_v17 = vmul.f32 %v7783_v49, %v7783_v49 }
0x119f   : > { %5259 = vadd.xlane.f32.xlu0 %v5258_v7  ;;  %5250 = vadd.xlane.f32.xlu1 %v5249_v42  ;;  %v7827_v42 = vrot.slane %v7566_v29, %v5371_v57 }
0x11a0   : > { %v5252_v3 = vsel %vm216_vm0, %v7786_v62, 0.0  ;;  %v5274_v26 = vmul.f32 %v7786_v62, %v7786_v62  ;;  %v5298_v8 = vsel %vm216_vm0, %v5276_v17, 0.0 }
0x11a2   : > { %v5292_v6 = vsel %vm216_vm0, %v5274_v26, 0.0 }
0x11a3   : > { %5253 = vadd.xlane.f32.xlu0 %v5252_v3  ;;  %5290 = vadd.xlane.f32.xlu1 %v5289_v48 }
0x11a7   : > { %5293 = vadd.xlane.f32.xlu0 %v5292_v6  ;;  %5296 = vadd.xlane.f32.xlu1 %v5295_v56 }
0x11ab   : > { %5299 = vadd.xlane.f32.xlu0 %v5298_v8 }
0x1214   : > { %v5245_v0 = vpop.xlane.xlu1 %5244 }
0x1215   : > { %v5263_v43 = vmul.f32 0.03125, %v5245_v0 }
0x1217   : > { %v5311_v54 = vmul.f32 %v5263_v43, %v5263_v43  ;;  %v5327_v22 = vsub.f32 %v7743_v47, %v5263_v43 }
0x1218   : > { %v5248_v41 = vpop.xlane.xlu0 %5247  ;;  %v5239_v51 = vpop.xlane.xlu1 %5238 }
0x1219   : > { %v7806_v9 = vmul.f32 0.03125, %v5248_v41  ;;  %v7808_v11 = vmul.f32 0.03125, %v5239_v51 }
0x121b   : > { %v5312_v53 = vmul.f32 %v7806_v9, %v7806_v9  ;;  %v5309_v38 = vmul.f32 %v7808_v11, %v7808_v11  ;;  %v5328_v47 = vsub.f32 %v7751_v16, %v7806_v9  ;;  %v5325_v51 = vsub.f32 %v7746_v59, %v7808_v11 }
0x121c   : > { %v5242_v20 = vpop.xlane.xlu0 %5241  ;;  %v5285_v1 = vpop.xlane.xlu1 %5284 }
0x121d   : > { %v5303_v21 = vmul.f32 0.03125, %v5285_v1  ;;  %v7814_v15 = vmul.f32 0.03125, %v5242_v20 }
0x121f   : > { %v5319_v27 = vsub.f32 %v5303_v21, %v5311_v54  ;;  %v5310_v24 = vmul.f32 %v7814_v15, %v7814_v15  ;;  %v5326_v59 = vsub.f32 %v7754_v35, %v7814_v15 }
0x1220   : > { %v5288_v12 = vpop.xlane.xlu0 %5287  ;;  %v5279_v28 = vpop.xlane.xlu1 %5278 }
0x1221   : > { %v5335_v23 = vadd.f32 1e-05, %v5319_v27  ;;  %v5304_v10 = vmul.f32 0.03125, %v5288_v12  ;;  %v5301_v36 = vmul.f32 0.03125, %v5279_v28 }
0x1223   : > { %6611 = vrsqrt.f32 %v5335_v23  ;;  %v5320_v44 = vsub.f32 %v5304_v10, %v5312_v53  ;;  %v5317_v55 = vsub.f32 %v5301_v36, %v5309_v38 }
0x1224   : > { %v5282_v25 = vpop.xlane.xlu0 %5281  ;;  %v5257_v50 = vpop.xlane.xlu1 %5256 }
0x1225   : > { %v5336_v40 = vadd.f32 1e-05, %v5320_v44  ;;  %v5333_v32 = vadd.f32 1e-05, %v5317_v55  ;;  %v5302_v34 = vmul.f32 0.03125, %v5282_v25  ;;  %v7820_v60 = vmul.f32 0.03125, %v5257_v50 }
0x1227   : > { %6613 = vrsqrt.f32 %v5336_v40  ;;  %v5318_v39 = vsub.f32 %v5302_v34, %v5310_v24  ;;  %v5315_v46 = vmul.f32 %v7820_v60, %v7820_v60  ;;  %v5331_v34 = vsub.f32 %v7774_v2, %v7820_v60 }
0x1228   : > { %6615 = vrsqrt.f32 %v5333_v32  ;;  %v5260_v4 = vpop.xlane.xlu0 %5259  ;;  %v5251_v45 = vpop.xlane.xlu1 %5250 }
0x1229   : > { %v5334_v13 = vadd.f32 1e-05, %v5318_v39  ;;  %v5265_v58 = vmul.f32 0.03125, %v5251_v45  ;;  %v5268_v17 = vmul.f32 0.03125, %v5260_v4 }
0x122b   : > { %6617 = vrsqrt.f32 %v5334_v13  ;;  %v5313_v31 = vmul.f32 %v5265_v58, %v5265_v58  ;;  %v5316_v27 = vmul.f32 %v5268_v17, %v5268_v17  ;;  %v5329_v55 = vsub.f32 %v7777_v18, %v5265_v58 }
0x122c   : > { %v5254_v52 = vpop.xlane.xlu0 %5253  ;;  %v5291_v19 = vpop.xlane.xlu1 %5290 }
0x122d   : > { %v5266_v33 = vmul.f32 0.03125, %v5254_v52  ;;  %v5305_v14 = vmul.f32 0.03125, %v5291_v19 }
0x122f   : > { %v5321_v37 = vsub.f32 %v5305_v14, %v5313_v31  ;;  %v5314_v61 = vmul.f32 %v5266_v33, %v5266_v33  ;;  %v5330_v24 = vsub.f32 %v7786_v62, %v5266_v33  ;;  %v5332_v62 = vsub.f32 %v7783_v49, %v5268_v17 }
0x1230   : > { %v6612_v7 = vpop.eup %6611  ;;  %v5294_v3 = vpop.xlane.xlu0 %5293 }
0x1231   : > { %v5297_v48 = vpop.xlane.xlu1 %5296  ;;  %v5351_v26 = vmul.f32 %v6612_v7, %v5327_v22  ;;  %v5337_v5 = vadd.f32 1e-05, %v5321_v37  ;;  %v5306_v6 = vmul.f32 0.03125, %v5294_v3 }
0x1232   : > { %v5307_v56 = vmul.f32 0.03125, %v5297_v48 }
0x1233   : > { %v5363_v8 = vmul.f32 %v7824_v63, %v5351_v26  ;;  %6619 = vrsqrt.f32 %v5337_v5  ;;  %v5322_v29 = vsub.f32 %v5306_v6, %v5314_v61 }
0x1234   : > { %v5323_v0 = vsub.f32 %v5307_v56, %v5315_v46  ;;  %v6614_v41 = vpop.eup %6613  ;;  %v5300_v43 = vpop.xlane.xlu0 %5299 }
0x1235   : > { %v6616_v20 = vpop.eup %6615  ;;  %v5375_v16 = vadd.f32 %v7827_v42, %v5363_v8  ;;  %v5352_v9 = vmul.f32 %v6614_v41, %v5328_v47  ;;  %v5338_v1 = vadd.f32 1e-05, %v5322_v29  ;;  %v5308_v53 = vmul.f32 0.03125, %v5300_v43 }
0x1236   : > { %v5339_v54 = vadd.f32 1e-05, %v5323_v0  ;;  %v5349_v21 = vmul.f32 %v6616_v20, %v5325_v51 }
0x1237   : > { %5383 = vst.msk [vmem:[%s7841_s7 + $0x10] sm:$0xff] %vm216_vm0, %v5375_v16  ;;  %v5364_v11 = vmul.f32 %v7824_v63, %v5352_v9  ;;  %6621 = vrsqrt.f32 %v5338_v1  ;;  %v5324_v28 = vsub.f32 %v5308_v53, %v5316_v27 }
0x1238   : > { %v6618_v38 = vpop.eup %6617  ;;  %v5361_v12 = vmul.f32 %v7824_v63, %v5349_v21  ;;  %6623 = vrsqrt.f32 %v5339_v54 }
0x1239   : > { %v5376_v23 = vadd.f32 %v7827_v42, %v5364_v11  ;;  %v5350_v10 = vmul.f32 %v6618_v38, %v5326_v59  ;;  %v5340_v44 = vadd.f32 1e-05, %v5324_v28 }
0x123a   : > { %v5373_v36 = vadd.f32 %v7827_v42, %v5361_v12 }
0x123b   : > { %5384 = vst.msk [vmem:[%s7841_s7 + $0x18] sm:$0xff] %vm216_vm0, %v5376_v23  ;;  %v5362_v35 = vmul.f32 %v7824_v63, %v5350_v10  ;;  %6625 = vrsqrt.f32 %v5340_v44 }
0x123c   : > { %5381 = vst.msk [vmem:[%s7841_s7] sm:$0xff] %vm216_vm0, %v5373_v36 }
0x123d   : > { %v5374_v15 = vadd.f32 %v7827_v42, %v5362_v35 }
0x123f   : > { %5382 = vst.msk [vmem:[%s7841_s7 + $0x8] sm:$0xff] %vm216_vm0, %v5374_v15 }
0x1240   : > { %v6620_v25 = vpop.eup %6619 }
0x1241   : > { %v5353_v50 = vmul.f32 %v6620_v25, %v5329_v55 }
0x1243   : > { %v5365_v40 = vmul.f32 %v7824_v63, %v5353_v50 }
0x1244   : > { %v6622_v32 = vpop.eup %6621 }
0x1245   : > { %v6624_v39 = vpop.eup %6623  ;;  %v5377_v4 = vadd.f32 %v7827_v42, %v5365_v40  ;;  %v5354_v45 = vmul.f32 %v6622_v32, %v5330_v24 }
0x1246   : > { %v5355_v13 = vmul.f32 %v6624_v39, %v5331_v34 }
0x1247   : > { %5385 = vst.msk [vmem:[%s7841_s7 + $0x20] sm:$0xff] %vm216_vm0, %v5377_v4  ;;  %v5366_v18 = vmul.f32 %v7824_v63, %v5354_v45 }
0x1248   : > { %v5367_v58 = vmul.f32 %v7824_v63, %v5355_v13  ;;  %v6626_v30 = vpop.eup %6625 }
0x1249   : > { %v5378_v57 = vadd.f32 %v7827_v42, %v5366_v18  ;;  %v5356_v2 = vmul.f32 %v6626_v30, %v5332_v62 }
0x124a   : > { %v5379_v52 = vadd.f32 %v7827_v42, %v5367_v58 }
0x124b   : > { %5386 = vst.msk [vmem:[%s7841_s7 + $0x28] sm:$0xff] %vm216_vm0, %v5378_v57  ;;  %v5368_v60 = vmul.f32 %v7824_v63, %v5356_v2 }
0x124c   : > { %5387 = vst.msk [vmem:[%s7841_s7 + $0x30] sm:$0xff] %vm216_vm0, %v5379_v52 }
0x124d   : > { %v5380_v19 = vadd.f32 %v7827_v42, %v5368_v60 }
0x124f   : > { %5388 = vst.msk [vmem:[%s7841_s7 + $0x38] sm:$0xff] %vm216_vm0, %v5380_v19 }
0x1250 PF: > { %s13_s12 = sadd.s32 1, %s6645_s12  }
0x1251   : > { %p10_p4 = scmp.ge.s32.totalorder %s13_s12, 6  }
0x1253   :  { %12 = sbr.rel (!%p10_p4) target bundleno = 1 (0x1), region = 62 }

</bundles_post_ra>
